<compile_context>
chip_gen: v7x
topology: tpu7x:2x2x1
jax: 0.10.0
libtpu: 0.0.40
codegen_flags: <defaults>
</compile_context>

<pallas_src>
import functools

import jax
import jax.numpy as jnp
from jax import lax
from jax.experimental import pallas as pl
from jax.experimental.pallas import tpu as pltpu


def _round_up(x, m):
    return (x + m - 1) // m * m


# ------------------------------ Pallas kernel --------------------------------

def _gat_kernel(x_ref, w_ref, asrc_ref, adst_ref, adj_ref, bias_ref, *rest,
                heads, out_ch, neg_slope, fused, apply_elu, eps):
    """GATConv over one row tile of destination nodes.

    x_ref    : [Np, F_in]  bf16 (full, resident across the grid)
    w_ref    : [F_in, H*C] bf16 (resident)
    asrc_ref : [H, H*C]    f32 block-diagonal att_src
    adst_ref : [H, H*C]    f32 block-diagonal att_dst
    adj_ref  : [T, Np]     bf16 {0,1} mask row tile (adj[i,j]!=0 <=> edge j->i)
    bias_ref : [1, H*C]    f32
    fused extras: add_ref [T, H*C], gamma_ref/beta_ref [1, H*C]
    out_ref  : [T, H*C]    f32
    scratch  : xw_scr [Np, H*C] f32, asrc_scr [H, Np] f32 (persist across tiles)
    """
    if fused:
        add_ref, gamma_ref, beta_ref, out_ref, xw_scr, asrc_scr = rest
    else:
        out_ref, xw_scr, asrc_scr = rest

    t = out_ref.shape[0]
    row0 = pl.multiple_of(pl.program_id(0) * t, 8)

    # ---- once per launch: projection + all-heads source logits (2 matmuls) --
    @pl.when(pl.program_id(0) == 0)
    def _():
        xw = jnp.dot(x_ref[...], w_ref[...],
                     preferred_element_type=jnp.float32)               # [Np,H*C]
        xw_scr[...] = xw
        # alpha_src[h, j] = <xw[j, h*C:(h+1)*C], att_src[h]>  (one MXU op)
        asrc_scr[...] = lax.dot_general(
            asrc_ref[...], xw, (((1,), (1,)), ((), ())),
            preferred_element_type=jnp.float32)                        # [H, Np]

    xw_all = xw_scr[...]                                               # [Np,H*C]
    xw_dst = xw_scr[pl.ds(row0, t), :]                                 # [T, H*C]

    # alpha_dst for this tile, all heads at once: [T, H]
    adst_cols = lax.dot_general(xw_dst, adst_ref[...],
                                (((1,), (1,)), ((), ())),
                                preferred_element_type=jnp.float32)

    asrc_rows = asrc_scr[...]                                          # [H, Np]
    edge = adj_ref[...] > 0                                            # [T, Np]

    z_parts = []
    for h in range(heads):                                             # static
        cols = slice(h * out_ch, (h + 1) * out_ch)
        e = adst_cols[:, h:h + 1] + asrc_rows[h:h + 1, :]              # [T, Np]
        e = jnp.where(e > 0, e, neg_slope * e)                         # LeakyReLU
        e = jnp.where(edge, e, -1e30)                                  # mask once
        e = e - jnp.max(e, axis=-1, keepdims=True)                     # stable
        p = jnp.exp(e)
        attn = p * pl.reciprocal(jnp.sum(p, axis=-1, keepdims=True), approx=True)
        zh = jnp.dot(attn.astype(jnp.bfloat16),
                     xw_all[:, cols].astype(jnp.bfloat16),
                     preferred_element_type=jnp.float32)               # [T, C]
        z_parts.append(zh)

    # Concatenate heads once in vregs -> single lane-dense store per tile.
    z = z_parts[0] if heads == 1 else jnp.concatenate(z_parts, axis=-1)
    z = z + bias_ref[...]                                              # [T, H*C]

    if fused:
        z = z + add_ref[...]                                           # + x2_group
        # LayerNorm over all H*C features (+ optional ELU).
        inv_f = 1.0 / (heads * out_ch)
        mu = jnp.sum(z, axis=-1, keepdims=True) * inv_f
        zc = z - mu
        var = jnp.sum(zc * zc, axis=-1, keepdims=True) * inv_f
        y = zc * lax.rsqrt(var + eps) * gamma_ref[...] + beta_ref[...]
        if apply_elu:
            y = jnp.where(y > 0, y, jnp.exp(jnp.minimum(y, 0.0)) - 1.0)
        out_ref[...] = y.astype(out_ref.dtype)
    else:
        out_ref[...] = z.astype(out_ref.dtype)


# -------------------------------- wrappers -----------------------------------

def _block_diag_att(att):
    """[H, C] per-head attention vector -> [H, H*C] block-diagonal rows."""
    h, c = att.shape
    eye = jnp.eye(h, dtype=att.dtype)
    return (eye[:, :, None] * att[None, :, :]).reshape(h, h * c)


def gat_conv(x, adj, params, *, heads, out_ch, add=None, norm=None,
             apply_elu=False, row_tile=256):
    """One GATConv; if `add`/`norm` given, fuses (+add, LayerNorm, ELU) epilogue."""
    n, f_in = x.shape
    hc = heads * out_ch
    fused = add is not None

    t = max(8, _round_up(min(row_tile, n), 8))        # dst-row tile (mult of 8)
    n_pad = _round_up(n, t)
    pad = n_pad - n

    xp = jnp.pad(x, ((0, pad), (0, 0))).astype(jnp.bfloat16)
    adjp = jnp.pad(adj.astype(jnp.bfloat16), ((0, pad), (0, pad)))
    w = params["w"].astype(jnp.bfloat16)
    asrc = _block_diag_att(params["att_src"])
    adst = _block_diag_att(params["att_dst"])

    inputs = [xp, w, asrc, adst, adjp, params["bias"]]
    in_specs = [
        pl.BlockSpec((n_pad, f_in), lambda i: (0, 0)),   # x (resident)
        pl.BlockSpec((f_in, hc), lambda i: (0, 0)),      # w (resident)
        pl.BlockSpec((heads, hc), lambda i: (0, 0)),     # att_src (block-diag)
        pl.BlockSpec((heads, hc), lambda i: (0, 0)),     # att_dst (block-diag)
        pl.BlockSpec((t, n_pad), lambda i: (i, 0)),      # adj row tile (pipelined)
        pl.BlockSpec((1, hc), lambda i: (0, 0)),         # bias
    ]
    if fused:
        addp = jnp.pad(add, ((0, pad), (0, 0)))
        inputs += [addp, norm["gamma"], norm["beta"]]
        in_specs += [
            pl.BlockSpec((t, hc), lambda i: (i, 0)),     # x2_group row tile
            pl.BlockSpec((1, hc), lambda i: (0, 0)),     # gamma
            pl.BlockSpec((1, hc), lambda i: (0, 0)),     # beta
        ]

    kernel = functools.partial(_gat_kernel, heads=heads, out_ch=out_ch,
                               neg_slope=0.2, fused=fused,
                               apply_elu=apply_elu, eps=1e-5)

    out = pl.pallas_call(
        kernel,
        out_shape=jax.ShapeDtypeStruct((n_pad, hc), jnp.float32),
        grid_spec=pltpu.PrefetchScalarGridSpec(
            num_scalar_prefetch=0,
            grid=(n_pad // t,),
            in_specs=in_specs,
            out_specs=pl.BlockSpec((t, hc), lambda i: (i, 0)),
            scratch_shapes=[pltpu.VMEM((n_pad, hc), jnp.float32),
                            pltpu.VMEM((heads, n_pad), jnp.float32)]),
        compiler_params=pltpu.CompilerParams(
            # "arbitrary": xw/alpha_src scratch is carried across row tiles.
            # For v7x megacore, hoist the projection and mark "parallel".
            dimension_semantics=("arbitrary",),
            vmem_limit_bytes=64 * 1024 * 1024),
    )(*inputs)
    return out[:n]


def dual_gat_conv(x1, adj1, x2, adj2, group_assignment, params, *, heads,
                  out_ch, norm, apply_elu, row_tile):
    # x2 path: plain GATConv (no norm / no ELU in the reference module).
    x2_out = gat_conv(x2, adj2, params["gat2"], heads=heads, out_ch=out_ch,
                      row_tile=row_tile)
    x2_group = x2_out[group_assignment]          # gather: plain-JAX glue
    # x1 path: GATConv + (+x2_group) + LayerNorm (+ ELU) fused in one kernel.
    x1_out = gat_conv(x1, adj1, params["gat1"], heads=heads, out_ch=out_ch,
                      add=x2_group, norm=norm, apply_elu=apply_elu,
                      row_tile=row_tile)
    return x1_out, x2_out


def gat_forward(params, cfg, x1, adj1, x2, adj2, group_assignment, *, row_tile=256):
    # num_layer == 2, norm == 'LayerNorm', eval mode -> dropout is identity.
    x1, x2 = dual_gat_conv(x1, adj1, x2, adj2, group_assignment, params["inconv"],
                           heads=cfg["n_head"], out_ch=cfg["n_hid"],
                           norm=params["in_norm"], apply_elu=True,
                           row_tile=row_tile)
    x1, x2 = dual_gat_conv(x1, adj1, x2, adj2, group_assignment, params["outconv"],
                           heads=cfg["n_head_last"], out_ch=cfg["n_class"],
                           norm=params["out_norm"], apply_elu=False,
                           row_tile=row_tile)
    return x1, x2


# --------------------------- parameter construction --------------------------

def init_gatconv_params(key, in_ch, out_ch, heads):
    k1, k2, k3 = jax.random.split(key, 3)
    scale = (2.0 / (in_ch + heads * out_ch)) ** 0.5
    return {
        "w": scale * jax.random.normal(k1, (in_ch, heads * out_ch), jnp.float32),
        "att_src": 0.1 * jax.random.normal(k2, (heads, out_ch), jnp.float32),
        "att_dst": 0.1 * jax.random.normal(k3, (heads, out_ch), jnp.float32),
        "bias": jnp.zeros((1, heads * out_ch), jnp.float32),
    }


def init_params(key, cfg):
    ks = jax.random.split(key, 4)
    return {
        "inconv": {
            "gat1": init_gatconv_params(ks[0], cfg["n_feat"], cfg["n_hid"], cfg["n_head"]),
            "gat2": init_gatconv_params(ks[1], cfg["n_feat"], cfg["n_hid"], cfg["n_head"]),
        },
        "in_norm": {
            "gamma": jnp.ones((1, cfg["n_hid"] * cfg["n_head"]), jnp.float32),
            "beta": jnp.zeros((1, cfg["n_hid"] * cfg["n_head"]), jnp.float32),
        },
        "outconv": {
            "gat1": init_gatconv_params(ks[2], cfg["n_hid"] * cfg["n_head"],
                                        cfg["n_class"], cfg["n_head_last"]),
            "gat2": init_gatconv_params(ks[3], cfg["n_hid"] * cfg["n_head"],
                                        cfg["n_class"], cfg["n_head_last"]),
        },
        "out_norm": {
            "gamma": jnp.ones((1, cfg["n_class"]), jnp.float32),
            "beta": jnp.zeros((1, cfg["n_class"]), jnp.float32),
        },
    }


def dense_adj(edge_index, num_nodes):
    """Dense {0,1} mask, adj[i, j] = 1 iff edge j -> i, with self loops (bf16)."""
    src, dst = edge_index[0], edge_index[1]
    adj = jnp.zeros((num_nodes, num_nodes), jnp.float32)
    adj = adj.at[dst, src].set(1.0)
    diag = jnp.arange(num_nodes)
    adj = adj.at[diag, diag].set(1.0)        # remove_self_loops + add_self_loops
    return adj.astype(jnp.bfloat16)


# ------------------------------------ main ------------------------------------

if __name__ == "__main__":
    cfg = {
        "n_feat": 8, "n_hid": 8, "n_head": 2,
        "n_class": 4, "n_head_last": 1,
        "num_layer": 2, "norm": "LayerNorm",
        "dropout": 0.5, "n_layer_dropout": 0.1, "att_type": "MX",
    }
    N1, N2 = 16, 8

    key = jax.random.PRNGKey(0)
    k_params, k_x1, k_x2 = jax.random.split(key, 3)

    params = init_params(k_params, cfg)

    x1 = jax.random.normal(k_x1, (N1, cfg["n_feat"]), jnp.float32)
    x2 = jax.random.normal(k_x2, (N2, cfg["n_feat"]), jnp.float32)

    # simple deterministic ring graphs
    edge_index1 = jnp.stack([jnp.arange(N1), (jnp.arange(N1) + 1) % N1])
    edge_index2 = jnp.stack([jnp.arange(N2), (jnp.arange(N2) + 1) % N2])
    group_assignment = jnp.arange(N1) % N2

    adj1 = dense_adj(edge_index1, N1)
    adj2 = dense_adj(edge_index2, N2)

    # row_tile=8 -> a 2-step grid on graph 1 (exercises the tiled/pipelined
    # path and the persistent-scratch projection); use 256+ at real sizes.
    fwd = jax.jit(functools.partial(gat_forward, params, cfg, row_tile=8))
    x1_out, x2_out = fwd(x1, adj1, x2, adj2, group_assignment)

    jax.block_until_ready((x1_out, x2_out))
    assert x1_out.shape == (N1, cfg["n_class"] * cfg["n_head_last"])
    assert x2_out.shape == (N2, cfg["n_class"] * cfg["n_head_last"])
    assert bool(jnp.all(jnp.isfinite(x1_out))) and bool(jnp.all(jnp.isfinite(x2_out)))
    print("KERNEL_OK")
</pallas_src>

<mosaic_0001>
module attributes {stable_mosaic.version = 11 : i64} {
  func.func @_gat_kernel(%arg0: i32, %arg1: memref<8x8xbf16, #tpu.memory_space<vmem>>, %arg2: memref<8x16xbf16, #tpu.memory_space<vmem>>, %arg3: memref<2x16xf32, #tpu.memory_space<vmem>>, %arg4: memref<2x16xf32, #tpu.memory_space<vmem>>, %arg5: memref<8x8xbf16, #tpu.memory_space<vmem>>, %arg6: memref<1x16xf32, #tpu.memory_space<vmem>>, %arg7: memref<8x16xf32, #tpu.memory_space<vmem>>, %arg8: memref<8x16xf32, #tpu.memory_space<vmem>>, %arg9: memref<2x8xf32, #tpu.memory_space<vmem>>) attributes {dimension_semantics = [#tpu.dimension_semantics<arbitrary>], iteration_bounds = array<i64: 1>, scalar_prefetch = 0 : i64, scratch_operands = 2 : i64, tpu.core_type = #tpu.core_type<tc>, window_params = [{pipeline_mode = #tpu.pipeline_mode<synchronous>, transform_indices = @transform_0, window_bounds = array<i64: 8, 8>}, {pipeline_mode = #tpu.pipeline_mode<synchronous>, transform_indices = @transform_1, window_bounds = array<i64: 8, 16>}, {pipeline_mode = #tpu.pipeline_mode<synchronous>, transform_indices = @transform_2, window_bounds = array<i64: 2, 16>}, {pipeline_mode = #tpu.pipeline_mode<synchronous>, transform_indices = @transform_3, window_bounds = array<i64: 2, 16>}, {transform_indices = @transform_4, window_bounds = array<i64: 8, 8>}, {pipeline_mode = #tpu.pipeline_mode<synchronous>, transform_indices = @transform_5, window_bounds = array<i64: 1, 16>}, {transform_indices = @transform_6, window_bounds = array<i64: 8, 16>}]} {
    %c8_i32 = arith.constant 8 : i32
    %0 = arith.muli %arg0, %c8_i32 : i32
    %1 = tpu.assume_multiple %0, 8 : i32
    %c0_i32 = arith.constant 0 : i32
    %2 = arith.cmpi eq, %arg0, %c0_i32 : i32
    %3 = arith.extui %2 : i1 to i32
    %c0_i32_0 = arith.constant 0 : i32
    %4 = arith.cmpi ne, %3, %c0_i32_0 : i32
    scf.if %4 {
      %c0_26 = arith.constant 0 : index
      %c0_27 = arith.constant 0 : index
      %71 = vector.load %arg1[%c0_26, %c0_27] : memref<8x8xbf16, #tpu.memory_space<vmem>>, vector<8x8xbf16>
      %c0_28 = arith.constant 0 : index
      %c0_29 = arith.constant 0 : index
      %72 = vector.load %arg2[%c0_28, %c0_29] : memref<8x16xbf16, #tpu.memory_space<vmem>>, vector<8x16xbf16>
      %cst_30 = arith.constant dense<0.000000e+00> : vector<8x16xf32>
      %73 = tpu.matmul %71, %72, %cst_30 {dimension_numbers = #tpu.dot_dimension_numbers<[1], [0], [0], [1], [0, 0, 1, 1], [], []>} : vector<8x8xbf16>, vector<8x16xbf16>, vector<8x16xf32> -> vector<8x16xf32>
      %c0_31 = arith.constant 0 : index
      %c0_32 = arith.constant 0 : index
      %74 = vector.load %arg8[%c0_31, %c0_32] : memref<8x16xf32, #tpu.memory_space<vmem>>, vector<8x16xf32>
      tpu.vector_store %arg8[%c0_31, %c0_32], %73 {strides = array<i32>} : memref<8x16xf32, #tpu.memory_space<vmem>>, vector<8x16xf32>,
      %c0_33 = arith.constant 0 : index
      %c0_34 = arith.constant 0 : index
      %75 = vector.load %arg3[%c0_33, %c0_34] : memref<2x16xf32, #tpu.memory_space<vmem>>, vector<2x16xf32>
      %cst_35 = arith.constant dense<0.000000e+00> : vector<2x8xf32>
      %76 = tpu.matmul %75, %73, %cst_35 {dimension_numbers = #tpu.dot_dimension_numbers<[1], [1], [0], [0], [0, 0, 1, 0], [], []>} : vector<2x16xf32>, vector<8x16xf32>, vector<2x8xf32> -> vector<2x8xf32>
      %c0_36 = arith.constant 0 : index
      %c0_37 = arith.constant 0 : index
      %77 = vector.load %arg9[%c0_36, %c0_37] : memref<2x8xf32, #tpu.memory_space<vmem>>, vector<2x8xf32>
      tpu.vector_store %arg9[%c0_36, %c0_37], %76 {strides = array<i32>} : memref<2x8xf32, #tpu.memory_space<vmem>>, vector<2x8xf32>,
    } else {
    }
    %c0 = arith.constant 0 : index
    %c0_1 = arith.constant 0 : index
    %5 = vector.load %arg8[%c0, %c0_1] : memref<8x16xf32, #tpu.memory_space<vmem>>, vector<8x16xf32>
    %6 = arith.index_cast %1 : i32 to index
    %c0_2 = arith.constant 0 : index
    %7 = vector.load %arg8[%6, %c0_2] : memref<8x16xf32, #tpu.memory_space<vmem>>, vector<8x16xf32>
    %c0_3 = arith.constant 0 : index
    %c0_4 = arith.constant 0 : index
    %8 = vector.load %arg4[%c0_3, %c0_4] : memref<2x16xf32, #tpu.memory_space<vmem>>, vector<2x16xf32>
    %cst = arith.constant dense<0.000000e+00> : vector<8x2xf32>
    %9 = tpu.matmul %7, %8, %cst {dimension_numbers = #tpu.dot_dimension_numbers<[1], [1], [0], [0], [0, 0, 1, 0], [], []>} : vector<8x16xf32>, vector<2x16xf32>, vector<8x2xf32> -> vector<8x2xf32>
    %c0_5 = arith.constant 0 : index
    %c0_6 = arith.constant 0 : index
    %10 = vector.load %arg9[%c0_5, %c0_6] : memref<2x8xf32, #tpu.memory_space<vmem>>, vector<2x8xf32>
    %c0_7 = arith.constant 0 : index
    %c0_8 = arith.constant 0 : index
    %11 = vector.load %arg5[%c0_7, %c0_8] : memref<8x8xbf16, #tpu.memory_space<vmem>>, vector<8x8xbf16>
    %cst_9 = arith.constant 0.000000e+00 : bf16
    %12 = vector.broadcast %cst_9 : bf16 to vector<8x8xbf16>
    %13 = arith.cmpf ogt, %11, %12 : vector<8x8xbf16>
    %14 = vector.extract_strided_slice %9 {offsets = [0, 0], sizes = [8, 1], strides = [1, 1]} : vector<8x2xf32> to vector<8x1xf32>
    %15 = vector.extract_strided_slice %10 {offsets = [0, 0], sizes = [1, 8], strides = [1, 1]} : vector<2x8xf32> to vector<1x8xf32>
    %16 = vector.broadcast %14 : vector<8x1xf32> to vector<8x8xf32>
    %17 = vector.broadcast %15 : vector<1x8xf32> to vector<8x8xf32>
    %18 = arith.addf %16, %17 : vector<8x8xf32>
    %cst_10 = arith.constant 0.000000e+00 : f32
    %19 = vector.broadcast %cst_10 : f32 to vector<8x8xf32>
    %20 = arith.cmpf ogt, %18, %19 : vector<8x8xf32>
    %cst_11 = arith.constant 2.000000e-01 : f32
    %21 = vector.broadcast %cst_11 : f32 to vector<8x8xf32>
    %22 = arith.mulf %21, %18 : vector<8x8xf32>
    %23 = arith.select %20, %18, %22 : vector<8x8xi1>, vector<8x8xf32>
    %cst_12 = arith.constant -1.000000e+30 : f32
    %24 = vector.broadcast %cst_12 : f32 to vector<8x8xf32>
    %25 = arith.select %13, %23, %24 : vector<8x8xi1>, vector<8x8xf32>
    %cst_13 = arith.constant dense<0xFF800000> : vector<8xf32>
    %26 = vector.multi_reduction <maximumf>, %25, %cst_13 [1] : vector<8x8xf32> to vector<8xf32>
    %27 = vector.shape_cast %26 : vector<8xf32> to vector<8x1xf32>
    %28 = vector.broadcast %27 : vector<8x1xf32> to vector<8x8xf32>
    %29 = arith.subf %25, %28 : vector<8x8xf32>
    %30 = math.exp %29 : vector<8x8xf32>
    %cst_14 = arith.constant dense<0.000000e+00> : vector<8xf32>
    %31 = vector.multi_reduction <add>, %30, %cst_14 [1] : vector<8x8xf32> to vector<8xf32>
    %32 = vector.shape_cast %31 : vector<8xf32> to vector<8x1xf32>
    %33 = tpu.reciprocal %32 {approx = true} : vector<8x1xf32> -> vector<8x1xf32>
    %34 = vector.broadcast %33 : vector<8x1xf32> to vector<8x8xf32>
    %35 = arith.mulf %30, %34 : vector<8x8xf32>
    %36 = arith.truncf %35 : vector<8x8xf32> to vector<8x8xbf16>
    %37 = vector.extract_strided_slice %5 {offsets = [0, 0], sizes = [8, 8], strides = [1, 1]} : vector<8x16xf32> to vector<8x8xf32>
    %38 = arith.truncf %37 : vector<8x8xf32> to vector<8x8xbf16>
    %cst_15 = arith.constant dense<0.000000e+00> : vector<8x8xf32>
    %39 = tpu.matmul %36, %38, %cst_15 {dimension_numbers = #tpu.dot_dimension_numbers<[1], [0], [0], [1], [0, 0, 1, 1], [], []>} : vector<8x8xbf16>, vector<8x8xbf16>, vector<8x8xf32> -> vector<8x8xf32>
    %40 = vector.extract_strided_slice %9 {offsets = [0, 1], sizes = [8, 1], strides = [1, 1]} : vector<8x2xf32> to vector<8x1xf32>
    %41 = vector.extract_strided_slice %10 {offsets = [1, 0], sizes = [1, 8], strides = [1, 1]} : vector<2x8xf32> to vector<1x8xf32>
    %42 = vector.broadcast %40 : vector<8x1xf32> to vector<8x8xf32>
    %43 = vector.broadcast %41 : vector<1x8xf32> to vector<8x8xf32>
    %44 = arith.addf %42, %43 : vector<8x8xf32>
    %cst_16 = arith.constant 0.000000e+00 : f32
    %45 = vector.broadcast %cst_16 : f32 to vector<8x8xf32>
    %46 = arith.cmpf ogt, %44, %45 : vector<8x8xf32>
    %cst_17 = arith.constant 2.000000e-01 : f32
    %47 = vector.broadcast %cst_17 : f32 to vector<8x8xf32>
    %48 = arith.mulf %47, %44 : vector<8x8xf32>
    %49 = arith.select %46, %44, %48 : vector<8x8xi1>, vector<8x8xf32>
    %cst_18 = arith.constant -1.000000e+30 : f32
    %50 = vector.broadcast %cst_18 : f32 to vector<8x8xf32>
    %51 = arith.select %13, %49, %50 : vector<8x8xi1>, vector<8x8xf32>
    %cst_19 = arith.constant dense<0xFF800000> : vector<8xf32>
    %52 = vector.multi_reduction <maximumf>, %51, %cst_19 [1] : vector<8x8xf32> to vector<8xf32>
    %53 = vector.shape_cast %52 : vector<8xf32> to vector<8x1xf32>
    %54 = vector.broadcast %53 : vector<8x1xf32> to vector<8x8xf32>
    %55 = arith.subf %51, %54 : vector<8x8xf32>
    %56 = math.exp %55 : vector<8x8xf32>
    %cst_20 = arith.constant dense<0.000000e+00> : vector<8xf32>
    %57 = vector.multi_reduction <add>, %56, %cst_20 [1] : vector<8x8xf32> to vector<8xf32>
    %58 = vector.shape_cast %57 : vector<8xf32> to vector<8x1xf32>
    %59 = tpu.reciprocal %58 {approx = true} : vector<8x1xf32> -> vector<8x1xf32>
    %60 = vector.broadcast %59 : vector<8x1xf32> to vector<8x8xf32>
    %61 = arith.mulf %56, %60 : vector<8x8xf32>
    %62 = arith.truncf %61 : vector<8x8xf32> to vector<8x8xbf16>
    %63 = vector.extract_strided_slice %5 {offsets = [0, 8], sizes = [8, 8], strides = [1, 1]} : vector<8x16xf32> to vector<8x8xf32>
    %64 = arith.truncf %63 : vector<8x8xf32> to vector<8x8xbf16>
    %cst_21 = arith.constant dense<0.000000e+00> : vector<8x8xf32>
    %65 = tpu.matmul %62, %64, %cst_21 {dimension_numbers = #tpu.dot_dimension_numbers<[1], [0], [0], [1], [0, 0, 1, 1], [], []>} : vector<8x8xbf16>, vector<8x8xbf16>, vector<8x8xf32> -> vector<8x8xf32>
    %66 = tpu.concatenate %39, %65 in 1 : vector<8x8xf32>, vector<8x8xf32> -> vector<8x16xf32>
    %c0_22 = arith.constant 0 : index
    %c0_23 = arith.constant 0 : index
    %67 = vector.load %arg6[%c0_22, %c0_23] : memref<1x16xf32, #tpu.memory_space<vmem>>, vector<1x16xf32>
    %68 = vector.broadcast %67 : vector<1x16xf32> to vector<8x16xf32>
    %69 = arith.addf %66, %68 : vector<8x16xf32>
    %c0_24 = arith.constant 0 : index
    %c0_25 = arith.constant 0 : index
    %70 = vector.load %arg7[%c0_24, %c0_25] : memref<8x16xf32, #tpu.memory_space<vmem>>, vector<8x16xf32>
    tpu.vector_store %arg7[%c0_24, %c0_25], %69 {strides = array<i32>} : memref<8x16xf32, #tpu.memory_space<vmem>>, vector<8x16xf32>,
    return
  }
  func.func @transform_0(%arg0: i32) -> (i32, i32) {
    %c0_i32 = arith.constant 0 : i32
    %c0_i32_0 = arith.constant 0 : i32
    %c0_i32_1 = arith.constant 0 : i32
    return %c0_i32, %c0_i32_0 : i32, i32
  }
  func.func @transform_1(%arg0: i32) -> (i32, i32) {
    %c0_i32 = arith.constant 0 : i32
    %c0_i32_0 = arith.constant 0 : i32
    %c0_i32_1 = arith.constant 0 : i32
    return %c0_i32, %c0_i32_0 : i32, i32
  }
  func.func @transform_2(%arg0: i32) -> (i32, i32) {
    %c0_i32 = arith.constant 0 : i32
    %c0_i32_0 = arith.constant 0 : i32
    %c0_i32_1 = arith.constant 0 : i32
    return %c0_i32, %c0_i32_0 : i32, i32
  }
  func.func @transform_3(%arg0: i32) -> (i32, i32) {
    %c0_i32 = arith.constant 0 : i32
    %c0_i32_0 = arith.constant 0 : i32
    %c0_i32_1 = arith.constant 0 : i32
    return %c0_i32, %c0_i32_0 : i32, i32
  }
  func.func @transform_4(%arg0: i32) -> (i32, i32) {
    %c0_i32 = arith.constant 0 : i32
    %c0_i32_0 = arith.constant 0 : i32
    return %arg0, %c0_i32 : i32, i32
  }
  func.func @transform_5(%arg0: i32) -> (i32, i32) {
    %c0_i32 = arith.constant 0 : i32
    %c0_i32_0 = arith.constant 0 : i32
    %c0_i32_1 = arith.constant 0 : i32
    return %c0_i32, %c0_i32_0 : i32, i32
  }
  func.func @transform_6(%arg0: i32) -> (i32, i32) {
    %c0_i32 = arith.constant 0 : i32
    %c0_i32_0 = arith.constant 0 : i32
    return %arg0, %c0_i32 : i32, i32
  }
}

module attributes {stable_mosaic.version = 11 : i64} {
  func.func @_gat_kernel(%arg0: i32, %arg1: memref<16x8xbf16, #tpu.memory_space<vmem>>, %arg2: memref<8x16xbf16, #tpu.memory_space<vmem>>, %arg3: memref<2x16xf32, #tpu.memory_space<vmem>>, %arg4: memref<2x16xf32, #tpu.memory_space<vmem>>, %arg5: memref<8x16xbf16, #tpu.memory_space<vmem>>, %arg6: memref<1x16xf32, #tpu.memory_space<vmem>>, %arg7: memref<8x16xf32, #tpu.memory_space<vmem>>, %arg8: memref<1x16xf32, #tpu.memory_space<vmem>>, %arg9: memref<1x16xf32, #tpu.memory_space<vmem>>, %arg10: memref<8x16xf32, #tpu.memory_space<vmem>>, %arg11: memref<16x16xf32, #tpu.memory_space<vmem>>, %arg12: memref<2x16xf32, #tpu.memory_space<vmem>>) attributes {dimension_semantics = [#tpu.dimension_semantics<arbitrary>], iteration_bounds = array<i64: 2>, scalar_prefetch = 0 : i64, scratch_operands = 2 : i64, tpu.core_type = #tpu.core_type<tc>, window_params = [{pipeline_mode = #tpu.pipeline_mode<synchronous>, transform_indices = @transform_0, window_bounds = array<i64: 16, 8>}, {pipeline_mode = #tpu.pipeline_mode<synchronous>, transform_indices = @transform_1, window_bounds = array<i64: 8, 16>}, {pipeline_mode = #tpu.pipeline_mode<synchronous>, transform_indices = @transform_2, window_bounds = array<i64: 2, 16>}, {pipeline_mode = #tpu.pipeline_mode<synchronous>, transform_indices = @transform_3, window_bounds = array<i64: 2, 16>}, {transform_indices = @transform_4, window_bounds = array<i64: 8, 16>}, {pipeline_mode = #tpu.pipeline_mode<synchronous>, transform_indices = @transform_5, window_bounds = array<i64: 1, 16>}, {transform_indices = @transform_6, window_bounds = array<i64: 8, 16>}, {pipeline_mode = #tpu.pipeline_mode<synchronous>, transform_indices = @transform_7, window_bounds = array<i64: 1, 16>}, {pipeline_mode = #tpu.pipeline_mode<synchronous>, transform_indices = @transform_8, window_bounds = array<i64: 1, 16>}, {transform_indices = @transform_9, window_bounds = array<i64: 8, 16>}]} {
    %c8_i32 = arith.constant 8 : i32
    %0 = arith.muli %arg0, %c8_i32 : i32
    %1 = tpu.assume_multiple %0, 8 : i32
    %c0_i32 = arith.constant 0 : i32
    %2 = arith.cmpi eq, %arg0, %c0_i32 : i32
    %3 = arith.extui %2 : i1 to i32
    %c0_i32_0 = arith.constant 0 : i32
    %4 = arith.cmpi ne, %3, %c0_i32_0 : i32
    scf.if %4 {
      %c0_40 = arith.constant 0 : index
      %c0_41 = arith.constant 0 : index
      %103 = vector.load %arg1[%c0_40, %c0_41] : memref<16x8xbf16, #tpu.memory_space<vmem>>, vector<16x8xbf16>
      %c0_42 = arith.constant 0 : index
      %c0_43 = arith.constant 0 : index
      %104 = vector.load %arg2[%c0_42, %c0_43] : memref<8x16xbf16, #tpu.memory_space<vmem>>, vector<8x16xbf16>
      %cst_44 = arith.constant dense<0.000000e+00> : vector<16x16xf32>
      %105 = tpu.matmul %103, %104, %cst_44 {dimension_numbers = #tpu.dot_dimension_numbers<[1], [0], [0], [1], [0, 0, 1, 1], [], []>} : vector<16x8xbf16>, vector<8x16xbf16>, vector<16x16xf32> -> vector<16x16xf32>
      %c0_45 = arith.constant 0 : index
      %c0_46 = arith.constant 0 : index
      %106 = vector.load %arg11[%c0_45, %c0_46] : memref<16x16xf32, #tpu.memory_space<vmem>>, vector<16x16xf32>
      tpu.vector_store %arg11[%c0_45, %c0_46], %105 {strides = array<i32>} : memref<16x16xf32, #tpu.memory_space<vmem>>, vector<16x16xf32>,
      %c0_47 = arith.constant 0 : index
      %c0_48 = arith.constant 0 : index
      %107 = vector.load %arg3[%c0_47, %c0_48] : memref<2x16xf32, #tpu.memory_space<vmem>>, vector<2x16xf32>
      %cst_49 = arith.constant dense<0.000000e+00> : vector<2x16xf32>
      %108 = tpu.matmul %107, %105, %cst_49 {dimension_numbers = #tpu.dot_dimension_numbers<[1], [1], [0], [0], [0, 0, 1, 0], [], []>} : vector<2x16xf32>, vector<16x16xf32>, vector<2x16xf32> -> vector<2x16xf32>
      %c0_50 = arith.constant 0 : index
      %c0_51 = arith.constant 0 : index
      %109 = vector.load %arg12[%c0_50, %c0_51] : memref<2x16xf32, #tpu.memory_space<vmem>>, vector<2x16xf32>
      tpu.vector_store %arg12[%c0_50, %c0_51], %108 {strides = array<i32>} : memref<2x16xf32, #tpu.memory_space<vmem>>, vector<2x16xf32>,
    } else {
    }
    %c0 = arith.constant 0 : index
    %c0_1 = arith.constant 0 : index
    %5 = vector.load %arg11[%c0, %c0_1] : memref<16x16xf32, #tpu.memory_space<vmem>>, vector<16x16xf32>
    %6 = arith.index_cast %1 : i32 to index
    %c0_2 = arith.constant 0 : index
    %7 = vector.load %arg11[%6, %c0_2] : memref<16x16xf32, #tpu.memory_space<vmem>>, vector<8x16xf32>
    %c0_3 = arith.constant 0 : index
    %c0_4 = arith.constant 0 : index
    %8 = vector.load %arg4[%c0_3, %c0_4] : memref<2x16xf32, #tpu.memory_space<vmem>>, vector<2x16xf32>
    %cst = arith.constant dense<0.000000e+00> : vector<8x2xf32>
    %9 = tpu.matmul %7, %8, %cst {dimension_numbers = #tpu.dot_dimension_numbers<[1], [1], [0], [0], [0, 0, 1, 0], [], []>} : vector<8x16xf32>, vector<2x16xf32>, vector<8x2xf32> -> vector<8x2xf32>
    %c0_5 = arith.constant 0 : index
    %c0_6 = arith.constant 0 : index
    %10 = vector.load %arg12[%c0_5, %c0_6] : memref<2x16xf32, #tpu.memory_space<vmem>>, vector<2x16xf32>
    %c0_7 = arith.constant 0 : index
    %c0_8 = arith.constant 0 : index
    %11 = vector.load %arg5[%c0_7, %c0_8] : memref<8x16xbf16, #tpu.memory_space<vmem>>, vector<8x16xbf16>
    %cst_9 = arith.constant 0.000000e+00 : bf16
    %12 = vector.broadcast %cst_9 : bf16 to vector<8x16xbf16>
    %13 = arith.cmpf ogt, %11, %12 : vector<8x16xbf16>
    %14 = vector.extract_strided_slice %9 {offsets = [0, 0], sizes = [8, 1], strides = [1, 1]} : vector<8x2xf32> to vector<8x1xf32>
    %15 = vector.extract_strided_slice %10 {offsets = [0, 0], sizes = [1, 16], strides = [1, 1]} : vector<2x16xf32> to vector<1x16xf32>
    %16 = vector.broadcast %14 : vector<8x1xf32> to vector<8x16xf32>
    %17 = vector.broadcast %15 : vector<1x16xf32> to vector<8x16xf32>
    %18 = arith.addf %16, %17 : vector<8x16xf32>
    %cst_10 = arith.constant 0.000000e+00 : f32
    %19 = vector.broadcast %cst_10 : f32 to vector<8x16xf32>
    %20 = arith.cmpf ogt, %18, %19 : vector<8x16xf32>
    %cst_11 = arith.constant 2.000000e-01 : f32
    %21 = vector.broadcast %cst_11 : f32 to vector<8x16xf32>
    %22 = arith.mulf %21, %18 : vector<8x16xf32>
    %23 = arith.select %20, %18, %22 : vector<8x16xi1>, vector<8x16xf32>
    %cst_12 = arith.constant -1.000000e+30 : f32
    %24 = vector.broadcast %cst_12 : f32 to vector<8x16xf32>
    %25 = arith.select %13, %23, %24 : vector<8x16xi1>, vector<8x16xf32>
    %cst_13 = arith.constant dense<0xFF800000> : vector<8xf32>
    %26 = vector.multi_reduction <maximumf>, %25, %cst_13 [1] : vector<8x16xf32> to vector<8xf32>
    %27 = vector.shape_cast %26 : vector<8xf32> to vector<8x1xf32>
    %28 = vector.broadcast %27 : vector<8x1xf32> to vector<8x16xf32>
    %29 = arith.subf %25, %28 : vector<8x16xf32>
    %30 = math.exp %29 : vector<8x16xf32>
    %cst_14 = arith.constant dense<0.000000e+00> : vector<8xf32>
    %31 = vector.multi_reduction <add>, %30, %cst_14 [1] : vector<8x16xf32> to vector<8xf32>
    %32 = vector.shape_cast %31 : vector<8xf32> to vector<8x1xf32>
    %33 = tpu.reciprocal %32 {approx = true} : vector<8x1xf32> -> vector<8x1xf32>
    %34 = vector.broadcast %33 : vector<8x1xf32> to vector<8x16xf32>
    %35 = arith.mulf %30, %34 : vector<8x16xf32>
    %36 = arith.truncf %35 : vector<8x16xf32> to vector<8x16xbf16>
    %37 = vector.extract_strided_slice %5 {offsets = [0, 0], sizes = [16, 8], strides = [1, 1]} : vector<16x16xf32> to vector<16x8xf32>
    %38 = arith.truncf %37 : vector<16x8xf32> to vector<16x8xbf16>
    %cst_15 = arith.constant dense<0.000000e+00> : vector<8x8xf32>
    %39 = tpu.matmul %36, %38, %cst_15 {dimension_numbers = #tpu.dot_dimension_numbers<[1], [0], [0], [1], [0, 0, 1, 1], [], []>} : vector<8x16xbf16>, vector<16x8xbf16>, vector<8x8xf32> -> vector<8x8xf32>
    %40 = vector.extract_strided_slice %9 {offsets = [0, 1], sizes = [8, 1], strides = [1, 1]} : vector<8x2xf32> to vector<8x1xf32>
    %41 = vector.extract_strided_slice %10 {offsets = [1, 0], sizes = [1, 16], strides = [1, 1]} : vector<2x16xf32> to vector<1x16xf32>
    %42 = vector.broadcast %40 : vector<8x1xf32> to vector<8x16xf32>
    %43 = vector.broadcast %41 : vector<1x16xf32> to vector<8x16xf32>
    %44 = arith.addf %42, %43 : vector<8x16xf32>
    %cst_16 = arith.constant 0.000000e+00 : f32
    %45 = vector.broadcast %cst_16 : f32 to vector<8x16xf32>
    %46 = arith.cmpf ogt, %44, %45 : vector<8x16xf32>
    %cst_17 = arith.constant 2.000000e-01 : f32
    %47 = vector.broadcast %cst_17 : f32 to vector<8x16xf32>
    %48 = arith.mulf %47, %44 : vector<8x16xf32>
    %49 = arith.select %46, %44, %48 : vector<8x16xi1>, vector<8x16xf32>
    %cst_18 = arith.constant -1.000000e+30 : f32
    %50 = vector.broadcast %cst_18 : f32 to vector<8x16xf32>
    %51 = arith.select %13, %49, %50 : vector<8x16xi1>, vector<8x16xf32>
    %cst_19 = arith.constant dense<0xFF800000> : vector<8xf32>
    %52 = vector.multi_reduction <maximumf>, %51, %cst_19 [1] : vector<8x16xf32> to vector<8xf32>
    %53 = vector.shape_cast %52 : vector<8xf32> to vector<8x1xf32>
    %54 = vector.broadcast %53 : vector<8x1xf32> to vector<8x16xf32>
    %55 = arith.subf %51, %54 : vector<8x16xf32>
    %56 = math.exp %55 : vector<8x16xf32>
    %cst_20 = arith.constant dense<0.000000e+00> : vector<8xf32>
    %57 = vector.multi_reduction <add>, %56, %cst_20 [1] : vector<8x16xf32> to vector<8xf32>
    %58 = vector.shape_cast %57 : vector<8xf32> to vector<8x1xf32>
    %59 = tpu.reciprocal %58 {approx = true} : vector<8x1xf32> -> vector<8x1xf32>
    %60 = vector.broadcast %59 : vector<8x1xf32> to vector<8x16xf32>
    %61 = arith.mulf %56, %60 : vector<8x16xf32>
    %62 = arith.truncf %61 : vector<8x16xf32> to vector<8x16xbf16>
    %63 = vector.extract_strided_slice %5 {offsets = [0, 8], sizes = [16, 8], strides = [1, 1]} : vector<16x16xf32> to vector<16x8xf32>
    %64 = arith.truncf %63 : vector<16x8xf32> to vector<16x8xbf16>
    %cst_21 = arith.constant dense<0.000000e+00> : vector<8x8xf32>
    %65 = tpu.matmul %62, %64, %cst_21 {dimension_numbers = #tpu.dot_dimension_numbers<[1], [0], [0], [1], [0, 0, 1, 1], [], []>} : vector<8x16xbf16>, vector<16x8xbf16>, vector<8x8xf32> -> vector<8x8xf32>
    %66 = tpu.concatenate %39, %65 in 1 : vector<8x8xf32>, vector<8x8xf32> -> vector<8x16xf32>
    %c0_22 = arith.constant 0 : index
    %c0_23 = arith.constant 0 : index
    %67 = vector.load %arg6[%c0_22, %c0_23] : memref<1x16xf32, #tpu.memory_space<vmem>>, vector<1x16xf32>
    %68 = vector.broadcast %67 : vector<1x16xf32> to vector<8x16xf32>
    %69 = arith.addf %66, %68 : vector<8x16xf32>
    %c0_24 = arith.constant 0 : index
    %c0_25 = arith.constant 0 : index
    %70 = vector.load %arg7[%c0_24, %c0_25] : memref<8x16xf32, #tpu.memory_space<vmem>>, vector<8x16xf32>
    %71 = arith.addf %69, %70 : vector<8x16xf32>
    %cst_26 = arith.constant dense<0.000000e+00> : vector<8xf32>
    %72 = vector.multi_reduction <add>, %71, %cst_26 [1] : vector<8x16xf32> to vector<8xf32>
    %73 = vector.shape_cast %72 : vector<8xf32> to vector<8x1xf32>
    %cst_27 = arith.constant 6.250000e-02 : f32
    %74 = vector.broadcast %cst_27 : f32 to vector<8x1xf32>
    %75 = arith.mulf %73, %74 : vector<8x1xf32>
    %76 = vector.broadcast %75 : vector<8x1xf32> to vector<8x16xf32>
    %77 = arith.subf %71, %76 : vector<8x16xf32>
    %78 = arith.mulf %77, %77 : vector<8x16xf32>
    %cst_28 = arith.constant dense<0.000000e+00> : vector<8xf32>
    %79 = vector.multi_reduction <add>, %78, %cst_28 [1] : vector<8x16xf32> to vector<8xf32>
    %80 = vector.shape_cast %79 : vector<8xf32> to vector<8x1xf32>
    %cst_29 = arith.constant 6.250000e-02 : f32
    %81 = vector.broadcast %cst_29 : f32 to vector<8x1xf32>
    %82 = arith.mulf %80, %81 : vector<8x1xf32>
    %cst_30 = arith.constant 9.99999974E-6 : f32
    %83 = vector.broadcast %cst_30 : f32 to vector<8x1xf32>
    %84 = arith.addf %82, %83 : vector<8x1xf32>
    %85 = math.rsqrt %84 : vector<8x1xf32>
    %86 = vector.broadcast %85 : vector<8x1xf32> to vector<8x16xf32>
    %87 = arith.mulf %77, %86 : vector<8x16xf32>
    %c0_31 = arith.constant 0 : index
    %c0_32 = arith.constant 0 : index
    %88 = vector.load %arg8[%c0_31, %c0_32] : memref<1x16xf32, #tpu.memory_space<vmem>>, vector<1x16xf32>
    %89 = vector.broadcast %88 : vector<1x16xf32> to vector<8x16xf32>
    %90 = arith.mulf %87, %89 : vector<8x16xf32>
    %c0_33 = arith.constant 0 : index
    %c0_34 = arith.constant 0 : index
    %91 = vector.load %arg9[%c0_33, %c0_34] : memref<1x16xf32, #tpu.memory_space<vmem>>, vector<1x16xf32>
    %92 = vector.broadcast %91 : vector<1x16xf32> to vector<8x16xf32>
    %93 = arith.addf %90, %92 : vector<8x16xf32>
    %cst_35 = arith.constant 0.000000e+00 : f32
    %94 = vector.broadcast %cst_35 : f32 to vector<8x16xf32>
    %95 = arith.cmpf ogt, %93, %94 : vector<8x16xf32>
    %cst_36 = arith.constant 0.000000e+00 : f32
    %96 = vector.broadcast %cst_36 : f32 to vector<8x16xf32>
    %97 = arith.minimumf %93, %96 : vector<8x16xf32>
    %98 = math.exp %97 : vector<8x16xf32>
    %cst_37 = arith.constant 1.000000e+00 : f32
    %99 = vector.broadcast %cst_37 : f32 to vector<8x16xf32>
    %100 = arith.subf %98, %99 : vector<8x16xf32>
    %101 = arith.select %95, %93, %100 : vector<8x16xi1>, vector<8x16xf32>
    %c0_38 = arith.constant 0 : index
    %c0_39 = arith.constant 0 : index
    %102 = vector.load %arg10[%c0_38, %c0_39] : memref<8x16xf32, #tpu.memory_space<vmem>>, vector<8x16xf32>
    tpu.vector_store %arg10[%c0_38, %c0_39], %101 {strides = array<i32>} : memref<8x16xf32, #tpu.memory_space<vmem>>, vector<8x16xf32>,
    return
  }
  func.func @transform_0(%arg0: i32) -> (i32, i32) {
    %c0_i32 = arith.constant 0 : i32
    %c0_i32_0 = arith.constant 0 : i32
    %c0_i32_1 = arith.constant 0 : i32
    return %c0_i32, %c0_i32_0 : i32, i32
  }
  func.func @transform_1(%arg0: i32) -> (i32, i32) {
    %c0_i32 = arith.constant 0 : i32
    %c0_i32_0 = arith.constant 0 : i32
    %c0_i32_1 = arith.constant 0 : i32
    return %c0_i32, %c0_i32_0 : i32, i32
  }
  func.func @transform_2(%arg0: i32) -> (i32, i32) {
    %c0_i32 = arith.constant 0 : i32
    %c0_i32_0 = arith.constant 0 : i32
    %c0_i32_1 = arith.constant 0 : i32
    return %c0_i32, %c0_i32_0 : i32, i32
  }
  func.func @transform_3(%arg0: i32) -> (i32, i32) {
    %c0_i32 = arith.constant 0 : i32
    %c0_i32_0 = arith.constant 0 : i32
    %c0_i32_1 = arith.constant 0 : i32
    return %c0_i32, %c0_i32_0 : i32, i32
  }
  func.func @transform_4(%arg0: i32) -> (i32, i32) {
    %c0_i32 = arith.constant 0 : i32
    %c0_i32_0 = arith.constant 0 : i32
    return %arg0, %c0_i32 : i32, i32
  }
  func.func @transform_5(%arg0: i32) -> (i32, i32) {
    %c0_i32 = arith.constant 0 : i32
    %c0_i32_0 = arith.constant 0 : i32
    %c0_i32_1 = arith.constant 0 : i32
    return %c0_i32, %c0_i32_0 : i32, i32
  }
  func.func @transform_6(%arg0: i32) -> (i32, i32) {
    %c0_i32 = arith.constant 0 : i32
    %c0_i32_0 = arith.constant 0 : i32
    return %arg0, %c0_i32 : i32, i32
  }
  func.func @transform_7(%arg0: i32) -> (i32, i32) {
    %c0_i32 = arith.constant 0 : i32
    %c0_i32_0 = arith.constant 0 : i32
    %c0_i32_1 = arith.constant 0 : i32
    return %c0_i32, %c0_i32_0 : i32, i32
  }
  func.func @transform_8(%arg0: i32) -> (i32, i32) {
    %c0_i32 = arith.constant 0 : i32
    %c0_i32_0 = arith.constant 0 : i32
    %c0_i32_1 = arith.constant 0 : i32
    return %c0_i32, %c0_i32_0 : i32, i32
  }
  func.func @transform_9(%arg0: i32) -> (i32, i32) {
    %c0_i32 = arith.constant 0 : i32
    %c0_i32_0 = arith.constant 0 : i32
    return %arg0, %c0_i32 : i32, i32
  }
}

module attributes {stable_mosaic.version = 11 : i64} {
  func.func @_gat_kernel(%arg0: i32, %arg1: memref<8x16xbf16, #tpu.memory_space<vmem>>, %arg2: memref<16x4xbf16, #tpu.memory_space<vmem>>, %arg3: memref<1x4xf32, #tpu.memory_space<vmem>>, %arg4: memref<1x4xf32, #tpu.memory_space<vmem>>, %arg5: memref<8x8xbf16, #tpu.memory_space<vmem>>, %arg6: memref<1x4xf32, #tpu.memory_space<vmem>>, %arg7: memref<8x4xf32, #tpu.memory_space<vmem>>, %arg8: memref<8x4xf32, #tpu.memory_space<vmem>>, %arg9: memref<1x8xf32, #tpu.memory_space<vmem>>) attributes {dimension_semantics = [#tpu.dimension_semantics<arbitrary>], iteration_bounds = array<i64: 1>, scalar_prefetch = 0 : i64, scratch_operands = 2 : i64, tpu.core_type = #tpu.core_type<tc>, window_params = [{pipeline_mode = #tpu.pipeline_mode<synchronous>, transform_indices = @transform_0, window_bounds = array<i64: 8, 16>}, {pipeline_mode = #tpu.pipeline_mode<synchronous>, transform_indices = @transform_1, window_bounds = array<i64: 16, 4>}, {pipeline_mode = #tpu.pipeline_mode<synchronous>, transform_indices = @transform_2, window_bounds = array<i64: 1, 4>}, {pipeline_mode = #tpu.pipeline_mode<synchronous>, transform_indices = @transform_3, window_bounds = array<i64: 1, 4>}, {transform_indices = @transform_4, window_bounds = array<i64: 8, 8>}, {pipeline_mode = #tpu.pipeline_mode<synchronous>, transform_indices = @transform_5, window_bounds = array<i64: 1, 4>}, {transform_indices = @transform_6, window_bounds = array<i64: 8, 4>}]} {
    %c8_i32 = arith.constant 8 : i32
    %0 = arith.muli %arg0, %c8_i32 : i32
    %1 = tpu.assume_multiple %0, 8 : i32
    %c0_i32 = arith.constant 0 : i32
    %2 = arith.cmpi eq, %arg0, %c0_i32 : i32
    %3 = arith.extui %2 : i1 to i32
    %c0_i32_0 = arith.constant 0 : i32
    %4 = arith.cmpi ne, %3, %c0_i32_0 : i32
    scf.if %4 {
      %c0_20 = arith.constant 0 : index
      %c0_21 = arith.constant 0 : index
      %41 = vector.load %arg1[%c0_20, %c0_21] : memref<8x16xbf16, #tpu.memory_space<vmem>>, vector<8x16xbf16>
      %c0_22 = arith.constant 0 : index
      %c0_23 = arith.constant 0 : index
      %42 = vector.load %arg2[%c0_22, %c0_23] : memref<16x4xbf16, #tpu.memory_space<vmem>>, vector<16x4xbf16>
      %cst_24 = arith.constant dense<0.000000e+00> : vector<8x4xf32>
      %43 = tpu.matmul %41, %42, %cst_24 {dimension_numbers = #tpu.dot_dimension_numbers<[1], [0], [0], [1], [0, 0, 1, 1], [], []>} : vector<8x16xbf16>, vector<16x4xbf16>, vector<8x4xf32> -> vector<8x4xf32>
      %c0_25 = arith.constant 0 : index
      %c0_26 = arith.constant 0 : index
      %44 = vector.load %arg8[%c0_25, %c0_26] : memref<8x4xf32, #tpu.memory_space<vmem>>, vector<8x4xf32>
      tpu.vector_store %arg8[%c0_25, %c0_26], %43 {strides = array<i32>} : memref<8x4xf32, #tpu.memory_space<vmem>>, vector<8x4xf32>,
      %c0_27 = arith.constant 0 : index
      %c0_28 = arith.constant 0 : index
      %45 = vector.load %arg3[%c0_27, %c0_28] : memref<1x4xf32, #tpu.memory_space<vmem>>, vector<1x4xf32>
      %cst_29 = arith.constant dense<0.000000e+00> : vector<1x8xf32>
      %46 = tpu.matmul %45, %43, %cst_29 {dimension_numbers = #tpu.dot_dimension_numbers<[1], [1], [0], [0], [0, 0, 1, 0], [], []>} : vector<1x4xf32>, vector<8x4xf32>, vector<1x8xf32> -> vector<1x8xf32>
      %c0_30 = arith.constant 0 : index
      %c0_31 = arith.constant 0 : index
      %47 = vector.load %arg9[%c0_30, %c0_31] : memref<1x8xf32, #tpu.memory_space<vmem>>, vector<1x8xf32>
      tpu.vector_store %arg9[%c0_30, %c0_31], %46 {strides = array<i32>} : memref<1x8xf32, #tpu.memory_space<vmem>>, vector<1x8xf32>,
    } else {
    }
    %c0 = arith.constant 0 : index
    %c0_1 = arith.constant 0 : index
    %5 = vector.load %arg8[%c0, %c0_1] : memref<8x4xf32, #tpu.memory_space<vmem>>, vector<8x4xf32>
    %6 = arith.index_cast %1 : i32 to index
    %c0_2 = arith.constant 0 : index
    %7 = vector.load %arg8[%6, %c0_2] : memref<8x4xf32, #tpu.memory_space<vmem>>, vector<8x4xf32>
    %c0_3 = arith.constant 0 : index
    %c0_4 = arith.constant 0 : index
    %8 = vector.load %arg4[%c0_3, %c0_4] : memref<1x4xf32, #tpu.memory_space<vmem>>, vector<1x4xf32>
    %cst = arith.constant dense<0.000000e+00> : vector<8x1xf32>
    %9 = tpu.matmul %7, %8, %cst {dimension_numbers = #tpu.dot_dimension_numbers<[1], [1], [0], [0], [0, 0, 1, 0], [], []>} : vector<8x4xf32>, vector<1x4xf32>, vector<8x1xf32> -> vector<8x1xf32>
    %c0_5 = arith.constant 0 : index
    %c0_6 = arith.constant 0 : index
    %10 = vector.load %arg9[%c0_5, %c0_6] : memref<1x8xf32, #tpu.memory_space<vmem>>, vector<1x8xf32>
    %c0_7 = arith.constant 0 : index
    %c0_8 = arith.constant 0 : index
    %11 = vector.load %arg5[%c0_7, %c0_8] : memref<8x8xbf16, #tpu.memory_space<vmem>>, vector<8x8xbf16>
    %cst_9 = arith.constant 0.000000e+00 : bf16
    %12 = vector.broadcast %cst_9 : bf16 to vector<8x8xbf16>
    %13 = arith.cmpf ogt, %11, %12 : vector<8x8xbf16>
    %14 = vector.broadcast %9 : vector<8x1xf32> to vector<8x8xf32>
    %15 = vector.broadcast %10 : vector<1x8xf32> to vector<8x8xf32>
    %16 = arith.addf %14, %15 : vector<8x8xf32>
    %cst_10 = arith.constant 0.000000e+00 : f32
    %17 = vector.broadcast %cst_10 : f32 to vector<8x8xf32>
    %18 = arith.cmpf ogt, %16, %17 : vector<8x8xf32>
    %cst_11 = arith.constant 2.000000e-01 : f32
    %19 = vector.broadcast %cst_11 : f32 to vector<8x8xf32>
    %20 = arith.mulf %19, %16 : vector<8x8xf32>
    %21 = arith.select %18, %16, %20 : vector<8x8xi1>, vector<8x8xf32>
    %cst_12 = arith.constant -1.000000e+30 : f32
    %22 = vector.broadcast %cst_12 : f32 to vector<8x8xf32>
    %23 = arith.select %13, %21, %22 : vector<8x8xi1>, vector<8x8xf32>
    %cst_13 = arith.constant dense<0xFF800000> : vector<8xf32>
    %24 = vector.multi_reduction <maximumf>, %23, %cst_13 [1] : vector<8x8xf32> to vector<8xf32>
    %25 = vector.shape_cast %24 : vector<8xf32> to vector<8x1xf32>
    %26 = vector.broadcast %25 : vector<8x1xf32> to vector<8x8xf32>
    %27 = arith.subf %23, %26 : vector<8x8xf32>
    %28 = math.exp %27 : vector<8x8xf32>
    %cst_14 = arith.constant dense<0.000000e+00> : vector<8xf32>
    %29 = vector.multi_reduction <add>, %28, %cst_14 [1] : vector<8x8xf32> to vector<8xf32>
    %30 = vector.shape_cast %29 : vector<8xf32> to vector<8x1xf32>
    %31 = tpu.reciprocal %30 {approx = true} : vector<8x1xf32> -> vector<8x1xf32>
    %32 = vector.broadcast %31 : vector<8x1xf32> to vector<8x8xf32>
    %33 = arith.mulf %28, %32 : vector<8x8xf32>
    %34 = arith.truncf %33 : vector<8x8xf32> to vector<8x8xbf16>
    %35 = arith.truncf %5 : vector<8x4xf32> to vector<8x4xbf16>
    %cst_15 = arith.constant dense<0.000000e+00> : vector<8x4xf32>
    %36 = tpu.matmul %34, %35, %cst_15 {dimension_numbers = #tpu.dot_dimension_numbers<[1], [0], [0], [1], [0, 0, 1, 1], [], []>} : vector<8x8xbf16>, vector<8x4xbf16>, vector<8x4xf32> -> vector<8x4xf32>
    %c0_16 = arith.constant 0 : index
    %c0_17 = arith.constant 0 : index
    %37 = vector.load %arg6[%c0_16, %c0_17] : memref<1x4xf32, #tpu.memory_space<vmem>>, vector<1x4xf32>
    %38 = vector.broadcast %37 : vector<1x4xf32> to vector<8x4xf32>
    %39 = arith.addf %36, %38 : vector<8x4xf32>
    %c0_18 = arith.constant 0 : index
    %c0_19 = arith.constant 0 : index
    %40 = vector.load %arg7[%c0_18, %c0_19] : memref<8x4xf32, #tpu.memory_space<vmem>>, vector<8x4xf32>
    tpu.vector_store %arg7[%c0_18, %c0_19], %39 {strides = array<i32>} : memref<8x4xf32, #tpu.memory_space<vmem>>, vector<8x4xf32>,
    return
  }
  func.func @transform_0(%arg0: i32) -> (i32, i32) {
    %c0_i32 = arith.constant 0 : i32
    %c0_i32_0 = arith.constant 0 : i32
    %c0_i32_1 = arith.constant 0 : i32
    return %c0_i32, %c0_i32_0 : i32, i32
  }
  func.func @transform_1(%arg0: i32) -> (i32, i32) {
    %c0_i32 = arith.constant 0 : i32
    %c0_i32_0 = arith.constant 0 : i32
    %c0_i32_1 = arith.constant 0 : i32
    return %c0_i32, %c0_i32_0 : i32, i32
  }
  func.func @transform_2(%arg0: i32) -> (i32, i32) {
    %c0_i32 = arith.constant 0 : i32
    %c0_i32_0 = arith.constant 0 : i32
    %c0_i32_1 = arith.constant 0 : i32
    return %c0_i32, %c0_i32_0 : i32, i32
  }
  func.func @transform_3(%arg0: i32) -> (i32, i32) {
    %c0_i32 = arith.constant 0 : i32
    %c0_i32_0 = arith.constant 0 : i32
    %c0_i32_1 = arith.constant 0 : i32
    return %c0_i32, %c0_i32_0 : i32, i32
  }
  func.func @transform_4(%arg0: i32) -> (i32, i32) {
    %c0_i32 = arith.constant 0 : i32
    %c0_i32_0 = arith.constant 0 : i32
    return %arg0, %c0_i32 : i32, i32
  }
  func.func @transform_5(%arg0: i32) -> (i32, i32) {
    %c0_i32 = arith.constant 0 : i32
    %c0_i32_0 = arith.constant 0 : i32
    %c0_i32_1 = arith.constant 0 : i32
    return %c0_i32, %c0_i32_0 : i32, i32
  }
  func.func @transform_6(%arg0: i32) -> (i32, i32) {
    %c0_i32 = arith.constant 0 : i32
    %c0_i32_0 = arith.constant 0 : i32
    return %arg0, %c0_i32 : i32, i32
  }
}

module attributes {stable_mosaic.version = 11 : i64} {
  func.func @_gat_kernel(%arg0: i32, %arg1: memref<16x16xbf16, #tpu.memory_space<vmem>>, %arg2: memref<16x4xbf16, #tpu.memory_space<vmem>>, %arg3: memref<1x4xf32, #tpu.memory_space<vmem>>, %arg4: memref<1x4xf32, #tpu.memory_space<vmem>>, %arg5: memref<8x16xbf16, #tpu.memory_space<vmem>>, %arg6: memref<1x4xf32, #tpu.memory_space<vmem>>, %arg7: memref<8x4xf32, #tpu.memory_space<vmem>>, %arg8: memref<1x4xf32, #tpu.memory_space<vmem>>, %arg9: memref<1x4xf32, #tpu.memory_space<vmem>>, %arg10: memref<8x4xf32, #tpu.memory_space<vmem>>, %arg11: memref<16x4xf32, #tpu.memory_space<vmem>>, %arg12: memref<1x16xf32, #tpu.memory_space<vmem>>) attributes {dimension_semantics = [#tpu.dimension_semantics<arbitrary>], iteration_bounds = array<i64: 2>, scalar_prefetch = 0 : i64, scratch_operands = 2 : i64, tpu.core_type = #tpu.core_type<tc>, window_params = [{pipeline_mode = #tpu.pipeline_mode<synchronous>, transform_indices = @transform_0, window_bounds = array<i64: 16, 16>}, {pipeline_mode = #tpu.pipeline_mode<synchronous>, transform_indices = @transform_1, window_bounds = array<i64: 16, 4>}, {pipeline_mode = #tpu.pipeline_mode<synchronous>, transform_indices = @transform_2, window_bounds = array<i64: 1, 4>}, {pipeline_mode = #tpu.pipeline_mode<synchronous>, transform_indices = @transform_3, window_bounds = array<i64: 1, 4>}, {transform_indices = @transform_4, window_bounds = array<i64: 8, 16>}, {pipeline_mode = #tpu.pipeline_mode<synchronous>, transform_indices = @transform_5, window_bounds = array<i64: 1, 4>}, {transform_indices = @transform_6, window_bounds = array<i64: 8, 4>}, {pipeline_mode = #tpu.pipeline_mode<synchronous>, transform_indices = @transform_7, window_bounds = array<i64: 1, 4>}, {pipeline_mode = #tpu.pipeline_mode<synchronous>, transform_indices = @transform_8, window_bounds = array<i64: 1, 4>}, {transform_indices = @transform_9, window_bounds = array<i64: 8, 4>}]} {
    %c8_i32 = arith.constant 8 : i32
    %0 = arith.muli %arg0, %c8_i32 : i32
    %1 = tpu.assume_multiple %0, 8 : i32
    %c0_i32 = arith.constant 0 : i32
    %2 = arith.cmpi eq, %arg0, %c0_i32 : i32
    %3 = arith.extui %2 : i1 to i32
    %c0_i32_0 = arith.constant 0 : i32
    %4 = arith.cmpi ne, %3, %c0_i32_0 : i32
    scf.if %4 {
      %c0_31 = arith.constant 0 : index
      %c0_32 = arith.constant 0 : index
      %65 = vector.load %arg1[%c0_31, %c0_32] : memref<16x16xbf16, #tpu.memory_space<vmem>>, vector<16x16xbf16>
      %c0_33 = arith.constant 0 : index
      %c0_34 = arith.constant 0 : index
      %66 = vector.load %arg2[%c0_33, %c0_34] : memref<16x4xbf16, #tpu.memory_space<vmem>>, vector<16x4xbf16>
      %cst_35 = arith.constant dense<0.000000e+00> : vector<16x4xf32>
      %67 = tpu.matmul %65, %66, %cst_35 {dimension_numbers = #tpu.dot_dimension_numbers<[1], [0], [0], [1], [0, 0, 1, 1], [], []>} : vector<16x16xbf16>, vector<16x4xbf16>, vector<16x4xf32> -> vector<16x4xf32>
      %c0_36 = arith.constant 0 : index
      %c0_37 = arith.constant 0 : index
      %68 = vector.load %arg11[%c0_36, %c0_37] : memref<16x4xf32, #tpu.memory_space<vmem>>, vector<16x4xf32>
      tpu.vector_store %arg11[%c0_36, %c0_37], %67 {strides = array<i32>} : memref<16x4xf32, #tpu.memory_space<vmem>>, vector<16x4xf32>,
      %c0_38 = arith.constant 0 : index
      %c0_39 = arith.constant 0 : index
      %69 = vector.load %arg3[%c0_38, %c0_39] : memref<1x4xf32, #tpu.memory_space<vmem>>, vector<1x4xf32>
      %cst_40 = arith.constant dense<0.000000e+00> : vector<1x16xf32>
      %70 = tpu.matmul %69, %67, %cst_40 {dimension_numbers = #tpu.dot_dimension_numbers<[1], [1], [0], [0], [0, 0, 1, 0], [], []>} : vector<1x4xf32>, vector<16x4xf32>, vector<1x16xf32> -> vector<1x16xf32>
      %c0_41 = arith.constant 0 : index
      %c0_42 = arith.constant 0 : index
      %71 = vector.load %arg12[%c0_41, %c0_42] : memref<1x16xf32, #tpu.memory_space<vmem>>, vector<1x16xf32>
      tpu.vector_store %arg12[%c0_41, %c0_42], %70 {strides = array<i32>} : memref<1x16xf32, #tpu.memory_space<vmem>>, vector<1x16xf32>,
    } else {
    }
    %c0 = arith.constant 0 : index
    %c0_1 = arith.constant 0 : index
    %5 = vector.load %arg11[%c0, %c0_1] : memref<16x4xf32, #tpu.memory_space<vmem>>, vector<16x4xf32>
    %6 = arith.index_cast %1 : i32 to index
    %c0_2 = arith.constant 0 : index
    %7 = vector.load %arg11[%6, %c0_2] : memref<16x4xf32, #tpu.memory_space<vmem>>, vector<8x4xf32>
    %c0_3 = arith.constant 0 : index
    %c0_4 = arith.constant 0 : index
    %8 = vector.load %arg4[%c0_3, %c0_4] : memref<1x4xf32, #tpu.memory_space<vmem>>, vector<1x4xf32>
    %cst = arith.constant dense<0.000000e+00> : vector<8x1xf32>
    %9 = tpu.matmul %7, %8, %cst {dimension_numbers = #tpu.dot_dimension_numbers<[1], [1], [0], [0], [0, 0, 1, 0], [], []>} : vector<8x4xf32>, vector<1x4xf32>, vector<8x1xf32> -> vector<8x1xf32>
    %c0_5 = arith.constant 0 : index
    %c0_6 = arith.constant 0 : index
    %10 = vector.load %arg12[%c0_5, %c0_6] : memref<1x16xf32, #tpu.memory_space<vmem>>, vector<1x16xf32>
    %c0_7 = arith.constant 0 : index
    %c0_8 = arith.constant 0 : index
    %11 = vector.load %arg5[%c0_7, %c0_8] : memref<8x16xbf16, #tpu.memory_space<vmem>>, vector<8x16xbf16>
    %cst_9 = arith.constant 0.000000e+00 : bf16
    %12 = vector.broadcast %cst_9 : bf16 to vector<8x16xbf16>
    %13 = arith.cmpf ogt, %11, %12 : vector<8x16xbf16>
    %14 = vector.broadcast %9 : vector<8x1xf32> to vector<8x16xf32>
    %15 = vector.broadcast %10 : vector<1x16xf32> to vector<8x16xf32>
    %16 = arith.addf %14, %15 : vector<8x16xf32>
    %cst_10 = arith.constant 0.000000e+00 : f32
    %17 = vector.broadcast %cst_10 : f32 to vector<8x16xf32>
    %18 = arith.cmpf ogt, %16, %17 : vector<8x16xf32>
    %cst_11 = arith.constant 2.000000e-01 : f32
    %19 = vector.broadcast %cst_11 : f32 to vector<8x16xf32>
    %20 = arith.mulf %19, %16 : vector<8x16xf32>
    %21 = arith.select %18, %16, %20 : vector<8x16xi1>, vector<8x16xf32>
    %cst_12 = arith.constant -1.000000e+30 : f32
    %22 = vector.broadcast %cst_12 : f32 to vector<8x16xf32>
    %23 = arith.select %13, %21, %22 : vector<8x16xi1>, vector<8x16xf32>
    %cst_13 = arith.constant dense<0xFF800000> : vector<8xf32>
    %24 = vector.multi_reduction <maximumf>, %23, %cst_13 [1] : vector<8x16xf32> to vector<8xf32>
    %25 = vector.shape_cast %24 : vector<8xf32> to vector<8x1xf32>
    %26 = vector.broadcast %25 : vector<8x1xf32> to vector<8x16xf32>
    %27 = arith.subf %23, %26 : vector<8x16xf32>
    %28 = math.exp %27 : vector<8x16xf32>
    %cst_14 = arith.constant dense<0.000000e+00> : vector<8xf32>
    %29 = vector.multi_reduction <add>, %28, %cst_14 [1] : vector<8x16xf32> to vector<8xf32>
    %30 = vector.shape_cast %29 : vector<8xf32> to vector<8x1xf32>
    %31 = tpu.reciprocal %30 {approx = true} : vector<8x1xf32> -> vector<8x1xf32>
    %32 = vector.broadcast %31 : vector<8x1xf32> to vector<8x16xf32>
    %33 = arith.mulf %28, %32 : vector<8x16xf32>
    %34 = arith.truncf %33 : vector<8x16xf32> to vector<8x16xbf16>
    %35 = arith.truncf %5 : vector<16x4xf32> to vector<16x4xbf16>
    %cst_15 = arith.constant dense<0.000000e+00> : vector<8x4xf32>
    %36 = tpu.matmul %34, %35, %cst_15 {dimension_numbers = #tpu.dot_dimension_numbers<[1], [0], [0], [1], [0, 0, 1, 1], [], []>} : vector<8x16xbf16>, vector<16x4xbf16>, vector<8x4xf32> -> vector<8x4xf32>
    %c0_16 = arith.constant 0 : index
    %c0_17 = arith.constant 0 : index
    %37 = vector.load %arg6[%c0_16, %c0_17] : memref<1x4xf32, #tpu.memory_space<vmem>>, vector<1x4xf32>
    %38 = vector.broadcast %37 : vector<1x4xf32> to vector<8x4xf32>
    %39 = arith.addf %36, %38 : vector<8x4xf32>
    %c0_18 = arith.constant 0 : index
    %c0_19 = arith.constant 0 : index
    %40 = vector.load %arg7[%c0_18, %c0_19] : memref<8x4xf32, #tpu.memory_space<vmem>>, vector<8x4xf32>
    %41 = arith.addf %39, %40 : vector<8x4xf32>
    %cst_20 = arith.constant dense<0.000000e+00> : vector<8xf32>
    %42 = vector.multi_reduction <add>, %41, %cst_20 [1] : vector<8x4xf32> to vector<8xf32>
    %43 = vector.shape_cast %42 : vector<8xf32> to vector<8x1xf32>
    %cst_21 = arith.constant 2.500000e-01 : f32
    %44 = vector.broadcast %cst_21 : f32 to vector<8x1xf32>
    %45 = arith.mulf %43, %44 : vector<8x1xf32>
    %46 = vector.broadcast %45 : vector<8x1xf32> to vector<8x4xf32>
    %47 = arith.subf %41, %46 : vector<8x4xf32>
    %48 = arith.mulf %47, %47 : vector<8x4xf32>
    %cst_22 = arith.constant dense<0.000000e+00> : vector<8xf32>
    %49 = vector.multi_reduction <add>, %48, %cst_22 [1] : vector<8x4xf32> to vector<8xf32>
    %50 = vector.shape_cast %49 : vector<8xf32> to vector<8x1xf32>
    %cst_23 = arith.constant 2.500000e-01 : f32
    %51 = vector.broadcast %cst_23 : f32 to vector<8x1xf32>
    %52 = arith.mulf %50, %51 : vector<8x1xf32>
    %cst_24 = arith.constant 9.99999974E-6 : f32
    %53 = vector.broadcast %cst_24 : f32 to vector<8x1xf32>
    %54 = arith.addf %52, %53 : vector<8x1xf32>
    %55 = math.rsqrt %54 : vector<8x1xf32>
    %56 = vector.broadcast %55 : vector<8x1xf32> to vector<8x4xf32>
    %57 = arith.mulf %47, %56 : vector<8x4xf32>
    %c0_25 = arith.constant 0 : index
    %c0_26 = arith.constant 0 : index
    %58 = vector.load %arg8[%c0_25, %c0_26] : memref<1x4xf32, #tpu.memory_space<vmem>>, vector<1x4xf32>
    %59 = vector.broadcast %58 : vector<1x4xf32> to vector<8x4xf32>
    %60 = arith.mulf %57, %59 : vector<8x4xf32>
    %c0_27 = arith.constant 0 : index
    %c0_28 = arith.constant 0 : index
    %61 = vector.load %arg9[%c0_27, %c0_28] : memref<1x4xf32, #tpu.memory_space<vmem>>, vector<1x4xf32>
    %62 = vector.broadcast %61 : vector<1x4xf32> to vector<8x4xf32>
    %63 = arith.addf %60, %62 : vector<8x4xf32>
    %c0_29 = arith.constant 0 : index
    %c0_30 = arith.constant 0 : index
    %64 = vector.load %arg10[%c0_29, %c0_30] : memref<8x4xf32, #tpu.memory_space<vmem>>, vector<8x4xf32>
    tpu.vector_store %arg10[%c0_29, %c0_30], %63 {strides = array<i32>} : memref<8x4xf32, #tpu.memory_space<vmem>>, vector<8x4xf32>,
    return
  }
  func.func @transform_0(%arg0: i32) -> (i32, i32) {
    %c0_i32 = arith.constant 0 : i32
    %c0_i32_0 = arith.constant 0 : i32
    %c0_i32_1 = arith.constant 0 : i32
    return %c0_i32, %c0_i32_0 : i32, i32
  }
  func.func @transform_1(%arg0: i32) -> (i32, i32) {
    %c0_i32 = arith.constant 0 : i32
    %c0_i32_0 = arith.constant 0 : i32
    %c0_i32_1 = arith.constant 0 : i32
    return %c0_i32, %c0_i32_0 : i32, i32
  }
  func.func @transform_2(%arg0: i32) -> (i32, i32) {
    %c0_i32 = arith.constant 0 : i32
    %c0_i32_0 = arith.constant 0 : i32
    %c0_i32_1 = arith.constant 0 : i32
    return %c0_i32, %c0_i32_0 : i32, i32
  }
  func.func @transform_3(%arg0: i32) -> (i32, i32) {
    %c0_i32 = arith.constant 0 : i32
    %c0_i32_0 = arith.constant 0 : i32
    %c0_i32_1 = arith.constant 0 : i32
    return %c0_i32, %c0_i32_0 : i32, i32
  }
  func.func @transform_4(%arg0: i32) -> (i32, i32) {
    %c0_i32 = arith.constant 0 : i32
    %c0_i32_0 = arith.constant 0 : i32
    return %arg0, %c0_i32 : i32, i32
  }
  func.func @transform_5(%arg0: i32) -> (i32, i32) {
    %c0_i32 = arith.constant 0 : i32
    %c0_i32_0 = arith.constant 0 : i32
    %c0_i32_1 = arith.constant 0 : i32
    return %c0_i32, %c0_i32_0 : i32, i32
  }
  func.func @transform_6(%arg0: i32) -> (i32, i32) {
    %c0_i32 = arith.constant 0 : i32
    %c0_i32_0 = arith.constant 0 : i32
    return %arg0, %c0_i32 : i32, i32
  }
  func.func @transform_7(%arg0: i32) -> (i32, i32) {
    %c0_i32 = arith.constant 0 : i32
    %c0_i32_0 = arith.constant 0 : i32
    %c0_i32_1 = arith.constant 0 : i32
    return %c0_i32, %c0_i32_0 : i32, i32
  }
  func.func @transform_8(%arg0: i32) -> (i32, i32) {
    %c0_i32 = arith.constant 0 : i32
    %c0_i32_0 = arith.constant 0 : i32
    %c0_i32_1 = arith.constant 0 : i32
    return %c0_i32, %c0_i32_0 : i32, i32
  }
  func.func @transform_9(%arg0: i32) -> (i32, i32) {
    %c0_i32 = arith.constant 0 : i32
    %c0_i32_0 = arith.constant 0 : i32
    return %arg0, %c0_i32 : i32, i32
  }
}

</mosaic_0001>

<bundles_post_ra>
// kernel: gat_forward.7
= control target key start
LH: loop header
LB: loop body
LE: loop exit
PB: predicated region body
PF: predicated region fallthrough
CT: control target
= control target key end

     0   :  { %s1961_s0 = inlined_call_operand.hbm [shape: bf16[16,16], index: 0, kind: input, shape index: {}]   ;;  %s1962_s1 = inlined_call_operand.hbm [shape: bf16[16,4], index: 1, kind: input, shape index: {}]   ;;  %s1963_s2 = inlined_call_operand.hbm [shape: f32[1,4], index: 2, kind: input, shape index: {}]   ;;  %s1964_s3 = inlined_call_operand.hbm [shape: f32[1,4], index: 3, kind: input, shape index: {}]   ;;  %s1965_s4 = inlined_call_operand.hbm [shape: bf16[16,16], index: 4, kind: input, shape index: {}]   ;;  %s1966_s5 = inlined_call_operand.hbm [shape: f32[1,4], index: 5, kind: input, shape index: {}, may-alias: {5,8}]   ;;  %s1967_s6 = inlined_call_operand.hbm [shape: f32[16,4], index: 6, kind: input, shape index: {}]   ;;  %s1968_s7 = inlined_call_operand.hbm [shape: f32[1,4], index: 7, kind: input, shape index: {}]   ;;  %s1969_s8 = inlined_call_operand.hbm [shape: f32[1,4], index: 8, kind: input, shape index: {}, may-alias: {5,8}]   ;;  %s1970_s9 = inlined_call_operand.hbm [shape: f32[16,4], index: 9, kind: output, shape index: {}]  }
   0x1   :  { %1982 = sst [smem:[#allocation27_spill]] %s1961_s0 }
   0x2   :  { %1983 = sst [smem:[#allocation28_spill]] %s1962_s1 }
   0x3   :  { %1984 = sst [smem:[#allocation29_spill]] %s1963_s2 }
   0x4   :  { %1985 = sst [smem:[#allocation30_spill]] %s1964_s3 }
   0x5   :  { %1986 = sst [smem:[#allocation31_spill]] %s1965_s4 }
   0x6   :  { %1987 = sst [smem:[#allocation32_spill]] %s1966_s5 }
   0x7   :  { %1988 = sst [smem:[#allocation33_spill]] %s1970_s9 }
   0x8   :  { %14 = vsyncpa [#allocation5], 0 }
   0x9   :  { %15 = vsyncpa [#allocation8], 0 }
   0xa   :  { %16 = vsyncpa [#allocation11], 0 }
   0xb   :  { %17 = vsyncpa [#allocation6], 0 }
   0xc   :  { %19 = vsyncpa [#allocation6 + $0x1], 0  ;;  %s1554_s30 = smov 0   ;;  %s1556_s10 = smov 0  }
   0xd   :  { %s1558_s11 = smov 0   ;;  %s1560_s12 = smov 0  }
   0xe LB: > { %s1575_s13 = sadd.s32 4294967295, %s1484_s12   ;;  %p924_p0 = scmp.ge.s32.totalorder %s1484_s12, 1  ;;  %s1484_s12 = sphi %s1560_s12, %s2030_s12   ;;  %s1480_s11 = sphi %s1558_s11, %s2029_s11   ;;  %s1476_s10 = sphi %s1556_s10, %s2028_s10   ;;  %s1472_s30 = sphi %s1554_s30, %s2027_s30  }
   0xf   : > { %p1972_p1 = scmp.eq.s32.totalorder %s1575_s13, 0  ;;  %p255_p2 = scmp.lt.s32.totalorder %s1484_s12, 3 }
  0x10   : > { %s1486_s15 = smov [#allocation7]   ;;  %s1487_s17 = smov [#allocation4]  }
  0x11   : > { %p1581_p4 = pnand %p924_p0, %p255_p2  ;;  %s280_s16 = sshll.u32 %s1486_s15, 4  ;;  %s1585_s16 = int_to_ptr.vmem [resolvable:$true] %s280_s16 }
  0x12   : > { %s267_s18 = sshll.u32 %s1487_s17, 4  ;;  %s1488_s20 = smov [#allocation9]   ;;  %s1596_s18 = int_to_ptr.vmem [resolvable:$true] %s267_s18 }
  0x13   : > { %s1989_s14 = scalar_select %p1581_p4, 1, 0 }
  0x14   : > { %p1030_p6 = pneg %p1581_p4  ;;  %s294_s21 = sshll.u32 %s1488_s20, 4  ;;  %s1598_s21 = int_to_ptr.vmem [resolvable:$true] %s294_s21 }
  0x15   : > { %s1991_s1 = sld [smem:[#allocation28_spill]] }
  0x16   : > { %p1592_p7 = pnand %p1030_p6, %p1972_p1 }
  0x18   : > { %s1990_s19 = scalar_select %p1592_p7, 1, 0 }
  0x19   : > { %p1608_p9 = pneg %p1592_p7 }
  0x1b   : > { %s1134_s24 = scalar_lea.hbm %s1991_s1, 128 }
  0x1c   : > { %p1135_p8 = scmp.ne.s32.totalorder %s1991_s1, %s1134_s24  ;;  %p1141_p12 = scmp.lt.u32.totalorder %s1134_s24, %s1991_s1 }
  0x1e   : > { %p1137_p10 = pnand %p1608_p9, %p1135_p8 }
  0x20   : > { %p1138_p11 = pneg %p1137_p10 }
  0x22   : > { %p1143_p13 = pnand %p1141_p12, %p1138_p11 }
  0x24   : > { %1146 = shalt.err (!%p1143_p13)
}
  0x25   : > { %s1147_s15 = scalar_lea.vmem %s1585_s16, 128  ;;  %p1155_p5 = scmp.lt.s32.totalorder %s1585_s16, %s1585_s16 }
  0x26   : > { %p1148_p0 = scmp.ne.s32.totalorder %s1585_s16, %s1147_s15  ;;  %p1156_p3 = scmp.lt.s32.totalorder %s1147_s15, %s1147_s15 }
  0x28   : > { %p1150_p2 = pnand %p1148_p0, %p1608_p9  ;;  %p1157_p8 = por %p1156_p3, %p1155_p5 }
  0x2a   : > { %p1151_p6 = pneg %p1150_p2 }
  0x2c   : > { %p1158_p10 = pnand %p1157_p8, %p1151_p6 }
  0x2e   : > { %1161 = shalt.err (!%p1158_p10)
}
  0x2f   : > { %s1489_s17 = smov 64   ;;  %s1490_s20 = smov 4  }
  0x30   : > { %1036 = dma.hbm_to_vmem [thread:$0]  (!%p1592_p7), %s1991_s1, 128, %s1585_s16, [#allocation8], %s1489_s17, %s1489_s17, %s1490_s20  }
  0x31   : > { %s1993_s0 = sld [smem:[#allocation27_spill]] }
  0x37   : > { %s1162_s26 = scalar_lea.hbm %s1993_s0, 128 }
  0x38   : > { %p1163_p3 = scmp.ne.s32.totalorder %s1993_s0, %s1162_s26  ;;  %p1169_p12 = scmp.lt.u32.totalorder %s1162_s26, %s1993_s0 }
  0x3a   : > { %p1165_p5 = pnand %p1163_p3, %p1608_p9 }
  0x3c   : > { %p1166_p11 = pneg %p1165_p5 }
  0x3e   : > { %p1171_p13 = pnand %p1169_p12, %p1166_p11 }
  0x40   : > { %1174 = shalt.err (!%p1171_p13)
}
  0x41   : > { %s1175_s16 = scalar_lea.vmem %s1596_s18, 128  ;;  %p1183_p8 = scmp.lt.s32.totalorder %s1596_s18, %s1596_s18 }
  0x42   : > { %p1176_p0 = scmp.ne.s32.totalorder %s1596_s18, %s1175_s16  ;;  %p1184_p10 = scmp.lt.s32.totalorder %s1175_s16, %s1175_s16 }
  0x44   : > { %p1178_p2 = pnand %p1176_p0, %p1608_p9  ;;  %p1185_p3 = por %p1184_p10, %p1183_p8 }
  0x46   : > { %p1179_p6 = pneg %p1178_p2 }
  0x48   : > { %p1186_p5 = pnand %p1185_p3, %p1179_p6 }
  0x4a   : > { %1189 = shalt.err (!%p1186_p5)
}
  0x4b   : > { %1033 = dma.hbm_to_vmem [thread:$0]  (!%p1592_p7), %s1993_s0, 128, %s1596_s18, [#allocation5], %s1489_s17, %s1489_s17, %s1490_s20  }
  0x4c   : > { %s1994_s2 = sld [smem:[#allocation29_spill]] }
  0x52   : > { %s1190_s25 = scalar_lea.hbm %s1994_s2, 16 }
  0x53   : > { %p1191_p11 = scmp.ne.s32.totalorder %s1994_s2, %s1190_s25  ;;  %p1197_p0 = scmp.lt.u32.totalorder %s1190_s25, %s1994_s2 }
  0x55   : > { %p1193_p12 = pnand %p1191_p11, %p1608_p9 }
  0x57   : > { %p1194_p13 = pneg %p1193_p12 }
  0x59   : > { %p1199_p2 = pnand %p1197_p0, %p1194_p13 }
  0x5b   : > { %1202 = shalt.err (!%p1199_p2)
}
  0x5c   : > { %s1203_s18 = scalar_lea.vmem %s1598_s21, 16  ;;  %s1210_s17 = scalar_lea.vmem %s1598_s21, 32 }
  0x5d   : > { %p1204_p6 = scmp.ne.s32.totalorder %s1598_s21, %s1203_s18  ;;  %p1211_p3 = scmp.lt.s32.totalorder %s1598_s21, %s1598_s21 }
  0x5e   : > { %p1212_p5 = scmp.lt.s32.totalorder %s1210_s17, %s1203_s18 }
  0x5f   : > { %p1206_p8 = pnand %p1204_p6, %p1608_p9 }
  0x60   : > { %p1213_p11 = por %p1212_p5, %p1211_p3 }
  0x61   : > { %p1207_p10 = pneg %p1206_p8 }
  0x63   : > { %p1214_p12 = pnand %p1213_p11, %p1207_p10 }
  0x65   : > { %1217 = shalt.err (!%p1214_p12)
}
  0x66   : > { %1039 = dma.hbm_to_vmem [thread:$0]  (!%p1592_p7), %s1994_s2, 16, %s1598_s21, [#allocation8]  }
  0x67   : > { %s1491_s9 = smov [#allocation10]   ;;  %s1492_s23 = smov [#allocation13]  }
  0x68   : > { %s305_s22 = sshll.u32 %s1491_s9, 4  ;;  %s316_s24 = sshll.u32 %s1492_s23, 4  ;;  %s306_s22 = int_to_ptr.vmem [resolvable:$true] %s305_s22  ;;  %s317_s24 = int_to_ptr.vmem [resolvable:$true] %s316_s24 }
  0x69   : > { %s1995_s3 = sld [smem:[#allocation30_spill]] }
  0x6f   : > { %s1218_s28 = scalar_lea.hbm %s1995_s3, 16 }
  0x70   : > { %p1219_p13 = scmp.ne.s32.totalorder %s1995_s3, %s1218_s28  ;;  %p1225_p6 = scmp.lt.u32.totalorder %s1218_s28, %s1995_s3 }
  0x72   : > { %p1221_p0 = pnand %p1219_p13, %p1608_p9 }
  0x74   : > { %p1222_p2 = pneg %p1221_p0 }
  0x76   : > { %p1227_p8 = pnand %p1225_p6, %p1222_p2 }
  0x78   : > { %1230 = shalt.err (!%p1227_p8)
}
  0x79   : > { %s1231_s21 = scalar_lea.vmem %s306_s22, 16  ;;  %s1238_s20 = scalar_lea.vmem %s306_s22, 32 }
  0x7a   : > { %p1232_p10 = scmp.ne.s32.totalorder %s306_s22, %s1231_s21  ;;  %p1239_p11 = scmp.lt.s32.totalorder %s306_s22, %s306_s22 }
  0x7b   : > { %p1240_p12 = scmp.lt.s32.totalorder %s1238_s20, %s1231_s21 }
  0x7c   : > { %p1234_p3 = pnand %p1232_p10, %p1608_p9 }
  0x7d   : > { %p1241_p1 = por %p1240_p12, %p1239_p11 }
  0x7e   : > { %p1235_p5 = pneg %p1234_p3 }
  0x80   : > { %p1242_p4 = pnand %p1241_p1, %p1235_p5 }
  0x82   : > { %1245 = shalt.err (!%p1242_p4)
}
  0x83   : > { %1042 = dma.hbm_to_vmem [thread:$0]  (!%p1592_p7), %s1995_s3, 16, %s306_s22, [#allocation11]  }
  0x84   : > { %s1996_s5 = sld [smem:[#allocation32_spill]] }
  0x8a   : > { %s1246_s26 = scalar_lea.hbm %s1996_s5, 16 }
  0x8b   : > { %p1247_p13 = scmp.ne.s32.totalorder %s1996_s5, %s1246_s26  ;;  %p1253_p4 = scmp.lt.u32.totalorder %s1246_s26, %s1996_s5 }
  0x8d   : > { %p1249_p0 = pnand %p1247_p13, %p1608_p9 }
  0x8f   : > { %p1250_p1 = pneg %p1249_p0 }
  0x91   : > { %p1255_p2 = pnand %p1253_p4, %p1250_p1 }
  0x93   : > { %1258 = shalt.err (!%p1255_p2)
}
  0x94   : > { %s1259_s17 = scalar_lea.vmem %s317_s24, 16  ;;  %s1266_s22 = scalar_lea.vmem %s317_s24, 32 }
  0x95   : > { %p1260_p6 = scmp.ne.s32.totalorder %s317_s24, %s1259_s17  ;;  %p1267_p3 = scmp.lt.s32.totalorder %s317_s24, %s317_s24 }
  0x96   : > { %p1268_p5 = scmp.lt.s32.totalorder %s1266_s22, %s1259_s17 }
  0x97   : > { %p1262_p8 = pnand %p1260_p6, %p1608_p9 }
  0x98   : > { %p1269_p11 = por %p1268_p5, %p1267_p3 }
  0x99   : > { %p1263_p10 = pneg %p1262_p8 }
  0x9b   : > { %p1270_p12 = pnand %p1269_p11, %p1263_p10 }
  0x9d   : > { %1273 = shalt.err (!%p1270_p12)
}
  0x9e   : > { %1045 = dma.hbm_to_vmem [thread:$0]  (!%p1592_p7), %s1996_s5, 16, %s317_s24, [#allocation8]  }
  0x9f   : > { %s923_s16 = sadd.s32 4294967294, %s1484_s12   ;;  %s1714_s9 = sadd.s32 1, %s1484_s12  }
  0xa0   : > { %s116_s23 = sadd.s32 1, %s1480_s11  ;;  %s113_s25 = ssub.s32 %s1484_s12, %s1714_s9 }
  0xa1   : > { %p123_p13 = scmp.ne.s32.totalorder %s1480_s11, %s1476_s10  ;;  %p114_p0 = scmp.eq.s32.totalorder %s113_s25, 0 }
  0xa2   : > { %p124_p1 = scmp.eq.s32.totalorder %s1484_s12, 0  ;;  %p129_p4 = scmp.ne.s32.totalorder %s1476_s10, %s1472_s30 }
  0xa3   : > { %p242_p2 = scmp.eq.s32.totalorder %s1575_s13, 1  ;;  %p1997_p8 = scmp.eq.s32.totalorder %s1575_s13, 0 }
  0xa4   : > { %s1726_s26 = scalar_select %p114_p0, %s1480_s11, %s116_s23  }
  0xa5   : > { %p125_p6 = por %p124_p1, %p123_p13  ;;  %p1730_p10 = por %p1997_p8, %p129_p4 }
  0xa6   : > { %p1734_p3 = por %p242_p2, %p123_p13  ;;  %p248_p5 = scmp.eq.s32.totalorder %s923_s16, 1 }
  0xa7   : > { %s1998_s24 = scalar_select %p1730_p10, 1, 0 }
  0xa8   : > { %s1999_s28 = scalar_select %p1734_p3, 1, 0 }
  0xa9   : > { %p1070_p11 = scmp.lt.s32.totalorder %s1484_s12, 2  ;;  %s349_s29 = sand.u32 1, %s1484_s12  }
  0xaa   : > { %p1740_p12 = por %p248_p5, %p129_p4  ;;  %s1974_s18 = sand.u32 1, %s1480_s11  }
  0xab   : > { %s934_s17 = sshll.u32 %s1484_s12, 6  ;;  %s933_s22 = sshll.u32 %s1974_s18, 2 }
  0xac   : > { %s2000_s15 = scalar_select %p1740_p12, 1, 0 }
  0xad   : > { %s2001_s4 = sld [smem:[#allocation31_spill]]  ;;  %p1753_p13 = pnand %p1070_p11, %p125_p6 }
  0xae   : > { %s353_s25 = scalar_lea.vmem [#allocation12], %s933_s22  ;;  %s1759_s18 = scalar_lea.sflag [#allocation5], %s349_s29 }
  0xaf   : > { %s2002_s16 = scalar_select %p1753_p13, 1, 0 }
  0xb0   : > { %s360_s0 = sshll.u32 %s353_s25, 4  ;;  %p1979_p1 = pneg %p1753_p13  ;;  %s1757_s0 = int_to_ptr.vmem [resolvable:$true] %s360_s0 }
  0xb3   : > { %s1751_s23 = scalar_lea.hbm %s2001_s4, %s934_s17  ;;  %s1279_s20 = scalar_lea.hbm %s2001_s4, 128 }
  0xb4   : > { %s1274_s1 = scalar_lea.hbm %s1751_s23, 64  ;;  %p1280_p6 = scmp.lt.u32.totalorder %s1751_s23, %s2001_s4 }
  0xb5   : > { %p1275_p0 = scmp.ne.s32.totalorder %s1751_s23, %s1274_s1  ;;  %p1281_p8 = scmp.lt.u32.totalorder %s1279_s20, %s1274_s1 }
  0xb6   : > { %p1283_p11 = scmp.lt.u32.totalorder %s1274_s1, %s1751_s23 }
  0xb7   : > { %p1277_p4 = pnand %p1979_p1, %p1275_p0  ;;  %p1282_p5 = por %p1281_p8, %p1280_p6 }
  0xb9   : > { %p1278_p2 = pneg %p1277_p4  ;;  %p1284_p12 = por %p1283_p11, %p1282_p5 }
  0xbb   : > { %p1285_p3 = pnand %p1284_p12, %p1278_p2 }
  0xbd   : > { %1288 = shalt.err (!%p1285_p3)
}
  0xbe   : > { %s1289_s29 = scalar_lea.vmem %s1757_s0, 64  ;;  %s1493_s22 = smov [#allocation12]  }
  0xbf   : > { %p1290_p0 = scmp.ne.s32.totalorder %s1757_s0, %s1289_s29  ;;  %s1294_s25 = sshll.u32 %s1493_s22, 4  ;;  %s1295_s25 = int_to_ptr.vmem [resolvable:$false] %s1294_s25 }
  0xc0   : > { %s1296_s2 = scalar_lea.vmem %s1295_s25, 128  ;;  %p1297_p7 = scmp.lt.s32.totalorder %s1757_s0, %s1295_s25 }
  0xc1   : > { %p1292_p4 = pnand %p1290_p0, %p1979_p1  ;;  %p1298_p6 = scmp.lt.s32.totalorder %s1296_s2, %s1289_s29 }
  0xc3   : > { %p1293_p10 = pneg %p1292_p4  ;;  %p1299_p8 = por %p1298_p6, %p1297_p7 }
  0xc5   : > { %p1300_p5 = pnand %p1299_p8, %p1293_p10 }
  0xc7   : > { %1303 = shalt.err (!%p1300_p5)
}
  0xc8   : > { %1055 = dma.hbm_to_vmem [thread:$0]  (!%p1753_p13), %s1751_s23, 64, %s1757_s0, %s1759_s18  }
  0xc9   : > { %s1494_s1 = smov [#allocation15]   ;;  %s1495_s17 = smov [#allocation16]  }
  0xca   : > { %s327_s3 = sshll.u32 %s1494_s1, 4  ;;  %s338_s21 = sshll.u32 %s1495_s17, 4  ;;  %s328_s3 = int_to_ptr.vmem [resolvable:$true] %s327_s3  ;;  %s339_s21 = int_to_ptr.vmem [resolvable:$true] %s338_s21 }
  0xcb   : > { %s1304_s25 = scalar_lea.hbm %s1968_s7, 16 }
  0xcc   : > { %p1305_p7 = scmp.ne.s32.totalorder %s1968_s7, %s1304_s25  ;;  %p1311_p12 = scmp.lt.u32.totalorder %s1304_s25, %s1968_s7 }
  0xce   : > { %p1307_p10 = pnand %p1305_p7, %p1608_p9 }
  0xd0   : > { %p1308_p3 = pneg %p1307_p10 }
  0xd2   : > { %p1313_p2 = pnand %p1311_p12, %p1308_p3 }
  0xd4   : > { %1316 = shalt.err (!%p1313_p2)
}
  0xd5   : > { %s1317_s0 = scalar_lea.vmem %s328_s3, 16  ;;  %s1324_s23 = scalar_lea.vmem %s328_s3, 32 }
  0xd6   : > { %p1318_p11 = scmp.ne.s32.totalorder %s328_s3, %s1317_s0  ;;  %p1325_p6 = scmp.lt.s32.totalorder %s328_s3, %s328_s3 }
  0xd7   : > { %p1326_p8 = scmp.lt.s32.totalorder %s1324_s23, %s1317_s0 }
  0xd8   : > { %p1320_p0 = pnand %p1318_p11, %p1608_p9 }
  0xd9   : > { %p1327_p5 = por %p1326_p8, %p1325_p6 }
  0xda   : > { %p1321_p4 = pneg %p1320_p0 }
  0xdc   : > { %p1328_p1 = pnand %p1327_p5, %p1321_p4 }
  0xde   : > { %1331 = shalt.err (!%p1328_p1)
}
  0xdf   : > { %p2003_p7 = scmp.ne.s32.totalorder %s1990_s19, 0  ;;  %s2004_s4 = sand.u32 1, %s1480_s11  }
  0xe0   : > { %s935_s5 = sshll.u32 %s2004_s4, 3  ;;  %s1332_s25 = scalar_lea.hbm %s1969_s8, 16 }
  0xe1   : > { %1048 = dma.hbm_to_vmem [thread:$0]  (!%p2003_p7), %s1968_s7, 16, %s328_s3, [#allocation8]  }
  0xe2   : > { %p1333_p10 = scmp.ne.s32.totalorder %s1969_s8, %s1332_s25  ;;  %p1339_p12 = scmp.lt.u32.totalorder %s1332_s25, %s1969_s8 }
  0xe4   : > { %p1335_p1 = pnand %p1333_p10, %p1608_p9 }
  0xe6   : > { %p1336_p3 = pneg %p1335_p1 }
  0xe8   : > { %p1341_p2 = pnand %p1339_p12, %p1336_p3 }
  0xea   : > { %1344 = shalt.err (!%p1341_p2)
}
  0xeb   : > { %s1345_s3 = scalar_lea.vmem %s339_s21, 16  ;;  %s1352_s1 = scalar_lea.vmem %s339_s21, 32 }
  0xec   : > { %p1346_p11 = scmp.ne.s32.totalorder %s339_s21, %s1345_s3  ;;  %p1353_p6 = scmp.lt.s32.totalorder %s339_s21, %s339_s21 }
  0xed   : > { %p1354_p8 = scmp.lt.s32.totalorder %s1352_s1, %s1345_s3 }
  0xee   : > { %p1348_p0 = pnand %p1346_p11, %p1608_p9 }
  0xef   : > { %p1355_p5 = por %p1354_p8, %p1353_p6 }
  0xf0   : > { %p1349_p4 = pneg %p1348_p0 }
  0xf2   : > { %p1356_p13 = pnand %p1355_p5, %p1349_p4 }
  0xf4   : > { %1359 = shalt.err (!%p1356_p13)
}
  0xf5   : > { %1051 = dma.hbm_to_vmem [thread:$0]  (!%p2003_p7), %s1969_s8, 16, %s339_s21, [#allocation11]  }
  0xf6   : > { %s936_s20 = sshll.u32 %s1484_s12, 7  ;;  %s371_s29 = scalar_lea.vmem [#allocation14], %s935_s5 }
  0xf7   : > { %s1829_s27 = scalar_lea.hbm %s1967_s6, %s936_s20  ;;  %s378_s2 = sshll.u32 %s371_s29, 4  ;;  %s379_s2 = int_to_ptr.vmem [resolvable:$true] %s378_s2 }
  0xf8   : > { %s1360_s19 = scalar_lea.hbm %s1829_s27, 128  ;;  %p2005_p13 = scmp.ne.s32.totalorder %s2002_s16, 0 }
  0xf9   : > { %p1361_p9 = scmp.ne.s32.totalorder %s1829_s27, %s1360_s19  ;;  %s1365_s23 = scalar_lea.hbm %s1967_s6, 256 }
  0xfa   : > { %p2006_p10 = pneg %p2005_p13  ;;  %p1366_p7 = scmp.lt.u32.totalorder %s1829_s27, %s1967_s6 }
  0xfb   : > { %p1367_p12 = scmp.lt.u32.totalorder %s1365_s23, %s1360_s19  ;;  %p1369_p11 = scmp.lt.u32.totalorder %s1360_s19, %s1829_s27 }
  0xfc   : > { %p1363_p1 = pnand %p1361_p9, %p2006_p10 }
  0xfd   : > { %p1368_p2 = por %p1367_p12, %p1366_p7 }
  0xfe   : > { %p1364_p3 = pneg %p1363_p1 }
  0xff   : > { %p1370_p0 = por %p1369_p11, %p1368_p2 }
 0x101   : > { %p1371_p4 = pnand %p1370_p0, %p1364_p3 }
 0x103   : > { %1374 = shalt.err (!%p1371_p4)
}
 0x104   : > { %s1375_s5 = scalar_lea.vmem %s379_s2, 128  ;;  %p2007_p8 = pmov %p2006_p10 }
 0x105   : > { %p1376_p6 = scmp.ne.s32.totalorder %s379_s2, %s1375_s5  ;;  %s1496_s17 = smov [#allocation14]  }
 0x106   : > { %s1380_s4 = sshll.u32 %s1496_s17, 4  ;;  %s1381_s4 = int_to_ptr.vmem [resolvable:$false] %s1380_s4 }
 0x107   : > { %p1378_p5 = pnand %p1376_p6, %p2007_p8  ;;  %s1382_s20 = scalar_lea.vmem %s1381_s4, 256 }
 0x108   : > { %p1383_p10 = scmp.lt.s32.totalorder %s379_s2, %s1381_s4  ;;  %p1384_p1 = scmp.lt.s32.totalorder %s1382_s20, %s1375_s5 }
 0x109   : > { %p1379_p9 = pneg %p1378_p5 }
 0x10a   : > { %p1385_p7 = por %p1384_p1, %p1383_p10 }
 0x10c   : > { %p1386_p12 = pnand %p1385_p7, %p1379_p9 }
 0x10e   : > { %1389 = shalt.err (!%p1386_p12)
}
 0x10f   : > { %1058 = dma.hbm_to_vmem [thread:$0]  (!%p2005_p13), %s1829_s27, 128, %s379_s2, %s1759_s18  }
 0x110   : > { %p2008_p3 = scmp.ne.s32.totalorder %s1989_s14, 0 }
 0x111   : > { %p2009_p2 = scmp.eq.s32.totalorder (!%p2008_p3), %s1575_s13, 0 }
 0x112   : > { %387 = sbr.rel (%p2008_p3) target bundleno = 1760 (0x6e0), region = 56 }
 0x119   : > { %1435 = dma.done.wait (%p2009_p2), [#allocation5], 128   ;;  %p2010_p11 = pmov %p2009_p2 }
 0x11a   : > { %p2011_p0 = pmov %p2009_p2 }
 0x11b   : > { %1437 = vsyncadd (%p2010_p11), [#allocation5], 4294967168 }
 0x11c   : > { %1439 = dma.done.wait (%p2011_p0), [#allocation8], 144   ;;  %p2012_p4 = pmov %p2011_p0 }
 0x11d   : > { %p2013_p6 = pmov %p2011_p0 }
 0x11e   : > { %1441 = vsyncadd (%p2012_p4), [#allocation8], 4294967152 }
 0x11f   : > { %1443 = dma.done.wait (%p2013_p6), [#allocation11], 16   ;;  %p2014_p13 = pmov %p2011_p0 }
 0x120   : > { %s405_s14 = sand.u32 1, %s1575_s13   ;;  %s1867_s18 = sand.u32 1, %s1476_s10  }
 0x121   : > { %1445 = vsyncadd (%p2014_p13), [#allocation11], 4294967280  ;;  %s942_s16 = sshll.u32 %s1867_s18, 2  ;;  %s406_s22 = scalar_lea.sflag [#allocation5], %s405_s14 }
 0x122   : > { %s1870_s25 = scalar_lea.vmem [#allocation12], %s942_s16  ;;  %p2015_p8 = scmp.ne.s32.totalorder %s1998_s24, 0 }
 0x124   : > { %1447 = dma.done.wait (%p2015_p8), %s406_s22, 64  }
 0x125   : > { %1449 = vsyncadd (%p2015_p8), %s406_s22, 4294967232  ;;  %p2016_p5 = pmov %p2011_p0 }
 0x126   : > { %p2017_p9 = pmov %p2011_p0 }
 0x127   : > { %1451 = dma.done.wait (%p2016_p5), [#allocation8], 16  }
 0x128   : > { %1453 = vsyncadd (%p2017_p9), [#allocation8], 4294967280  ;;  %s944_s27 = sshll.u32 %s1867_s18, 3 }
 0x129   : > { %s1881_s29 = scalar_lea.vmem [#allocation14], %s944_s27 }
 0x12a   : > { %1455 = dma.done.wait (%p2015_p8), %s406_s22, 128  }
 0x12b   : > { %1457 = vsyncadd (%p2015_p8), %s406_s22, 4294967168  ;;  %p2018_p10 = pmov %p2011_p0 }
 0x12c   : > { %p2019_p1 = pmov %p2011_p0 }
 0x12d   : > { %1459 = dma.done.wait (%p2018_p10), [#allocation8], 16  }
 0x12e   : > { %1461 = vsyncadd (%p2019_p1), [#allocation8], 4294967280  ;;  %p2020_p7 = pmov %p2011_p0 }
 0x12f   : > { %p2021_p12 = pmov %p2011_p0 }
 0x130   : > { %1463 = dma.done.wait (%p2020_p7), [#allocation11], 16  }
 0x131   : > { %1465 = vsyncadd (%p2021_p12), [#allocation11], 4294967280  ;;  %s948_s2 = sshll.u32 %s1575_s13, 3  ;;  %s1896_s19 = scalar_lea.vmem [#allocation17], %s944_s27 }
 0x132   : > { %p2022_p3 = scmp.ne.s32.totalorder %s1575_s13, 0 }
 0x133   : > { %v1126_v0 = vld [vmem:[#allocation7] sm:$0xff] (!%p2022_p3)   ;;  %v1497_v1 = vmov (!%p2022_p3), 0.0   ;;  %v1127_v2 = vld [vmem:[#allocation4] sm:$0xff] (!%p2022_p3)   ;;  %vm1498_vm0 = vmmov (!%p2022_p3), 0   ;;  %vm493_vm1 = vcmask (!%p2022_p3), 130048   ;;  %v1499_v3 = vmov (!%p2022_p3), 0.0|0.0  }
 0x134   : > { %477 = sbr.rel (%p2022_p3) target bundleno = 748 (0x2ec), region = 96  ;;  %973 = vmatprep.subr.bf16.mxu0 (!%p2022_p3), %v1497_v1  ;;  %975 = vmatprep.mubr.msk.bf16.mxu0 (!%p2022_p3), %vm1498_vm0, %v1497_v1  ;;  %vm538_vm2 = vcmask (!%p2022_p3), 31744   ;;  %v541_v9 = vld [vmem:[#allocation9] sm:$0x1] (!%p2022_p3)  ;;  %vm621_vm4 = vcmask (!%p2022_p3), 122880  }
 0x135   : > { %974 = vmatpush3.bf16.msra.mxu0 (!%p2022_p3), %v1126_v0  ;;  %983 = vmatprep.mubr.msk.f32.mxu1 (!%p2022_p3), %vm1498_vm0, %v1497_v1  ;;  %vm994_vm3 = vmpackc.low (!%p2022_p3), %vm538_vm2, %vm538_vm2 }
 0x136   : > { %992 = vmatprep.subr.bf16.mxu1 (!%p2022_p3), %v1499_v3 }
 0x138   : > { %976 = vmatmul.mubr.msk.bf16.vlgmr.msra.gmra.mrb[0].mxu0 (!%p2022_p3), %vm493_vm1, %v1127_v2 }
 0x20b   : > { %v531_v4 = vpop.f32.mrb[0].mxu0 }
 0x20c   : > { %539 = vst.msk [vmem:[#allocation2] sm:$0xff] %vm538_vm2, %v531_v4  ;;  %v977_v5 = vpop.f32.mrb[1].mxu0 }
 0x20d   : > { %v534_v6 = vpop.f32.mrb[2].mxu0 }
 0x20e   : > { %540 = vst.msk [vmem:[#allocation2 + $0x8] sm:$0xff] %vm538_vm2, %v534_v6  ;;  %v993_v7 = vpack.c.bf16 %v534_v6, %v531_v4  ;;  %v978_v8 = vpop.f32.mrb[3].mxu0 }
 0x210   : > { %995 = vmatpush3.bf16.xpose.msk.msra.mxu1 %vm994_vm3, %v993_v7 }
 0x217   : > { %984 = vmatmul.mubr.msk.f32.vlgmr.msra.gmra.mrb[0].mxu1 %vm538_vm2, %v541_v9 }
 0x2ea   : > { %v617_v10 = vpop.f32.mrb[0].mxu1 }
 0x2eb   : > { %622 = vst.msk [vmem:[#allocation3] sm:$0x1] %vm621_vm4, %v617_v10  ;;  %v985_v11 = vpop.f32.mrb[1].mxu1 }
 0x2ec PF: > { %v956_v12 = vld [vmem:[#allocation10] ss:$0 sm:$0xff]  ;;  %s625_s24 = scalar_lea.vmem [#allocation2], %s948_s2  ;;  %vm635_vm5 = vcmask 31744   ;;  %v640_v16 = vld [vmem:[%s1870_s25] sm:$0xf] }
 0x2ed   : > { %v626_v13 = vld [vmem:[%s625_s24] sm:$0xff]  ;;  %vm641_vm6 = vcmp.gt.bf16.partialorder %v640_v16, 0  ;;  %v1500_v17 = vmov 0   ;;  %vm656_vm9 = vcmask 130048   ;;  %v624_v33 = vld [vmem:[#allocation2 + $0x8] sm:$0xff]  ;;  %v1501_v34 = vmov 0.0  }
 0x2ee   : > { %v634_v14 = vmul.f32 %v956_v12, %v626_v13  ;;  %v652_v18 = vsel %vm641_vm6, 65537, %v1500_v17  ;;  %v623_v32 = vld [vmem:[#allocation2] sm:$0xff]  ;;  %986 = vmatprep.subr.bf16.mxu0 %v1501_v34  ;;  %vm1502_vm10 = vmmov 0   ;;  %v958_v40 = vld [vmem:[#allocation13] ss:$0 sm:$0xff]  ;;  %v720_v42 = vld [vmem:[%s1881_s29] sm:$0xff] }
 0x2ef   : > { %v653_v20 = vunpack.c.l.b16 %v652_v18  ;;  %v669_v35 = vpack.c.bf16 %v624_v33, %v623_v32  ;;  %988 = vmatprep.mubr.msk.bf16.mxu0 %vm1502_vm10, %v1501_v34  ;;  %v960_v58 = vld [vmem:[#allocation15] ss:$0 sm:$0xff]  ;;  %v961_v60 = vld [vmem:[#allocation16] ss:$0 sm:$0xff]  ;;  %s963_s21 = sshll.u32 %s1575_s13, 7  ;;  %s766_s0 = sshll.u32 %s1896_s19, 4  ;;  %s1917_s0 = int_to_ptr.vmem [resolvable:$true] %s766_s0 }
 0x2f0   : > { %v636_v15 = vsel %vm635_vm5, %v634_v14, 0.0  ;;  %s2023_s1 = sld [smem:[#allocation33_spill]]  ;;  %s753_s17 = scalar_lea.sflag [#allocation6], %s1867_s18 }
 0x2f1   : > { %637 = vadd.xlane.f32.xlu0 %v636_v15  ;;  %vm654_vm8 = vcmp.ne.s32.totalorder %v653_v20, 0  ;;  %987 = vmatpush3.bf16.msra.mxu0 %v669_v35  ;;  %s1390_s4 = scalar_lea.vmem %s1917_s0, 128  ;;  %p2024_p11 = scmp.ne.s32.totalorder %s1999_s28, 0 }
 0x2f2   : > { %v957_v19 = vld [vmem:[#allocation3] ss:$0 sm:$0xff]  ;;  %p1391_p2 = scmp.ne.s32.totalorder %s1917_s0, %s1390_s4  ;;  %s1503_s13 = smov [#allocation17]  }
 0x2f3   : > { %s1394_s20 = sshll.u32 %s1503_s13, 4  ;;  %s1395_s20 = int_to_ptr.vmem [resolvable:$false] %s1394_s20 }
 0x2f4   : > { %p1392_p0 = pnand %p1391_p2, %p2024_p11  ;;  %s1396_s14 = scalar_lea.vmem %s1395_s20, 256 }
 0x2f5   : > { %p1397_p6 = scmp.lt.s32.totalorder %s1917_s0, %s1395_s20  ;;  %p1398_p13 = scmp.lt.s32.totalorder %s1396_s14, %s1390_s4 }
 0x2f6   : > { %s1915_s5 = scalar_lea.hbm %s2023_s1, %s963_s21  ;;  %p1393_p4 = pneg %p1392_p0 }
 0x2f7   : > { %p1399_p8 = por %p1398_p13, %p1397_p6 }
 0x2f9   : > { %p1400_p5 = pnand %p1399_p8, %p1393_p4 }
 0x37e   : > { %v638_v21 = vpop.xlane.xlu0 %637 }
 0x37f   : > { %v648_v22 = vadd.f32 %v957_v19, %v638_v21 }
 0x381   : > { %v650_v23 = vmul.f32 0.2, %v648_v22  ;;  %vm649_vm7 = vcmp.gt.f32.partialorder %v648_v22, 0.0 }
 0x383   : > { %v651_v24 = vsel %vm649_vm7, %v648_v22, %v650_v23 }
 0x384   : > { %v655_v25 = vsel %vm654_vm8, %v651_v24, -1e+30 }
 0x385   : > { %v657_v26 = vsel %vm656_vm9, %v655_v25, -inf }
 0x386   : > { %658 = vmax.xlane.f32.xlu0 %v657_v26 }
 0x413   : > { %v659_v27 = vpop.xlane.xlu0 %658 }
 0x414   : > { %v660_v28 = vsub.f32 %v655_v25, %v659_v27 }
 0x416   : > { %v661_v29 = vmul.f32 1.442695, %v660_v28 }
 0x418   : > { %1128 = vpow2.f32 %v661_v29 }
 0x422   : > { %v1129_v30 = vpop.eup %1128 }
 0x423   : > { %v663_v31 = vsel %vm656_vm9, %v1129_v30, 0.0 }
 0x424   : > { %664 = vadd.xlane.f32.xlu1 %v663_v31 }
 0x4b1   : > { %v665_v36 = vpop.xlane.xlu1 %664 }
 0x4b2   : > { %1130 = vrcp.f32 %v665_v36 }
 0x4bc   : > { %v1131_v37 = vpop.eup %1130 }
 0x4bd   : > { %v667_v38 = vmul.f32 %v1131_v37, %v1129_v30 }
 0x4bf   : > { %v668_v39 = vpack.c.bf16 %v667_v38, %v667_v38 }
 0x4c1   : > { %989 = vmatmul.mubr.msk.bf16.vlgmr.msra.gmra.mrb[0].mxu0 %vm656_vm9, %v668_v39 }
 0x594   : > { %v714_v41 = vpop.f32.mrb[0].mxu0 }
 0x595   : > { %v715_v43 = vadd.f32 %v958_v40, %v714_v41  ;;  %v990_v44 = vpop.f32.mrb[1].mxu0 }
 0x596   : > { %v717_v45 = vpop.f32.mrb[2].mxu0 }
 0x597   : > { %v991_v46 = vpop.f32.mrb[3].mxu0  ;;  %v721_v47 = vadd.f32 %v720_v42, %v715_v43 }
 0x599   : > { %v722_v48 = vsel %vm635_vm5, %v721_v47, 0.0 }
 0x59a   : > { %723 = vadd.xlane.f32.xlu1 %v722_v48 }
 0x627   : > { %v724_v49 = vpop.xlane.xlu1 %723 }
 0x628   : > { %v725_v50 = vmul.f32 0.25, %v724_v49 }
 0x62a   : > { %v726_v51 = vsub.f32 %v721_v47, %v725_v50 }
 0x62c   : > { %v727_v52 = vmul.f32 %v726_v51, %v726_v51 }
 0x62e   : > { %v728_v53 = vsel %vm635_vm5, %v727_v52, 0.0 }
 0x62f   : > { %729 = vadd.xlane.f32.xlu0 %v728_v53 }
 0x6bc   : > { %v730_v54 = vpop.xlane.xlu0 %729 }
 0x6bd   : > { %v731_v55 = vmul.f32 0.25, %v730_v54 }
 0x6bf   : > { %v732_v56 = vadd.f32 1e-05, %v731_v55 }
 0x6c1   : > { %1132 = vrsqrt.f32 %v732_v56 }
 0x6cb   : > { %v1133_v57 = vpop.eup %1132 }
 0x6cc   : > { %v734_v59 = vmul.f32 %v1133_v57, %v726_v51 }
 0x6ce   : > { %v742_v61 = vmul.f32 %v960_v58, %v734_v59 }
 0x6d0   : > { %v750_v62 = vadd.f32 %v961_v60, %v742_v61 }
 0x6d2   : > { %751 = vst.msk [vmem:[%s1896_s19] sm:$0xff] %vm635_vm5, %v750_v62 }
 0x6d3   : > { %1403 = shalt.err (!%p1400_p5)
}
 0x6d4   : > { %s1404_s18 = scalar_lea.hbm %s1915_s5, 128  ;;  %s1408_s25 = scalar_lea.hbm %s2023_s1, 256 }
 0x6d5   : > { %p1405_p9 = scmp.ne.s32.totalorder %s1915_s5, %s1404_s18  ;;  %p1409_p7 = scmp.lt.u32.totalorder %s1915_s5, %s2023_s1 }
 0x6d6   : > { %p1410_p12 = scmp.lt.u32.totalorder %s1408_s25, %s1404_s18  ;;  %p1412_p2 = scmp.lt.u32.totalorder %s1404_s18, %s1915_s5 }
 0x6d7   : > { %p1406_p10 = pnand %p1405_p9, %p2024_p11 }
 0x6d8   : > { %p1411_p3 = por %p1410_p12, %p1409_p7 }
 0x6d9   : > { %p1407_p1 = pneg %p1406_p10 }
 0x6da   : > { %p1413_p0 = por %p1412_p2, %p1411_p3 }
 0x6dc   : > { %p1414_p4 = pnand %p1413_p0, %p1407_p1 }
 0x6de   : > { %1417 = shalt.err (!%p1414_p4)
}
 0x6df   : > { %1028 = dma.vmem_to_hbm [thread:$0]  (%p2024_p11), %s1917_s0, 128, %s1915_s5, %s753_s17  }
 0x6e0 PF: > { %s778_s2 = sand.u32 1, %s1472_s30   ;;  %p2025_p6 = scmp.ne.s32.totalorder %s2000_s15, 0 }
 0x6e1   : > { %p2026_p13 = scmp.ge.s32.totalorder %s1484_s12, 2  ;;  %s779_s19 = scalar_lea.sflag [#allocation6], %s778_s2 }
 0x6e3   : > { %p1060_p8 = pnand %p2026_p13, %p2025_p6 }
 0x6e5   : > { %1467 = dma.done.wait (!%p1060_p8), %s779_s19, 128  }
 0x6e6   : > { %1469 = vsyncadd (!%p1060_p8), %s779_s19, 4294967168  ;;  %p22_p5 = scmp.ge.s32.totalorder %s1714_s9, 4   ;;  %s2027_s30 = smov %s1476_s10 }
 0x6e7   : > { %s2028_s10 = smov %s1480_s11  ;;  %s2029_s11 = smov %s1726_s26 }
 0x6e8   : > { %s2030_s12 = smov %s1714_s9  ;;  %24 = sbr.rel (!%p22_p5) target bundleno = 14 (0xe), region = 144 }
 0x6ef   :  { %784 = vsyncpa [#allocation5], 1 }
 0x6f0   :  { %786 = vsyncpa [#allocation5 + $0x1], 1 }
 0x6f1   :  { %787 = vsyncpa [#allocation8], 1 }
 0x6f2   :  { %788 = vsyncpa [#allocation11], 1 }
 0x6f3   :  { %789 = vsyncpa [#allocation6], 1 }
 0x6f4   :  { %791 = vsyncpa [#allocation6 + $0x1], 1 }

// kernel: gat_forward.4
= control target key start
LH: loop header
LB: loop body
LE: loop exit
PB: predicated region body
PF: predicated region fallthrough
CT: control target
= control target key end

     0   :  { %11 = vsyncpa [#allocation5], 0  ;;  %s889_s0 = inlined_call_operand.hbm [shape: bf16[8,8], index: 0, kind: input, shape index: {}]   ;;  %s890_s1 = inlined_call_operand.hbm [shape: bf16[8,16], index: 1, kind: input, shape index: {}]   ;;  %s891_s2 = inlined_call_operand.hbm [shape: f32[2,16], index: 2, kind: input, shape index: {}]   ;;  %s892_s3 = inlined_call_operand.hbm [shape: f32[2,16], index: 3, kind: input, shape index: {}]   ;;  %s893_s4 = inlined_call_operand.hbm [shape: bf16[8,8], index: 4, kind: input, shape index: {}]   ;;  %s894_s5 = inlined_call_operand.hbm [shape: f32[1,16], index: 5, kind: input, shape index: {}]   ;;  %s895_s6 = inlined_call_operand.hbm [shape: f32[8,16], index: 6, kind: output, shape index: {}]  }
   0x1   :  { %12 = vsyncpa [#allocation8], 0 }
   0x2   :  { %13 = vsyncpa [#allocation11], 0 }
   0x3   :  { %14 = vsyncpa [#allocation14], 0 }
   0x4   :  { %15 = vsyncpa [#allocation6], 0  ;;  %s735_s21 = smov [#allocation7]   ;;  %s736_s23 = smov [#allocation10]  }
   0x5   :  { %s32_s22 = sshll.u32 %s735_s21, 4  ;;  %s52_s24 = sshll.u32 %s736_s23, 4  ;;  %s33_s22 = int_to_ptr.vmem [resolvable:$true] %s32_s22  ;;  %s53_s24 = int_to_ptr.vmem [resolvable:$true] %s52_s24 }
   0x6   :  { %s571_s27 = scalar_lea.hbm %s890_s1, 64 }
   0x7   :  { %p572_p0 = scmp.ne.s32.totalorder %s890_s1, %s571_s27  ;;  %p575_p1 = scmp.lt.u32.totalorder %s571_s27, %s890_s1 }
   0x9   :  { %p577_p2 = pnand %p575_p1, %p572_p0 }
   0xb   :  { %580 = shalt.err (!%p577_p2)
}
   0xc   :  { %s581_s8 = scalar_lea.vmem %s33_s22, 64  ;;  %p586_p4 = scmp.lt.s32.totalorder %s33_s22, %s33_s22 }
   0xd   :  { %p582_p3 = scmp.ne.s32.totalorder %s33_s22, %s581_s8  ;;  %p587_p5 = scmp.lt.s32.totalorder %s581_s8, %s581_s8 }
   0xf   :  { %p588_p6 = por %p587_p5, %p586_p4 }
  0x11   :  { %p589_p7 = pnand %p588_p6, %p582_p3 }
  0x13   :  { %592 = shalt.err (!%p589_p7)
}
  0x14   :  { %35 = dma.hbm_to_vmem [thread:$0]  %s890_s1, 64, %s33_s22, [#allocation8]  }
  0x15   :  { %s593_s13 = scalar_lea.hbm %s892_s3, 32 }
  0x16   :  { %p594_p8 = scmp.ne.s32.totalorder %s892_s3, %s593_s13  ;;  %p597_p9 = scmp.lt.u32.totalorder %s593_s13, %s892_s3 }
  0x18   :  { %p599_p10 = pnand %p597_p9, %p594_p8 }
  0x1a   :  { %602 = shalt.err (!%p599_p10)
}
  0x1b   :  { %s603_s18 = scalar_lea.vmem %s53_s24, 32  ;;  %p608_p12 = scmp.lt.s32.totalorder %s53_s24, %s53_s24 }
  0x1c   :  { %p604_p11 = scmp.ne.s32.totalorder %s53_s24, %s603_s18  ;;  %p609_p13 = scmp.lt.s32.totalorder %s603_s18, %s603_s18 }
  0x1e   :  { %p610_p0 = por %p609_p13, %p608_p12 }
  0x20   :  { %p611_p1 = pnand %p610_p0, %p604_p11 }
  0x22   :  { %614 = shalt.err (!%p611_p1)
}
  0x23   :  { %55 = dma.hbm_to_vmem [thread:$0]  %s892_s3, 32, %s53_s24, [#allocation11]  }
  0x24   :  { %s737_s20 = smov [#allocation4]   ;;  %s738_s22 = smov [#allocation9]  }
  0x25   :  { %s22_s21 = sshll.u32 %s737_s20, 4  ;;  %s42_s23 = sshll.u32 %s738_s22, 4  ;;  %s23_s21 = int_to_ptr.vmem [resolvable:$true] %s22_s21  ;;  %s43_s23 = int_to_ptr.vmem [resolvable:$true] %s42_s23 }
  0x26   :  { %s615_s27 = scalar_lea.hbm %s889_s0, 64 }
  0x27   :  { %p616_p2 = scmp.ne.s32.totalorder %s889_s0, %s615_s27  ;;  %p619_p3 = scmp.lt.u32.totalorder %s615_s27, %s889_s0 }
  0x29   :  { %p621_p4 = pnand %p619_p3, %p616_p2 }
  0x2b   :  { %624 = shalt.err (!%p621_p4)
}
  0x2c   :  { %s625_s3 = scalar_lea.vmem %s23_s21, 64  ;;  %p630_p6 = scmp.lt.s32.totalorder %s23_s21, %s23_s21 }
  0x2d   :  { %p626_p5 = scmp.ne.s32.totalorder %s23_s21, %s625_s3  ;;  %p631_p7 = scmp.lt.s32.totalorder %s625_s3, %s625_s3 }
  0x2f   :  { %p632_p8 = por %p631_p7, %p630_p6 }
  0x31   :  { %p633_p9 = pnand %p632_p8, %p626_p5 }
  0x33   :  { %636 = shalt.err (!%p633_p9)
}
  0x34   :  { %25 = dma.hbm_to_vmem [thread:$0]  %s889_s0, 64, %s23_s21, [#allocation5]  }
  0x35   :  { %s637_s11 = scalar_lea.hbm %s891_s2, 32 }
  0x36   :  { %p638_p10 = scmp.ne.s32.totalorder %s891_s2, %s637_s11  ;;  %p641_p11 = scmp.lt.u32.totalorder %s637_s11, %s891_s2 }
  0x38   :  { %p643_p12 = pnand %p641_p11, %p638_p10 }
  0x3a   :  { %646 = shalt.err (!%p643_p12)
}
  0x3b   :  { %s647_s16 = scalar_lea.vmem %s43_s23, 32  ;;  %p652_p0 = scmp.lt.s32.totalorder %s43_s23, %s43_s23 }
  0x3c   :  { %p648_p13 = scmp.ne.s32.totalorder %s43_s23, %s647_s16  ;;  %p653_p1 = scmp.lt.s32.totalorder %s647_s16, %s647_s16 }
  0x3e   :  { %p654_p2 = por %p653_p1, %p652_p0 }
  0x40   :  { %p655_p3 = pnand %p654_p2, %p648_p13 }
  0x42   :  { %658 = shalt.err (!%p655_p3)
}
  0x43   :  { %45 = dma.hbm_to_vmem [thread:$0]  %s891_s2, 32, %s43_s23, [#allocation8]  }
  0x44   :  { %s739_s18 = smov [#allocation12]   ;;  %s740_s19 = smov [#allocation13]  }
  0x45   :  { %s62_s1 = sshll.u32 %s739_s18, 4  ;;  %s72_s20 = sshll.u32 %s740_s19, 4  ;;  %s63_s1 = int_to_ptr.vmem [resolvable:$true] %s62_s1  ;;  %s73_s20 = int_to_ptr.vmem [resolvable:$true] %s72_s20 }
  0x46   :  { %s659_s25 = scalar_lea.hbm %s893_s4, 64 }
  0x47   :  { %p660_p4 = scmp.ne.s32.totalorder %s893_s4, %s659_s25  ;;  %p663_p5 = scmp.lt.u32.totalorder %s659_s25, %s893_s4 }
  0x49   :  { %p665_p6 = pnand %p663_p5, %p660_p4 }
  0x4b   :  { %668 = shalt.err (!%p665_p6)
}
  0x4c   :  { %s669_s2 = scalar_lea.vmem %s63_s1, 64  ;;  %p674_p8 = scmp.lt.s32.totalorder %s63_s1, %s63_s1 }
  0x4d   :  { %p670_p7 = scmp.ne.s32.totalorder %s63_s1, %s669_s2  ;;  %p675_p9 = scmp.lt.s32.totalorder %s669_s2, %s669_s2 }
  0x4f   :  { %p676_p10 = por %p675_p9, %p674_p8 }
  0x51   :  { %p677_p11 = pnand %p676_p10, %p670_p7 }
  0x53   :  { %680 = shalt.err (!%p677_p11)
}
  0x54   :  { %65 = dma.hbm_to_vmem [thread:$0]  %s893_s4, 64, %s63_s1, [#allocation11]  }
  0x55   :  { %s681_s24 = scalar_lea.hbm %s894_s5, 16 }
  0x56   :  { %p682_p12 = scmp.ne.s32.totalorder %s894_s5, %s681_s24  ;;  %p685_p13 = scmp.lt.u32.totalorder %s681_s24, %s894_s5 }
  0x58   :  { %p687_p0 = pnand %p685_p13, %p682_p12 }
  0x5a   :  { %690 = shalt.err (!%p687_p0)
}
  0x5b   :  { %s691_s12 = scalar_lea.vmem %s73_s20, 16  ;;  %s695_s13 = scalar_lea.vmem %s73_s20, 32 }
  0x5c   :  { %p692_p1 = scmp.ne.s32.totalorder %s73_s20, %s691_s12  ;;  %p696_p2 = scmp.lt.s32.totalorder %s73_s20, %s73_s20 }
  0x5d   :  { %p697_p3 = scmp.lt.s32.totalorder %s695_s13, %s691_s12 }
  0x5f   :  { %p698_p4 = por %p697_p3, %p696_p2 }
  0x61   :  { %p699_p5 = pnand %p698_p4, %p692_p1 }
  0x63   :  { %702 = shalt.err (!%p699_p5)
}
  0x64   :  { %75 = dma.hbm_to_vmem [thread:$0]  %s894_s5, 16, %s73_s20, [#allocation14]  }
  0x65   :  { %725 = dma.done.wait [#allocation5], 64  }
  0x66   :  { %726 = vsyncadd [#allocation5], 4294967232 }
  0x67   :  { %727 = dma.done.wait [#allocation8], 96  }
  0x68   :  { %728 = vsyncadd [#allocation8], 4294967200 }
  0x69   :  { %729 = dma.done.wait [#allocation11], 96  }
  0x6a   :  { %730 = vsyncadd [#allocation11], 4294967200 }
  0x6b   :  { %731 = dma.done.wait [#allocation14], 16  }
  0x6c   :  { %732 = vsyncadd [#allocation14], 4294967280  ;;  %v741_v0 = vmov 0.0   ;;  %vm742_vm0 = vmmov 0   ;;  %vm108_vm1 = vcmask 1043456   ;;  %vm104_vm2 = vcmask 64512  }
  0x6d   :  { %519 = vmatprep.subr.bf16.mxu0 %v741_v0  ;;  %521 = vmatprep.mubr.msk.bf16.mxu0 %vm742_vm0, %v741_v0  ;;  %v103_v1 = vld [vmem:[#allocation7] sm:$0xf]  ;;  %v102_v3 = vld [vmem:[#allocation4] sm:$0xf]  ;;  %vm152_vm3 = vcmask 130048   ;;  %v743_v13 = vmov 1   ;;  %v322_v19 = vlaneseq }
  0x6e   :  { %525 = vmatprep.subr.mxu1 %v741_v0  ;;  %527 = vmatprep.mubr.msk.f32.mxu1 %vm742_vm0, %v741_v0  ;;  %v110_v2 = vsel %vm108_vm1, %v103_v1, 0  ;;  %v154_v6 = vld [vmem:[#allocation9] sm:$0x3]  ;;  %v236_v8 = vld [vmem:[#allocation10] sm:$0x3]  ;;  %vm231_vm4 = vcmask 58368  }
  0x6f   :  { %520 = vmatpush3.bf16.msra.mxu0 %v110_v2  ;;  %560 = vset.pattern.permute.xlu0 %v743_v13  ;;  %v744_v18 = vmov 0   ;;  %s745_s5 = smov 120   ;;  %v315_v20 = vld [vmem:[#allocation12] sm:$0xf]  ;;  %v323_v21 = vshrl.u32 %v322_v19, 7  ;;  %s746_s15 = smov 8  }
  0x70   :  { %535 = vmatprep.subr.bf16.mxu0 %v741_v0  ;;  %vm316_vm5 = vcmp.gt.bf16.partialorder %v315_v20, 0  ;;  %s747_s16 = smov [#allocation15]  }
  0x71   :  { %v401_v22 = vsub.s32 1, %v323_v21  ;;  %v330_v24 = vsel %vm316_vm5, 65537, %v744_v18  ;;  %v324_v28 = vsub.s32 0, %v323_v21  ;;  %s489_s0 = sshll.u32 %s747_s16, 4  ;;  %s490_s0 = int_to_ptr.vmem [resolvable:$true] %s489_s0 }
  0x72   :  { %522 = vmatmul.mubr.msk.bf16.vlgmr.msra.gmra.mrb[0].mxu0 %vm104_vm2, %v102_v3  ;;  %v331_v26 = vunpack.c.l.b16 %v330_v24  ;;  %s703_s17 = scalar_lea.vmem %s490_s0, 128  ;;  %p708_p7 = scmp.lt.s32.totalorder %s490_s0, %s490_s0 }
  0x73   :  { %537 = vmatprep.mubr.msk.bf16.mxu0 %vm742_vm0, %v741_v0  ;;  %p704_p6 = scmp.ne.s32.totalorder %s490_s0, %s703_s17  ;;  %p709_p8 = scmp.lt.s32.totalorder %s703_s17, %s703_s17 }
  0x74   :  { %vm332_vm6 = vcmp.ne.s32.totalorder %v331_v26, 0 }
  0x75   :  { %p710_p9 = por %p709_p8, %p708_p7 }
  0x77   :  { %p711_p10 = pnand %p710_p9, %p704_p6 }
 0x145   :  { %v146_v4 = vpop.f32.mrb[0].mxu0 }
 0x146   :  { %153 = vst.msk [vmem:[#allocation2] sm:$0xff] %vm152_vm3, %v146_v4  ;;  %v523_v5 = vpop.f32.mrb[1].mxu0  ;;  %526 = vmatpush3.xpose.msk.msra.mxu1 %vm152_vm3, %v146_v4 }
 0x147   :  { %v149_v7 = vpop.f32.mrb[2].mxu0  ;;  %530 = vmatprep.subr.mxu1 %v741_v0  ;;  %v508_v5 = vld [vmem:[#allocation13] ss:$0 sm:$0xff] }
 0x148   :  { %v524_v9 = vpop.f32.mrb[3].mxu0 }
 0x149   :  { %528 = vmatmul.mubr.msk.f32.vlgmr.msra.gmra.mrb[0].mxu1 %vm152_vm3, %v154_v6 }
 0x14a   :  { %531 = vmatpush3.xpose.msk.msra.mxu1 %vm152_vm3, %v236_v8  ;;  %532 = vmatprep.mubr.msk.f32.mxu1 %vm742_vm0, %v741_v0 }
 0x14b   :  { %541 = vmatprep.subr.bf16.mxu1 %v741_v0 }
 0x14d   :  { %v235_v10 = vld [vmem:[#allocation2] sm:$0xff] }
 0x14e   :  { %533 = vmatmul.mubr.msk.f32.vlgmr.msra.gmra.mrb[2].mxu1 %vm152_vm3, %v235_v10  ;;  %v347_v11 = vpack.c.bf16 %v235_v10, %v235_v10 }
 0x14f   :  { %543 = vmatprep.mubr.msk.bf16.mxu1 %vm742_vm0, %v741_v0 }
 0x150   :  { %v353_v12 = vsel %vm108_vm1, %v347_v11, 0 }
 0x151   :  { %536 = vmatpush3.bf16.msra.mxu0 %v353_v12 }
 0x21c   :  { %v227_v14 = vpop.f32.mrb[0].mxu1 }
 0x21d   :  { %232 = vst.msk [vmem:[#allocation3] sm:$0x3] %vm231_vm4, %v227_v14  ;;  %v529_v15 = vpop.f32.mrb[1].mxu1 }
 0x221   :  { %v310_v16 = vpop.f32.mrb[2].mxu1 }
 0x222   :  { %396 = vperm.xlu0 %560, %v310_v16   ;;  %v534_v17 = vpop.f32.mrb[3].mxu1 }
 0x224   :  { %v314_v23 = vld [vmem:[#allocation3] sm:$0x3] }
 0x225   :  { %v402_v25 = vrot.slane %v314_v23, %v401_v22  ;;  %v325_v31 = vrot.slane %v314_v23, %v324_v28 }
 0x226   :  { %561 = vset.pattern.permute.xlu0 %v744_v18 }
 0x227   :  { %319 = vperm.xlu0 %561, %v310_v16  }
 0x22b   :  { %421 = vrot.lane.b32.xlu0 %v347_v11, %s745_s5 }
 0x22c   :  { %562 = vset.pattern.permute.xlu0 %v743_v13 }
 0x2a1   :  { %v397_v27 = vpop.permute.xlu0 %396 }
 0x2a2   :  { %v403_v29 = vadd.f32 %v402_v25, %v397_v27 }
 0x2a4   :  { %v405_v30 = vmul.f32 0.2, %v403_v29  ;;  %vm404_vm7 = vcmp.gt.f32.partialorder %v403_v29, 0.0 }
 0x2a6   :  { %v320_v32 = vpop.permute.xlu0 %319  ;;  %v406_v33 = vsel %vm404_vm7, %v403_v29, %v405_v30 }
 0x2a7   :  { %v326_v34 = vadd.f32 %v325_v31, %v320_v32  ;;  %v407_v35 = vsel %vm332_vm6, %v406_v33, -1e+30 }
 0x2a8   :  { %v408_v36 = vsel %vm104_vm2, %v407_v35, -inf }
 0x2a9   :  { %v328_v37 = vmul.f32 0.2, %v326_v34  ;;  %409 = vmax.xlane.f32.xlu1 %v408_v36  ;;  %vm327_vm8 = vcmp.gt.f32.partialorder %v326_v34, 0.0 }
 0x2aa   :  { %v422_v38 = vpop.permute.xlu0 %421 }
 0x2ab   :  { %v427_v39 = vsel %vm108_vm1, %v422_v38, 0  ;;  %v329_v40 = vsel %vm327_vm8, %v326_v34, %v328_v37 }
 0x2ac   :  { %542 = vmatpush3.bf16.msra.mxu1 %v427_v39  ;;  %v333_v41 = vsel %vm332_vm6, %v329_v40, -1e+30 }
 0x2ad   :  { %v335_v42 = vsel %vm104_vm2, %v333_v41, -inf }
 0x2ae   :  { %336 = vmax.xlane.f32.xlu1 %v335_v42 }
 0x336   :  { %v410_v43 = vpop.xlane.xlu1 %409 }
 0x337   :  { %v411_v44 = vsub.f32 %v407_v35, %v410_v43 }
 0x339   :  { %v412_v45 = vmul.f32 1.442695, %v411_v44 }
 0x33b   :  { %563 = vpow2.f32 %v412_v45  ;;  %v337_v46 = vpop.xlane.xlu1 %336 }
 0x33c   :  { %v338_v47 = vsub.f32 %v333_v41, %v337_v46 }
 0x33e   :  { %v339_v48 = vmul.f32 1.442695, %v338_v47 }
 0x340   :  { %565 = vpow2.f32 %v339_v48 }
 0x345   :  { %v564_v49 = vpop.eup %563 }
 0x346   :  { %v414_v50 = vsel %vm104_vm2, %v564_v49, 0.0 }
 0x347   :  { %415 = vadd.xlane.f32.xlu1 %v414_v50 }
 0x34a   :  { %v566_v51 = vpop.eup %565 }
 0x34b   :  { %v341_v52 = vsel %vm104_vm2, %v566_v51, 0.0 }
 0x34c   :  { %342 = vadd.xlane.f32.xlu1 %v341_v52 }
 0x3d4   :  { %v416_v53 = vpop.xlane.xlu1 %415 }
 0x3d5   :  { %567 = vrcp.f32 %v416_v53 }
 0x3d9   :  { %v343_v54 = vpop.xlane.xlu1 %342 }
 0x3da   :  { %569 = vrcp.f32 %v343_v54 }
 0x3df   :  { %v568_v55 = vpop.eup %567 }
 0x3e0   :  { %v418_v56 = vmul.f32 %v568_v55, %v564_v49 }
 0x3e2   :  { %v419_v57 = vpack.c.bf16 %v418_v56, %v418_v56 }
 0x3e4   :  { %v570_v58 = vpop.eup %569  ;;  %544 = vmatmul.mubr.msk.bf16.vlgmr.msra.gmra.mrb[4].mxu1 %vm104_vm2, %v419_v57 }
 0x3e5   :  { %v345_v59 = vmul.f32 %v570_v58, %v566_v51 }
 0x3e7   :  { %v346_v60 = vpack.c.bf16 %v345_v59, %v345_v59 }
 0x3e9   :  { %538 = vmatmul.mubr.msk.bf16.vlgmr.msra.gmra.mrb[4].mxu0 %vm104_vm2, %v346_v60 }
 0x4b7   :  { %v463_v61 = vpop.f32.mrb[4].mxu1 }
 0x4b8   :  { %470 = vrot.lane.b32.xlu0 %v463_v61, %s746_s15  ;;  %v545_v62 = vpop.f32.mrb[5].mxu1 }
 0x4b9   :  { %v466_v63 = vpop.f32.mrb[6].mxu1 }
 0x4ba   :  { %v546_v0 = vpop.f32.mrb[7].mxu1 }
 0x4bc   :  { %v389_v1 = vpop.f32.mrb[4].mxu0 }
 0x4bd   :  { %v539_v2 = vpop.f32.mrb[5].mxu0 }
 0x4be   :  { %v392_v3 = vpop.f32.mrb[6].mxu0 }
 0x4bf   :  { %v540_v4 = vpop.f32.mrb[7].mxu0 }
 0x52a   :  { %v471_v6 = vpop.permute.xlu0 %470 }
 0x52b   :  { %v473_v7 = vsel %vm104_vm2, %v389_v1, %v471_v6 }
 0x52c   :  { %v481_v8 = vadd.f32 %v508_v5, %v473_v7 }
 0x52e   :  { %482 = vst.msk [vmem:[#allocation15] sm:$0xff] %vm152_vm3, %v481_v8 }
 0x52f   :  { %714 = shalt.err (!%p711_p10)
}
 0x530   :  { %s715_s19 = scalar_lea.hbm %s895_s6, 128 }
 0x531   :  { %p716_p11 = scmp.ne.s32.totalorder %s895_s6, %s715_s19  ;;  %p719_p12 = scmp.lt.u32.totalorder %s715_s19, %s895_s6 }
 0x533   :  { %p721_p13 = pnand %p719_p12, %p716_p11 }
 0x535   :  { %724 = shalt.err (!%p721_p13)
}
 0x536   :  { %492 = dma.vmem_to_hbm [thread:$0]  %s490_s0, 128, %s895_s6, [#allocation6]  }
 0x537   :  { %733 = dma.done.wait [#allocation6], 128  }
 0x538   :  { %734 = vsyncadd [#allocation6], 4294967168 }
 0x539   :  { %496 = vsyncpa [#allocation5], 1 }
 0x53a   :  { %497 = vsyncpa [#allocation8], 1 }
 0x53b   :  { %498 = vsyncpa [#allocation11], 1 }
 0x53c   :  { %499 = vsyncpa [#allocation14], 1 }
 0x53d   :  { %500 = vsyncpa [#allocation6], 1 }

// kernel: gat_forward.6
= control target key start
LH: loop header
LB: loop body
LE: loop exit
PB: predicated region body
PF: predicated region fallthrough
CT: control target
= control target key end

     0   :  { %11 = vsyncpa [#allocation5], 0  ;;  %s711_s0 = inlined_call_operand.hbm [shape: bf16[8,16], index: 0, kind: input, shape index: {}]   ;;  %s712_s1 = inlined_call_operand.hbm [shape: bf16[16,4], index: 1, kind: input, shape index: {}]   ;;  %s713_s2 = inlined_call_operand.hbm [shape: f32[1,4], index: 2, kind: input, shape index: {}]   ;;  %s714_s3 = inlined_call_operand.hbm [shape: f32[1,4], index: 3, kind: input, shape index: {}]   ;;  %s715_s4 = inlined_call_operand.hbm [shape: bf16[8,8], index: 4, kind: input, shape index: {}]   ;;  %s716_s5 = inlined_call_operand.hbm [shape: f32[1,4], index: 5, kind: input, shape index: {}]   ;;  %s717_s6 = inlined_call_operand.hbm [shape: f32[8,4], index: 6, kind: output, shape index: {}]  }
   0x1   :  { %12 = vsyncpa [#allocation8], 0 }
   0x2   :  { %13 = vsyncpa [#allocation11], 0 }
   0x3   :  { %14 = vsyncpa [#allocation14], 0 }
   0x4   :  { %15 = vsyncpa [#allocation6], 0  ;;  %s569_s21 = smov [#allocation7]   ;;  %s405_s25 = scalar_lea.hbm %s712_s1, 128 }
   0x5   :  { %s31_s22 = sshll.u32 %s569_s21, 4  ;;  %p406_p0 = scmp.ne.s32.totalorder %s712_s1, %s405_s25  ;;  %s32_s22 = int_to_ptr.vmem [resolvable:$true] %s31_s22 }
   0x6   :  { %p409_p1 = scmp.lt.u32.totalorder %s405_s25, %s712_s1 }
   0x8   :  { %p411_p2 = pnand %p409_p1, %p406_p0 }
   0xa   :  { %414 = shalt.err (!%p411_p2)
}
   0xb   :  { %s415_s30 = scalar_lea.vmem %s32_s22, 128  ;;  %p420_p4 = scmp.lt.s32.totalorder %s32_s22, %s32_s22 }
   0xc   :  { %p416_p3 = scmp.ne.s32.totalorder %s32_s22, %s415_s30  ;;  %p421_p5 = scmp.lt.s32.totalorder %s415_s30, %s415_s30 }
   0xe   :  { %p422_p6 = por %p421_p5, %p420_p4 }
  0x10   :  { %p423_p7 = pnand %p422_p6, %p416_p3 }
  0x12   :  { %426 = shalt.err (!%p423_p7)
}
  0x13   :  { %s570_s7 = smov 64   ;;  %s571_s8 = smov 4  }
  0x14   :  { %37 = dma.hbm_to_vmem [thread:$0]  %s712_s1, 128, %s32_s22, [#allocation8], %s570_s7, %s570_s7, %s571_s8  }
  0x15   :  { %s572_s11 = smov [#allocation10]   ;;  %s573_s13 = smov [#allocation4]  }
  0x16   :  { %s54_s12 = sshll.u32 %s572_s11, 4  ;;  %s22_s14 = sshll.u32 %s573_s13, 4  ;;  %s55_s12 = int_to_ptr.vmem [resolvable:$true] %s54_s12  ;;  %s23_s14 = int_to_ptr.vmem [resolvable:$true] %s22_s14 }
  0x17   :  { %s427_s17 = scalar_lea.hbm %s714_s3, 16 }
  0x18   :  { %p428_p8 = scmp.ne.s32.totalorder %s714_s3, %s427_s17  ;;  %p431_p9 = scmp.lt.u32.totalorder %s427_s17, %s714_s3 }
  0x1a   :  { %p433_p10 = pnand %p431_p9, %p428_p8 }
  0x1c   :  { %436 = shalt.err (!%p433_p10)
}
  0x1d   :  { %s437_s1 = scalar_lea.vmem %s55_s12, 16  ;;  %s441_s22 = scalar_lea.vmem %s55_s12, 32 }
  0x1e   :  { %p438_p11 = scmp.ne.s32.totalorder %s55_s12, %s437_s1  ;;  %p442_p12 = scmp.lt.s32.totalorder %s55_s12, %s55_s12 }
  0x1f   :  { %p443_p13 = scmp.lt.s32.totalorder %s441_s22, %s437_s1 }
  0x21   :  { %p444_p0 = por %p443_p13, %p442_p12 }
  0x23   :  { %p445_p1 = pnand %p444_p0, %p438_p11 }
  0x25   :  { %448 = shalt.err (!%p445_p1)
}
  0x26   :  { %57 = dma.hbm_to_vmem [thread:$0]  %s714_s3, 16, %s55_s12, [#allocation11]  }
  0x27   :  { %s449_s27 = scalar_lea.hbm %s711_s0, 64 }
  0x28   :  { %p450_p2 = scmp.ne.s32.totalorder %s711_s0, %s449_s27  ;;  %p453_p3 = scmp.lt.u32.totalorder %s449_s27, %s711_s0 }
  0x2a   :  { %p455_p4 = pnand %p453_p3, %p450_p2 }
  0x2c   :  { %458 = shalt.err (!%p455_p4)
}
  0x2d   :  { %s459_s8 = scalar_lea.vmem %s23_s14, 64  ;;  %p464_p6 = scmp.lt.s32.totalorder %s23_s14, %s23_s14 }
  0x2e   :  { %p460_p5 = scmp.ne.s32.totalorder %s23_s14, %s459_s8  ;;  %p465_p7 = scmp.lt.s32.totalorder %s459_s8, %s459_s8 }
  0x30   :  { %p466_p8 = por %p465_p7, %p464_p6 }
  0x32   :  { %p467_p9 = pnand %p466_p8, %p460_p5 }
  0x34   :  { %470 = shalt.err (!%p467_p9)
}
  0x35   :  { %25 = dma.hbm_to_vmem [thread:$0]  %s711_s0, 64, %s23_s14, [#allocation5]  }
  0x36   :  { %s574_s10 = smov [#allocation9]   ;;  %s575_s12 = smov [#allocation12]  }
  0x37   :  { %s44_s11 = sshll.u32 %s574_s10, 4  ;;  %s64_s13 = sshll.u32 %s575_s12, 4  ;;  %s45_s11 = int_to_ptr.vmem [resolvable:$true] %s44_s11  ;;  %s65_s13 = int_to_ptr.vmem [resolvable:$true] %s64_s13 }
  0x38   :  { %s471_s17 = scalar_lea.hbm %s713_s2, 16 }
  0x39   :  { %p472_p10 = scmp.ne.s32.totalorder %s713_s2, %s471_s17  ;;  %p475_p11 = scmp.lt.u32.totalorder %s471_s17, %s713_s2 }
  0x3b   :  { %p477_p12 = pnand %p475_p11, %p472_p10 }
  0x3d   :  { %480 = shalt.err (!%p477_p12)
}
  0x3e   :  { %s481_s0 = scalar_lea.vmem %s45_s11, 16  ;;  %s485_s14 = scalar_lea.vmem %s45_s11, 32 }
  0x3f   :  { %p482_p13 = scmp.ne.s32.totalorder %s45_s11, %s481_s0  ;;  %p486_p0 = scmp.lt.s32.totalorder %s45_s11, %s45_s11 }
  0x40   :  { %p487_p1 = scmp.lt.s32.totalorder %s485_s14, %s481_s0 }
  0x42   :  { %p488_p2 = por %p487_p1, %p486_p0 }
  0x44   :  { %p489_p3 = pnand %p488_p2, %p482_p13 }
  0x46   :  { %492 = shalt.err (!%p489_p3)
}
  0x47   :  { %47 = dma.hbm_to_vmem [thread:$0]  %s713_s2, 16, %s45_s11, [#allocation8]  }
  0x48   :  { %s493_s25 = scalar_lea.hbm %s715_s4, 64 }
  0x49   :  { %p494_p4 = scmp.ne.s32.totalorder %s715_s4, %s493_s25  ;;  %p497_p5 = scmp.lt.u32.totalorder %s493_s25, %s715_s4 }
  0x4b   :  { %p499_p6 = pnand %p497_p5, %p494_p4 }
  0x4d   :  { %502 = shalt.err (!%p499_p6)
}
  0x4e   :  { %s503_s30 = scalar_lea.vmem %s65_s13, 64  ;;  %p508_p8 = scmp.lt.s32.totalorder %s65_s13, %s65_s13 }
  0x4f   :  { %p504_p7 = scmp.ne.s32.totalorder %s65_s13, %s503_s30  ;;  %p509_p9 = scmp.lt.s32.totalorder %s503_s30, %s503_s30 }
  0x51   :  { %p510_p10 = por %p509_p9, %p508_p8 }
  0x53   :  { %p511_p11 = pnand %p510_p10, %p504_p7 }
  0x55   :  { %514 = shalt.err (!%p511_p11)
}
  0x56   :  { %67 = dma.hbm_to_vmem [thread:$0]  %s715_s4, 64, %s65_s13, [#allocation11]  }
  0x57   :  { %s576_s8 = smov [#allocation13]   ;;  %s515_s11 = scalar_lea.hbm %s716_s5, 16 }
  0x58   :  { %s74_s3 = sshll.u32 %s576_s8, 4  ;;  %p516_p12 = scmp.ne.s32.totalorder %s716_s5, %s515_s11  ;;  %s75_s3 = int_to_ptr.vmem [resolvable:$true] %s74_s3 }
  0x59   :  { %p519_p13 = scmp.lt.u32.totalorder %s515_s11, %s716_s5 }
  0x5b   :  { %p521_p0 = pnand %p519_p13, %p516_p12 }
  0x5d   :  { %524 = shalt.err (!%p521_p0)
}
  0x5e   :  { %s525_s18 = scalar_lea.vmem %s75_s3, 16  ;;  %s529_s4 = scalar_lea.vmem %s75_s3, 32 }
  0x5f   :  { %p526_p1 = scmp.ne.s32.totalorder %s75_s3, %s525_s18  ;;  %p530_p2 = scmp.lt.s32.totalorder %s75_s3, %s75_s3 }
  0x60   :  { %p531_p3 = scmp.lt.s32.totalorder %s529_s4, %s525_s18 }
  0x62   :  { %p532_p4 = por %p531_p3, %p530_p2 }
  0x64   :  { %p533_p5 = pnand %p532_p4, %p526_p1 }
  0x66   :  { %536 = shalt.err (!%p533_p5)
}
  0x67   :  { %77 = dma.hbm_to_vmem [thread:$0]  %s716_s5, 16, %s75_s3, [#allocation14]  }
  0x68   :  { %559 = dma.done.wait [#allocation5], 64  }
  0x69   :  { %560 = vsyncadd [#allocation5], 4294967232 }
  0x6a   :  { %561 = dma.done.wait [#allocation8], 144  }
  0x6b   :  { %562 = vsyncadd [#allocation8], 4294967152 }
  0x6c   :  { %563 = dma.done.wait [#allocation11], 80  }
  0x6d   :  { %564 = vsyncadd [#allocation11], 4294967216 }
  0x6e   :  { %565 = dma.done.wait [#allocation14], 16  }
  0x6f   :  { %566 = vsyncadd [#allocation14], 4294967280  ;;  %v577_v0 = vmov 0.0   ;;  %vm578_vm0 = vmmov 0   ;;  %v400_v1 = vld [vmem:[#allocation7] sm:$0xff]   ;;  %vm113_vm1 = vcmask 130048  }
  0x70   :  { %371 = vmatprep.subr.bf16.mxu0 %v577_v0  ;;  %373 = vmatprep.mubr.msk.bf16.mxu0 %vm578_vm0, %v577_v0  ;;  %v104_v2 = vld [vmem:[#allocation4] sm:$0xf]  ;;  %vm157_vm2 = vcmask 31744   ;;  %v159_v5 = vld [vmem:[#allocation9] sm:$0x1]  ;;  %vm294_vm3 = vcmask 1043456  }
  0x71   :  { %377 = vmatprep.subr.mxu1 %v577_v0  ;;  %379 = vmatprep.mubr.msk.f32.mxu1 %vm578_vm0, %v577_v0  ;;  %v361_v8 = vld [vmem:[#allocation10] ss:$0 sm:$0xff]  ;;  %vm236_vm4 = vcmask 57344   ;;  %v254_v14 = vld [vmem:[#allocation12] sm:$0xf]  ;;  %v579_v17 = vmov 0  }
  0x72   :  { %372 = vmatpush3.bf16.msra.mxu0 %v400_v1  ;;  %vm255_vm5 = vcmp.gt.bf16.partialorder %v254_v14, 0  ;;  %vm270_vm8 = vcmask 64512   ;;  %v363_v36 = vld [vmem:[#allocation13] ss:$0 sm:$0xff]  ;;  %s580_s5 = smov [#allocation15]  }
  0x73   :  { %v266_v18 = vsel %vm255_vm5, 65537, %v579_v17  ;;  %s345_s20 = sshll.u32 %s580_s5, 4  ;;  %s346_s20 = int_to_ptr.vmem [resolvable:$true] %s345_s20 }
  0x74   :  { %v267_v19 = vunpack.c.l.b16 %v266_v18  ;;  %s537_s21 = scalar_lea.vmem %s346_s20, 128  ;;  %p542_p7 = scmp.lt.s32.totalorder %s346_s20, %s346_s20 }
  0x75   :  { %374 = vmatmul.mubr.msk.bf16.vlgmr.msra.gmra.mrb[0].mxu0 %vm113_vm1, %v104_v2  ;;  %p538_p6 = scmp.ne.s32.totalorder %s346_s20, %s537_s21  ;;  %p543_p8 = scmp.lt.s32.totalorder %s537_s21, %s537_s21 }
  0x76   :  { %vm268_vm7 = vcmp.ne.s32.totalorder %v267_v19, 0 }
  0x77   :  { %p544_p9 = por %p543_p8, %p542_p7 }
  0x79   :  { %p545_p10 = pnand %p544_p9, %p538_p6 }
 0x148   :  { %v151_v3 = vpop.f32.mrb[0].mxu0 }
 0x149   :  { %158 = vst.msk [vmem:[#allocation2] sm:$0xff] %vm157_vm2, %v151_v3  ;;  %v375_v4 = vpop.f32.mrb[1].mxu0  ;;  %378 = vmatpush3.xpose.msk.msra.mxu1 %vm157_vm2, %v151_v3 }
 0x14a   :  { %v154_v6 = vpop.f32.mrb[2].mxu0  ;;  %382 = vmatprep.subr.bf16.mxu1 %v577_v0 }
 0x14b   :  { %v376_v7 = vpop.f32.mrb[3].mxu0 }
 0x14c   :  { %380 = vmatmul.mubr.msk.f32.vlgmr.msra.gmra.mrb[0].mxu1 %vm157_vm2, %v159_v5 }
 0x14d   :  { %384 = vmatprep.mubr.msk.bf16.mxu1 %vm578_vm0, %v577_v0 }
 0x150   :  { %v240_v9 = vld [vmem:[#allocation2] sm:$0xff] }
 0x151   :  { %v248_v10 = vmul.f32 %v361_v8, %v240_v9  ;;  %v283_v11 = vpack.c.bf16 %v240_v9, %v240_v9 }
 0x153   :  { %v250_v12 = vsel %vm157_vm2, %v248_v10, 0.0  ;;  %v296_v13 = vsel %vm294_vm3, %v283_v11, 0 }
 0x154   :  { %251 = vadd.xlane.f32.xlu0 %v250_v12  ;;  %383 = vmatpush3.bf16.msra.mxu1 %v296_v13 }
 0x1e1   :  { %v252_v20 = vpop.xlane.xlu0 %251 }
 0x21f   :  { %v232_v15 = vpop.f32.mrb[0].mxu1 }
 0x220   :  { %237 = vst.msk [vmem:[#allocation3] sm:$0x1] %vm236_vm4, %v232_v15  ;;  %v381_v16 = vpop.f32.mrb[1].mxu1 }
 0x227   :  { %v362_v21 = vld [vmem:[#allocation3] ss:$0 sm:$0xff] }
 0x228   :  { %v262_v22 = vadd.f32 %v362_v21, %v252_v20 }
 0x22a   :  { %vm263_vm6 = vcmp.gt.f32.partialorder %v262_v22, 0.0  ;;  %v264_v23 = vmul.f32 0.2, %v262_v22 }
 0x22c   :  { %v265_v24 = vsel %vm263_vm6, %v262_v22, %v264_v23 }
 0x22d   :  { %v269_v25 = vsel %vm268_vm7, %v265_v24, -1e+30 }
 0x22e   :  { %v271_v26 = vsel %vm270_vm8, %v269_v25, -inf }
 0x22f   :  { %272 = vmax.xlane.f32.xlu0 %v271_v26 }
 0x2bc   :  { %v273_v27 = vpop.xlane.xlu0 %272 }
 0x2bd   :  { %v274_v28 = vsub.f32 %v269_v25, %v273_v27 }
 0x2bf   :  { %v275_v29 = vmul.f32 1.442695, %v274_v28 }
 0x2c1   :  { %401 = vpow2.f32 %v275_v29 }
 0x2cb   :  { %v402_v30 = vpop.eup %401 }
 0x2cc   :  { %v277_v31 = vsel %vm270_vm8, %v402_v30, 0.0 }
 0x2cd   :  { %278 = vadd.xlane.f32.xlu1 %v277_v31 }
 0x35a   :  { %v279_v32 = vpop.xlane.xlu1 %278 }
 0x35b   :  { %403 = vrcp.f32 %v279_v32 }
 0x365   :  { %v404_v33 = vpop.eup %403 }
 0x366   :  { %v281_v34 = vmul.f32 %v404_v33, %v402_v30 }
 0x368   :  { %v282_v35 = vpack.c.bf16 %v281_v34, %v281_v34 }
 0x36a   :  { %385 = vmatmul.mubr.msk.bf16.vlgmr.msra.gmra.mrb[4].mxu1 %vm270_vm8, %v282_v35 }
 0x43d   :  { %v332_v37 = vpop.f32.mrb[4].mxu1 }
 0x43e   :  { %v333_v38 = vadd.f32 %v363_v36, %v332_v37  ;;  %v386_v39 = vpop.f32.mrb[5].mxu1 }
 0x43f   :  { %v335_v40 = vpop.f32.mrb[6].mxu1 }
 0x440   :  { %338 = vst.msk [vmem:[#allocation15] sm:$0xff] %vm157_vm2, %v333_v38  ;;  %v387_v41 = vpop.f32.mrb[7].mxu1 }
 0x441   :  { %548 = shalt.err (!%p545_p10)
}
 0x442   :  { %s549_s1 = scalar_lea.hbm %s717_s6, 128 }
 0x443   :  { %p550_p11 = scmp.ne.s32.totalorder %s717_s6, %s549_s1  ;;  %p553_p12 = scmp.lt.u32.totalorder %s549_s1, %s717_s6 }
 0x445   :  { %p555_p13 = pnand %p553_p12, %p550_p11 }
 0x447   :  { %558 = shalt.err (!%p555_p13)
}
 0x448   :  { %348 = dma.vmem_to_hbm [thread:$0]  %s346_s20, 128, %s717_s6, [#allocation6]  }
 0x449   :  { %567 = dma.done.wait [#allocation6], 128  }
 0x44a   :  { %568 = vsyncadd [#allocation6], 4294967168 }
 0x44b   :  { %352 = vsyncpa [#allocation5], 1 }
 0x44c   :  { %353 = vsyncpa [#allocation8], 1 }
 0x44d   :  { %354 = vsyncpa [#allocation11], 1 }
 0x44e   :  { %355 = vsyncpa [#allocation14], 1 }
 0x44f   :  { %356 = vsyncpa [#allocation6], 1 }

// kernel: gat_forward.5
= control target key start
LH: loop header
LB: loop body
LE: loop exit
PB: predicated region body
PF: predicated region fallthrough
CT: control target
= control target key end

     0   :  { %s2135_s0 = inlined_call_operand.hbm [shape: bf16[16,8], index: 0, kind: input, shape index: {}]   ;;  %s2136_s1 = inlined_call_operand.hbm [shape: bf16[8,16], index: 1, kind: input, shape index: {}]   ;;  %s2137_s2 = inlined_call_operand.hbm [shape: f32[2,16], index: 2, kind: input, shape index: {}]   ;;  %s2138_s3 = inlined_call_operand.hbm [shape: f32[2,16], index: 3, kind: input, shape index: {}]   ;;  %s2139_s4 = inlined_call_operand.hbm [shape: bf16[16,16], index: 4, kind: input, shape index: {}]   ;;  %s2140_s5 = inlined_call_operand.hbm [shape: f32[1,16], index: 5, kind: input, shape index: {}, may-alias: {5,8}]   ;;  %s2141_s6 = inlined_call_operand.hbm [shape: f32[16,16], index: 6, kind: input, shape index: {}]   ;;  %s2142_s7 = inlined_call_operand.hbm [shape: f32[1,16], index: 7, kind: input, shape index: {}]   ;;  %s2143_s8 = inlined_call_operand.hbm [shape: f32[1,16], index: 8, kind: input, shape index: {}, may-alias: {5,8}]   ;;  %s2144_s9 = inlined_call_operand.hbm [shape: f32[16,16], index: 9, kind: output, shape index: {}]  }
   0x1   :  { %2155 = sst [smem:[#allocation28_spill]] %s2135_s0 }
   0x2   :  { %2156 = sst [smem:[#allocation29_spill]] %s2136_s1 }
   0x3   :  { %2157 = sst [smem:[#allocation30_spill]] %s2137_s2 }
   0x4   :  { %2158 = sst [smem:[#allocation31_spill]] %s2138_s3 }
   0x5   :  { %2159 = sst [smem:[#allocation32_spill]] %s2139_s4 }
   0x6   :  { %2160 = sst [smem:[#allocation33_spill]] %s2140_s5 }
   0x7   :  { %14 = vsyncpa [#allocation5], 0 }
   0x8   :  { %15 = vsyncpa [#allocation8], 0 }
   0x9   :  { %16 = vsyncpa [#allocation11], 0 }
   0xa   :  { %17 = vsyncpa [#allocation6], 0 }
   0xb   :  { %19 = vsyncpa [#allocation6 + $0x1], 0  ;;  %s1732_s30 = smov 0   ;;  %s1734_s10 = smov 0  }
   0xc   :  { %s1736_s11 = smov 0   ;;  %s1738_s12 = smov 0  }
   0xd LB: > { %s1661_s13 = smov [#allocation7]   ;;  %s1753_s15 = sadd.s32 4294967295, %s1659_s12   ;;  %s1659_s12 = sphi %s1738_s12, %s2203_s12   ;;  %s1655_s11 = sphi %s1736_s11, %s2202_s11   ;;  %s1651_s10 = sphi %s1734_s10, %s2201_s10   ;;  %s1647_s30 = sphi %s1732_s30, %s2200_s30  }
   0xe   : > { %s281_s14 = sshll.u32 %s1661_s13, 4  ;;  %p1072_p0 = scmp.ge.s32.totalorder %s1659_s12, 1  ;;  %s282_s14 = int_to_ptr.vmem [resolvable:$true] %s281_s14 }
   0xf   : > { %p2145_p1 = scmp.eq.s32.totalorder %s1753_s15, 0  ;;  %p255_p2 = scmp.lt.s32.totalorder %s1659_s12, 3 }
  0x10   : > { %s1662_s17 = smov [#allocation4]   ;;  %s1663_s20 = smov [#allocation9]  }
  0x11   : > { %p1759_p4 = pnand %p1072_p0, %p255_p2  ;;  %s267_s18 = sshll.u32 %s1662_s17, 4  ;;  %s1766_s18 = int_to_ptr.vmem [resolvable:$true] %s267_s18 }
  0x12   : > { %s292_s21 = sshll.u32 %s1663_s20, 4  ;;  %s2163_s1 = sld [smem:[#allocation29_spill]]  ;;  %s1774_s21 = int_to_ptr.vmem [resolvable:$true] %s292_s21 }
  0x13   : > { %s2161_s16 = scalar_select %p1759_p4, 1, 0 }
  0x14   : > { %p1194_p6 = pneg %p1759_p4 }
  0x16   : > { %p1770_p7 = pnand %p1194_p6, %p2145_p1 }
  0x18   : > { %s2162_s19 = scalar_select %p1770_p7, 1, 0 }
  0x19   : > { %s1309_s24 = scalar_lea.hbm %s2163_s1, 64  ;;  %p1784_p9 = pneg %p1770_p7 }
  0x1a   : > { %p1310_p8 = scmp.ne.s32.totalorder %s2163_s1, %s1309_s24  ;;  %p1316_p12 = scmp.lt.u32.totalorder %s1309_s24, %s2163_s1 }
  0x1c   : > { %p1312_p10 = pnand %p1784_p9, %p1310_p8 }
  0x1e   : > { %p1313_p11 = pneg %p1312_p10 }
  0x20   : > { %p1318_p13 = pnand %p1316_p12, %p1313_p11 }
  0x22   : > { %1321 = shalt.err (!%p1318_p13)
}
  0x23   : > { %s1322_s13 = scalar_lea.vmem %s282_s14, 64  ;;  %p1330_p5 = scmp.lt.s32.totalorder %s282_s14, %s282_s14 }
  0x24   : > { %p1323_p0 = scmp.ne.s32.totalorder %s282_s14, %s1322_s13  ;;  %p1331_p3 = scmp.lt.s32.totalorder %s1322_s13, %s1322_s13 }
  0x26   : > { %p1325_p2 = pnand %p1323_p0, %p1784_p9  ;;  %p1332_p1 = por %p1331_p3, %p1330_p5 }
  0x28   : > { %p1326_p6 = pneg %p1325_p2 }
  0x2a   : > { %p1333_p4 = pnand %p1332_p1, %p1326_p6 }
  0x2c   : > { %1336 = shalt.err (!%p1333_p4)
}
  0x2d   : > { %1200 = dma.hbm_to_vmem [thread:$0]  (!%p1770_p7), %s2163_s1, 64, %s282_s14, [#allocation8]  }
  0x2e   : > { %s2165_s0 = sld [smem:[#allocation28_spill]] }
  0x34   : > { %s1337_s24 = scalar_lea.hbm %s2165_s0, 128 }
  0x35   : > { %p1338_p8 = scmp.ne.s32.totalorder %s2165_s0, %s1337_s24  ;;  %p1344_p1 = scmp.lt.u32.totalorder %s1337_s24, %s2165_s0 }
  0x37   : > { %p1340_p10 = pnand %p1338_p8, %p1784_p9 }
  0x39   : > { %p1341_p3 = pneg %p1340_p10 }
  0x3b   : > { %p1346_p4 = pnand %p1344_p1, %p1341_p3 }
  0x3d   : > { %1349 = shalt.err (!%p1346_p4)
}
  0x3e   : > { %s1350_s14 = scalar_lea.vmem %s1766_s18, 128  ;;  %p1358_p13 = scmp.lt.s32.totalorder %s1766_s18, %s1766_s18 }
  0x3f   : > { %p1351_p5 = scmp.ne.s32.totalorder %s1766_s18, %s1350_s14  ;;  %p1359_p0 = scmp.lt.s32.totalorder %s1350_s14, %s1350_s14 }
  0x41   : > { %p1353_p11 = pnand %p1351_p5, %p1784_p9  ;;  %p1360_p2 = por %p1359_p0, %p1358_p13 }
  0x43   : > { %p1354_p12 = pneg %p1353_p11 }
  0x45   : > { %p1361_p6 = pnand %p1360_p2, %p1354_p12 }
  0x47   : > { %1364 = shalt.err (!%p1361_p6)
}
  0x48   : > { %s1664_s13 = smov 64   ;;  %s1665_s17 = smov 4  }
  0x49   : > { %1197 = dma.hbm_to_vmem [thread:$0]  (!%p1770_p7), %s2165_s0, 128, %s1766_s18, [#allocation5], %s1664_s13, %s1664_s13, %s1665_s17  }
  0x4a   : > { %s2166_s2 = sld [smem:[#allocation30_spill]] }
  0x50   : > { %s1365_s25 = scalar_lea.hbm %s2166_s2, 32 }
  0x51   : > { %p1366_p8 = scmp.ne.s32.totalorder %s2166_s2, %s1365_s25  ;;  %p1372_p1 = scmp.lt.u32.totalorder %s1365_s25, %s2166_s2 }
  0x53   : > { %p1368_p10 = pnand %p1366_p8, %p1784_p9 }
  0x55   : > { %p1369_p3 = pneg %p1368_p10 }
  0x57   : > { %p1374_p4 = pnand %p1372_p1, %p1369_p3 }
  0x59   : > { %1377 = shalt.err (!%p1374_p4)
}
  0x5a   : > { %s1378_s18 = scalar_lea.vmem %s1774_s21, 32  ;;  %p1386_p13 = scmp.lt.s32.totalorder %s1774_s21, %s1774_s21 }
  0x5b   : > { %p1379_p5 = scmp.ne.s32.totalorder %s1774_s21, %s1378_s18  ;;  %p1387_p0 = scmp.lt.s32.totalorder %s1378_s18, %s1378_s18 }
  0x5d   : > { %p1381_p11 = pnand %p1379_p5, %p1784_p9  ;;  %p1388_p2 = por %p1387_p0, %p1386_p13 }
  0x5f   : > { %p1382_p12 = pneg %p1381_p11 }
  0x61   : > { %p1389_p6 = pnand %p1388_p2, %p1382_p12 }
  0x63   : > { %1392 = shalt.err (!%p1389_p6)
}
  0x64   : > { %1203 = dma.hbm_to_vmem [thread:$0]  (!%p1770_p7), %s2166_s2, 32, %s1774_s21, [#allocation8]  }
  0x65   : > { %s1666_s20 = smov [#allocation10]   ;;  %s1667_s23 = smov [#allocation13]  }
  0x66   : > { %s303_s22 = sshll.u32 %s1666_s20, 4  ;;  %s314_s24 = sshll.u32 %s1667_s23, 4  ;;  %s304_s22 = int_to_ptr.vmem [resolvable:$true] %s303_s22  ;;  %s315_s24 = int_to_ptr.vmem [resolvable:$true] %s314_s24 }
  0x67   : > { %s2167_s3 = sld [smem:[#allocation31_spill]] }
  0x6d   : > { %s1393_s28 = scalar_lea.hbm %s2167_s3, 32 }
  0x6e   : > { %p1394_p8 = scmp.ne.s32.totalorder %s2167_s3, %s1393_s28  ;;  %p1400_p1 = scmp.lt.u32.totalorder %s1393_s28, %s2167_s3 }
  0x70   : > { %p1396_p10 = pnand %p1394_p8, %p1784_p9 }
  0x72   : > { %p1397_p3 = pneg %p1396_p10 }
  0x74   : > { %p1402_p4 = pnand %p1400_p1, %p1397_p3 }
  0x76   : > { %1405 = shalt.err (!%p1402_p4)
}
  0x77   : > { %s1406_s21 = scalar_lea.vmem %s304_s22, 32  ;;  %p1414_p13 = scmp.lt.s32.totalorder %s304_s22, %s304_s22 }
  0x78   : > { %p1407_p5 = scmp.ne.s32.totalorder %s304_s22, %s1406_s21  ;;  %p1415_p0 = scmp.lt.s32.totalorder %s1406_s21, %s1406_s21 }
  0x7a   : > { %p1409_p11 = pnand %p1407_p5, %p1784_p9  ;;  %p1416_p2 = por %p1415_p0, %p1414_p13 }
  0x7c   : > { %p1410_p12 = pneg %p1409_p11 }
  0x7e   : > { %p1417_p6 = pnand %p1416_p2, %p1410_p12 }
  0x80   : > { %1420 = shalt.err (!%p1417_p6)
}
  0x81   : > { %1206 = dma.hbm_to_vmem [thread:$0]  (!%p1770_p7), %s2167_s3, 32, %s304_s22, [#allocation11]  }
  0x82   : > { %s2168_s5 = sld [smem:[#allocation33_spill]] }
  0x88   : > { %s1421_s26 = scalar_lea.hbm %s2168_s5, 16 }
  0x89   : > { %p1422_p8 = scmp.ne.s32.totalorder %s2168_s5, %s1421_s26  ;;  %p1428_p1 = scmp.lt.u32.totalorder %s1421_s26, %s2168_s5 }
  0x8b   : > { %p1424_p10 = pnand %p1422_p8, %p1784_p9 }
  0x8d   : > { %p1425_p3 = pneg %p1424_p10 }
  0x8f   : > { %p1430_p4 = pnand %p1428_p1, %p1425_p3 }
  0x91   : > { %1433 = shalt.err (!%p1430_p4)
}
  0x92   : > { %s1434_s13 = scalar_lea.vmem %s315_s24, 16  ;;  %s1441_s22 = scalar_lea.vmem %s315_s24, 32 }
  0x93   : > { %p1435_p5 = scmp.ne.s32.totalorder %s315_s24, %s1434_s13  ;;  %p1442_p13 = scmp.lt.s32.totalorder %s315_s24, %s315_s24 }
  0x94   : > { %p1443_p0 = scmp.lt.s32.totalorder %s1441_s22, %s1434_s13 }
  0x95   : > { %p1437_p11 = pnand %p1435_p5, %p1784_p9 }
  0x96   : > { %p1444_p2 = por %p1443_p0, %p1442_p13 }
  0x97   : > { %p1438_p12 = pneg %p1437_p11 }
  0x99   : > { %p1445_p6 = pnand %p1444_p2, %p1438_p12 }
  0x9b   : > { %1448 = shalt.err (!%p1445_p6)
}
  0x9c   : > { %1209 = dma.hbm_to_vmem [thread:$0]  (!%p1770_p7), %s2168_s5, 16, %s315_s24, [#allocation8]  }
  0x9d   : > { %s1071_s20 = sadd.s32 4294967294, %s1659_s12   ;;  %s1884_s23 = sadd.s32 1, %s1659_s12  }
  0x9e   : > { %s116_s25 = sadd.s32 1, %s1655_s11  ;;  %s113_s26 = ssub.s32 %s1659_s12, %s1884_s23 }
  0x9f   : > { %p123_p8 = scmp.ne.s32.totalorder %s1655_s11, %s1651_s10  ;;  %p114_p10 = scmp.eq.s32.totalorder %s113_s26, 0 }
  0xa0   : > { %p124_p3 = scmp.eq.s32.totalorder %s1659_s12, 0  ;;  %p129_p1 = scmp.ne.s32.totalorder %s1651_s10, %s1647_s30 }
  0xa1   : > { %p242_p4 = scmp.eq.s32.totalorder %s1753_s15, 1  ;;  %p2170_p11 = scmp.eq.s32.totalorder %s1753_s15, 0 }
  0xa2   : > { %s1896_s28 = scalar_select %p114_p10, %s1655_s11, %s116_s25  }
  0xa3   : > { %p125_p5 = por %p124_p3, %p123_p8  ;;  %p1900_p12 = por %p2170_p11, %p129_p1 }
  0xa4   : > { %2169 = sst [smem:[#allocation27_spill]] %s1896_s28  ;;  %p1904_p13 = por %p242_p4, %p123_p8 }
  0xa5   : > { %s2171_s24 = scalar_select %p1900_p12, 1, 0 }
  0xa6   : > { %s2172_s29 = scalar_select %p1904_p13, 1, 0 }
  0xa7   : > { %p248_p0 = scmp.eq.s32.totalorder %s1071_s20, 1  ;;  %p1234_p2 = scmp.lt.s32.totalorder %s1659_s12, 2 }
  0xa8   : > { %s347_s14 = sand.u32 1, %s1659_s12   ;;  %s2147_s13 = sand.u32 1, %s1655_s11  }
  0xa9   : > { %p1910_p6 = por %p248_p0, %p129_p1  ;;  %s1082_s22 = sshll.u32 %s1659_s12, 6 }
  0xaa   : > { %s1081_s21 = sshll.u32 %s2147_s13, 2  ;;  %s2174_s4 = sld [smem:[#allocation32_spill]] }
  0xab   : > { %s2173_s18 = scalar_select %p1910_p6, 1, 0 }
  0xac   : > { %p1923_p8 = pnand %p1234_p2, %p125_p5  ;;  %s351_s0 = scalar_lea.vmem [#allocation12], %s1081_s21 }
  0xad   : > { %s358_s1 = sshll.u32 %s351_s0, 4  ;;  %s1929_s13 = scalar_lea.sflag [#allocation5], %s347_s14  ;;  %s1927_s1 = int_to_ptr.vmem [resolvable:$true] %s358_s1 }
  0xae   : > { %s2175_s20 = scalar_select %p1923_p8, 1, 0 }
  0xaf   : > { %p2152_p3 = pneg %p1923_p8 }
  0xb0   : > { %s1921_s26 = scalar_lea.hbm %s2174_s4, %s1082_s22  ;;  %s1454_s25 = scalar_lea.hbm %s2174_s4, 128 }
  0xb1   : > { %s1449_s2 = scalar_lea.hbm %s1921_s26, 64  ;;  %p1455_p5 = scmp.lt.u32.totalorder %s1921_s26, %s2174_s4 }
  0xb2   : > { %p1450_p10 = scmp.ne.s32.totalorder %s1921_s26, %s1449_s2  ;;  %p1456_p11 = scmp.lt.u32.totalorder %s1454_s25, %s1449_s2 }
  0xb3   : > { %p1458_p2 = scmp.lt.u32.totalorder %s1449_s2, %s1921_s26 }
  0xb4   : > { %p1452_p1 = pnand %p2152_p3, %p1450_p10  ;;  %p1457_p0 = por %p1456_p11, %p1455_p5 }
  0xb6   : > { %p1453_p4 = pneg %p1452_p1  ;;  %p1459_p6 = por %p1458_p2, %p1457_p0 }
  0xb8   : > { %p1460_p13 = pnand %p1459_p6, %p1453_p4 }
  0xba   : > { %1463 = shalt.err (!%p1460_p13)
}
  0xbb   : > { %s1464_s0 = scalar_lea.vmem %s1927_s1, 64  ;;  %s1668_s14 = smov [#allocation12]  }
  0xbc   : > { %p1465_p10 = scmp.ne.s32.totalorder %s1927_s1, %s1464_s0  ;;  %s1469_s21 = sshll.u32 %s1668_s14, 4  ;;  %s1470_s21 = int_to_ptr.vmem [resolvable:$false] %s1469_s21 }
  0xbd   : > { %s1471_s3 = scalar_lea.vmem %s1470_s21, 128  ;;  %p1472_p7 = scmp.lt.s32.totalorder %s1927_s1, %s1470_s21 }
  0xbe   : > { %p1467_p1 = pnand %p1465_p10, %p2152_p3  ;;  %p1473_p5 = scmp.lt.s32.totalorder %s1471_s3, %s1464_s0 }
  0xc0   : > { %p1468_p12 = pneg %p1467_p1  ;;  %p1474_p11 = por %p1473_p5, %p1472_p7 }
  0xc2   : > { %p1475_p0 = pnand %p1474_p11, %p1468_p12 }
  0xc4   : > { %1478 = shalt.err (!%p1475_p0)
}
  0xc5   : > { %1219 = dma.hbm_to_vmem [thread:$0]  (!%p1923_p8), %s1921_s26, 64, %s1927_s1, %s1929_s13  }
  0xc6   : > { %s1669_s2 = smov [#allocation15]   ;;  %s1670_s22 = smov [#allocation16]  }
  0xc7   : > { %s325_s5 = sshll.u32 %s1669_s2, 4  ;;  %s336_s17 = sshll.u32 %s1670_s22, 4  ;;  %s326_s5 = int_to_ptr.vmem [resolvable:$true] %s325_s5  ;;  %s337_s17 = int_to_ptr.vmem [resolvable:$true] %s336_s17 }
  0xc8   : > { %s1479_s21 = scalar_lea.hbm %s2142_s7, 16 }
  0xc9   : > { %p1480_p7 = scmp.ne.s32.totalorder %s2142_s7, %s1479_s21  ;;  %p1486_p6 = scmp.lt.u32.totalorder %s1479_s21, %s2142_s7 }
  0xcb   : > { %p1482_p12 = pnand %p1480_p7, %p1784_p9 }
  0xcd   : > { %p1483_p13 = pneg %p1482_p12 }
  0xcf   : > { %p1488_p4 = pnand %p1486_p6, %p1483_p13 }
  0xd1   : > { %1491 = shalt.err (!%p1488_p4)
}
  0xd2   : > { %s1492_s1 = scalar_lea.vmem %s326_s5, 16  ;;  %s1499_s26 = scalar_lea.vmem %s326_s5, 32 }
  0xd3   : > { %p1493_p2 = scmp.ne.s32.totalorder %s326_s5, %s1492_s1  ;;  %p1500_p5 = scmp.lt.s32.totalorder %s326_s5, %s326_s5 }
  0xd4   : > { %p1501_p11 = scmp.lt.s32.totalorder %s1499_s26, %s1492_s1 }
  0xd5   : > { %p1495_p10 = pnand %p1493_p2, %p1784_p9 }
  0xd6   : > { %p1502_p0 = por %p1501_p11, %p1500_p5 }
  0xd7   : > { %p1496_p1 = pneg %p1495_p10 }
  0xd9   : > { %p1503_p3 = pnand %p1502_p0, %p1496_p1 }
  0xdb   : > { %1506 = shalt.err (!%p1503_p3)
}
  0xdc   : > { %p2176_p7 = scmp.ne.s32.totalorder %s2162_s19, 0  ;;  %s2177_s4 = sand.u32 1, %s1655_s11  }
  0xdd   : > { %s1083_s28 = sshll.u32 %s2177_s4, 3  ;;  %s1507_s21 = scalar_lea.hbm %s2143_s8, 16 }
  0xde   : > { %1212 = dma.hbm_to_vmem [thread:$0]  (!%p2176_p7), %s2142_s7, 16, %s326_s5, [#allocation8]  }
  0xdf   : > { %p1508_p12 = scmp.ne.s32.totalorder %s2143_s8, %s1507_s21  ;;  %p1514_p6 = scmp.lt.u32.totalorder %s1507_s21, %s2143_s8 }
  0xe1   : > { %p1510_p3 = pnand %p1508_p12, %p1784_p9 }
  0xe3   : > { %p1511_p13 = pneg %p1510_p3 }
  0xe5   : > { %p1516_p4 = pnand %p1514_p6, %p1511_p13 }
  0xe7   : > { %1519 = shalt.err (!%p1516_p4)
}
  0xe8   : > { %s1520_s5 = scalar_lea.vmem %s337_s17, 16  ;;  %s1527_s2 = scalar_lea.vmem %s337_s17, 32 }
  0xe9   : > { %p1521_p2 = scmp.ne.s32.totalorder %s337_s17, %s1520_s5  ;;  %p1528_p5 = scmp.lt.s32.totalorder %s337_s17, %s337_s17 }
  0xea   : > { %p1529_p11 = scmp.lt.s32.totalorder %s1527_s2, %s1520_s5 }
  0xeb   : > { %p1523_p10 = pnand %p1521_p2, %p1784_p9 }
  0xec   : > { %p1530_p0 = por %p1529_p11, %p1528_p5 }
  0xed   : > { %p1524_p1 = pneg %p1523_p10 }
  0xef   : > { %p1531_p8 = pnand %p1530_p0, %p1524_p1 }
  0xf1   : > { %1534 = shalt.err (!%p1531_p8)
}
  0xf2   : > { %1215 = dma.hbm_to_vmem [thread:$0]  (!%p2176_p7), %s2143_s8, 16, %s337_s17, [#allocation11]  }
  0xf3   : > { %s1084_s25 = sshll.u32 %s1659_s12, 7  ;;  %s369_s0 = scalar_lea.vmem [#allocation14], %s1083_s28 }
  0xf4   : > { %s1999_s27 = scalar_lea.hbm %s2141_s6, %s1084_s25  ;;  %s376_s3 = sshll.u32 %s369_s0, 4  ;;  %s377_s3 = int_to_ptr.vmem [resolvable:$true] %s376_s3 }
  0xf5   : > { %s1535_s19 = scalar_lea.hbm %s1999_s27, 128  ;;  %p2178_p8 = scmp.ne.s32.totalorder %s2175_s20, 0 }
  0xf6   : > { %p1536_p9 = scmp.ne.s32.totalorder %s1999_s27, %s1535_s19  ;;  %s1540_s26 = scalar_lea.hbm %s2141_s6, 256 }
  0xf7   : > { %p2179_p12 = pneg %p2178_p8  ;;  %p1541_p7 = scmp.lt.u32.totalorder %s1999_s27, %s2141_s6 }
  0xf8   : > { %p1542_p6 = scmp.lt.u32.totalorder %s1540_s26, %s1535_s19  ;;  %p1544_p2 = scmp.lt.u32.totalorder %s1535_s19, %s1999_s27 }
  0xf9   : > { %p1538_p3 = pnand %p1536_p9, %p2179_p12 }
  0xfa   : > { %p1543_p4 = por %p1542_p6, %p1541_p7 }
  0xfb   : > { %p1539_p13 = pneg %p1538_p3 }
  0xfc   : > { %p1545_p10 = por %p1544_p2, %p1543_p4 }
  0xfe   : > { %p1546_p1 = pnand %p1545_p10, %p1539_p13 }
 0x100   : > { %1549 = shalt.err (!%p1546_p1)
}
 0x101   : > { %s1550_s28 = scalar_lea.vmem %s377_s3, 128  ;;  %p2180_p11 = pmov %p2179_p12 }
 0x102   : > { %p1551_p5 = scmp.ne.s32.totalorder %s377_s3, %s1550_s28  ;;  %s1671_s22 = smov [#allocation14]  }
 0x103   : > { %s1555_s4 = sshll.u32 %s1671_s22, 4  ;;  %s1556_s4 = int_to_ptr.vmem [resolvable:$false] %s1555_s4 }
 0x104   : > { %p1553_p0 = pnand %p1551_p5, %p2180_p11  ;;  %s1557_s25 = scalar_lea.vmem %s1556_s4, 256 }
 0x105   : > { %p1558_p12 = scmp.lt.s32.totalorder %s377_s3, %s1556_s4  ;;  %p1559_p3 = scmp.lt.s32.totalorder %s1557_s25, %s1550_s28 }
 0x106   : > { %p1554_p9 = pneg %p1553_p0 }
 0x107   : > { %p1560_p6 = por %p1559_p3, %p1558_p12 }
 0x109   : > { %p1561_p7 = pnand %p1560_p6, %p1554_p9 }
 0x10b   : > { %1564 = shalt.err (!%p1561_p7)
}
 0x10c   : > { %1222 = dma.hbm_to_vmem [thread:$0]  (!%p2178_p8), %s1999_s27, 128, %s377_s3, %s1929_s13  }
 0x10d   : > { %p2181_p13 = scmp.ne.s32.totalorder %s2161_s16, 0 }
 0x10e   : > { %p2182_p4 = scmp.eq.s32.totalorder (!%p2181_p13), %s1753_s15, 0 }
 0x10f   : > { %385 = sbr.rel (%p2181_p13) target bundleno = 2090 (0x82a), region = 56 }
 0x116   : > { %1610 = dma.done.wait (%p2182_p4), [#allocation5], 128   ;;  %p2183_p2 = pmov %p2182_p4 }
 0x118   : > { %1612 = vsyncadd (%p2183_p2), [#allocation5], 4294967168  ;;  %p2184_p10 = pmov %p2183_p2 }
 0x119   : > { %p2185_p1 = pmov %p2183_p2 }
 0x11a   : > { %1614 = dma.done.wait (%p2184_p10), [#allocation8], 96  }
 0x11b   : > { %1616 = vsyncadd (%p2185_p1), [#allocation8], 4294967200  ;;  %p2186_p5 = pmov %p2185_p1 }
 0x11c   : > { %p2187_p8 = pmov %p2185_p1 }
 0x11d   : > { %1618 = dma.done.wait (%p2186_p5), [#allocation11], 32  }
 0x11e   : > { %1620 = vsyncadd (%p2187_p8), [#allocation11], 4294967264  ;;  %s403_s16 = sand.u32 1, %s1753_s15   ;;  %s2037_s13 = sand.u32 1, %s1651_s10  }
 0x11f   : > { %s1090_s20 = sshll.u32 %s2037_s13, 2  ;;  %s404_s14 = scalar_lea.sflag [#allocation5], %s403_s16 }
 0x120   : > { %s2040_s21 = scalar_lea.vmem [#allocation12], %s1090_s20  ;;  %p2188_p11 = scmp.ne.s32.totalorder %s2171_s24, 0 }
 0x122   : > { %1622 = dma.done.wait (%p2188_p11), %s404_s14, 64  }
 0x123   : > { %1624 = vsyncadd (%p2188_p11), %s404_s14, 4294967232  ;;  %p2189_p0 = pmov %p2185_p1 }
 0x125   : > { %1626 = dma.done.wait (%p2189_p0), [#allocation8], 16   ;;  %p2190_p9 = pmov %p2189_p0 }
 0x126   : > { %s1092_s27 = sshll.u32 %s2037_s13, 3 }
 0x127   : > { %1628 = vsyncadd (%p2190_p9), [#allocation8], 4294967280  ;;  %s2051_s0 = scalar_lea.vmem [#allocation14], %s1092_s27 }
 0x128   : > { %1630 = dma.done.wait (%p2188_p11), %s404_s14, 128  }
 0x129   : > { %1632 = vsyncadd (%p2188_p11), %s404_s14, 4294967168  ;;  %p2191_p12 = pmov %p2189_p0 }
 0x12a   : > { %p2192_p3 = pmov %p2189_p0 }
 0x12b   : > { %1634 = dma.done.wait (%p2191_p12), [#allocation8], 16  }
 0x12c   : > { %1636 = vsyncadd (%p2192_p3), [#allocation8], 4294967280  ;;  %p2193_p6 = pmov %p2189_p0 }
 0x12d   : > { %p2194_p7 = pmov %p2189_p0 }
 0x12e   : > { %1638 = dma.done.wait (%p2193_p6), [#allocation11], 16  }
 0x12f   : > { %1640 = vsyncadd (%p2194_p7), [#allocation11], 4294967280  ;;  %s1096_s3 = sshll.u32 %s1753_s15, 3  ;;  %s2066_s19 = scalar_lea.vmem [#allocation17], %s1092_s27 }
 0x130   : > { %p2195_p13 = scmp.ne.s32.totalorder %s1753_s15, 0 }
 0x131   : > { %v478_v0 = vld [vmem:[#allocation7] sm:$0xf] (!%p2195_p13)  ;;  %vm488_vm0 = vcmask (!%p2195_p13), 1043456   ;;  %v1672_v1 = vmov (!%p2195_p13), 0.0   ;;  %vm1673_vm1 = vmmov (!%p2195_p13), 0   ;;  %v1293_v3 = vld [vmem:[#allocation4] sm:$0xff] (!%p2195_p13)  }
 0x132   : > { %475 = sbr.rel (%p2195_p13) target bundleno = 746 (0x2ea), region = 96  ;;  %1126 = vmatprep.subr.bf16.mxu0 (!%p2195_p13), %v1672_v1  ;;  %v490_v2 = vsel (!%p2195_p13), %vm488_vm0, %v478_v0, 0  ;;  %1128 = vmatprep.mubr.msk.bf16.mxu0 (!%p2195_p13), %vm1673_vm1, %v1672_v1  ;;  %vm484_vm2 = vcmask (!%p2195_p13), 64512   ;;  %v1674_v4 = vmov (!%p2195_p13), 0.0|0.0   ;;  %vm533_vm3 = vcmask (!%p2195_p13), 130048  }
 0x133   : > { %1127 = vmatpush3.bf16.msra.mxu0 (!%p2195_p13), %v490_v2  ;;  %1136 = vmatprep.mubr.msk.f32.mxu1 (!%p2195_p13), %vm1673_vm1, %v1672_v1  ;;  %vm1158_vm4 = vmpackc.low (!%p2195_p13), %vm533_vm3, %vm533_vm3  ;;  %v536_v10 = vld [vmem:[#allocation9] sm:$0x3] (!%p2195_p13)  ;;  %vm616_vm5 = vcmask (!%p2195_p13), 123904  }
 0x134   : > { %1156 = vmatprep.subr.bf16.mxu1 (!%p2195_p13), %v1674_v4 }
 0x136   : > { %1129 = vmatmul.mubr.msk.bf16.vlgmr.msra.gmra.mrb[0].mxu0 (!%p2195_p13), %vm484_vm2, %v1293_v3 }
 0x209   : > { %v526_v5 = vpop.f32.mrb[0].mxu0 }
 0x20a   : > { %534 = vst.msk [vmem:[#allocation2] sm:$0xff] %vm533_vm3, %v526_v5  ;;  %v1130_v6 = vpop.f32.mrb[1].mxu0 }
 0x20b   : > { %v529_v7 = vpop.f32.mrb[2].mxu0 }
 0x20c   : > { %535 = vst.msk [vmem:[#allocation2 + $0x8] sm:$0xff] %vm533_vm3, %v529_v7  ;;  %v1157_v8 = vpack.c.bf16 %v529_v7, %v526_v5  ;;  %v1131_v9 = vpop.f32.mrb[3].mxu0 }
 0x20e   : > { %1159 = vmatpush3.bf16.xpose.msk.msra.mxu1 %vm1158_vm4, %v1157_v8 }
 0x215   : > { %1137 = vmatmul.mubr.msk.f32.vlgmr.msra.gmra.mrb[0].mxu1 %vm533_vm3, %v536_v10 }
 0x2e8   : > { %v612_v11 = vpop.f32.mrb[0].mxu1 }
 0x2e9   : > { %617 = vst.msk [vmem:[#allocation3] sm:$0x3] %vm616_vm5, %v612_v11  ;;  %v1138_v12 = vpop.f32.mrb[1].mxu1 }
 0x2ea PF: > { %v622_v13 = vld [vmem:[#allocation10] sm:$0x3]  ;;  %vm623_vm6 = vcmask 130048   ;;  %v1675_v14 = vmov 0.0   ;;  %vm1676_vm7 = vmmov 0   ;;  %s620_s24 = scalar_lea.vmem [#allocation2], %s1096_s3  ;;  %v708_v20 = vlaneseq }
 0x2eb   : > { %1139 = vmatprep.subr.mxu0 %v1675_v14  ;;  %1141 = vmatprep.mubr.msk.f32.mxu0 %vm1676_vm7, %v1675_v14  ;;  %v621_v15 = vld [vmem:[%s620_s24] sm:$0xff]  ;;  %v1677_v16 = vmov 1   ;;  %v1678_v19 = vmov 0   ;;  %v619_v43 = vld [vmem:[#allocation2 + $0x8] sm:$0xff]  ;;  %s1679_s17 = smov 120   ;;  %s1680_s1 = smov 8  }
 0x2ec   : > { %1140 = vmatpush3.xpose.msk.msra.mxu0 %vm623_vm6, %v622_v13  ;;  %1294 = vset.pattern.permute.xlu0 %v1677_v16  ;;  %v709_v21 = vshrl.u32 %v708_v20, 7  ;;  %v701_v22 = vld [vmem:[%s2040_s21] sm:$0xf]  ;;  %vm852_vm12 = vcmask 64512   ;;  %v1107_v8 = vld [vmem:[#allocation13] ss:$0 sm:$0xff] }
 0x2ed   : > { %1150 = vmatprep.subr.bf16.mxu0 %v1675_v14  ;;  %1144 = vmatprep.subr.bf16.mxu1 %v1675_v14  ;;  %vm702_vm8 = vcmp.gt.bf16.partialorder %v701_v22, 0  ;;  %v618_v42 = vld [vmem:[#allocation2] sm:$0xff]  ;;  %v862_v11 = vld [vmem:[%s2051_s0] sm:$0xff]  ;;  %s1112_s26 = sshll.u32 %s1753_s15, 7  ;;  %s914_s5 = sshll.u32 %s2066_s19, 4  ;;  %s2091_s5 = int_to_ptr.vmem [resolvable:$true] %s914_s5 }
 0x2ee   : > { %1146 = vmatprep.mubr.msk.bf16.mxu1 %vm1676_vm7, %v1675_v14  ;;  %v782_v23 = vsub.s32 1, %v709_v21  ;;  %v716_v25 = vsel %vm702_vm8, 65537, %v1678_v19  ;;  %v710_v27 = vsub.s32 0, %v709_v21  ;;  %v732_v44 = vpack.c.bf16 %v619_v43, %v618_v42  ;;  %s2089_s22 = scalar_lea.hbm %s2144_s9, %s1112_s26  ;;  %s901_s4 = scalar_lea.sflag [#allocation6], %s2037_s13 }
 0x2ef   : > { %1142 = vmatmul.mubr.msk.f32.vlgmr.msra.gmra.mrb[0].mxu0 %vm623_vm6, %v621_v15  ;;  %v717_v28 = vunpack.c.l.b16 %v716_v25  ;;  %s1565_s25 = scalar_lea.vmem %s2091_s5, 128  ;;  %p2196_p2 = scmp.ne.s32.totalorder %s2172_s29, 0 }
 0x2f0   : > { %1152 = vmatprep.mubr.msk.bf16.mxu0 %vm1676_vm7, %v1675_v14  ;;  %v700_v24 = vld [vmem:[#allocation3] sm:$0x3]  ;;  %1145 = vmatpush3.bf16.msra.mxu1 %v732_v44  ;;  %p1566_p4 = scmp.ne.s32.totalorder %s2091_s5, %s1565_s25  ;;  %s1681_s15 = smov [#allocation17]  }
 0x2f1   : > { %v783_v26 = vrot.slane %v700_v24, %v782_v23  ;;  %v711_v31 = vrot.slane %v700_v24, %v710_v27  ;;  %vm718_vm9 = vcmp.ne.s32.totalorder %v717_v28, 0  ;;  %v1108_v24 = vld [vmem:[#allocation15] ss:$0 sm:$0xff]  ;;  %s1569_s16 = sshll.u32 %s1681_s15, 4  ;;  %s1570_s16 = int_to_ptr.vmem [resolvable:$false] %s1569_s16 }
 0x2f2   : > { %p1567_p10 = pnand %p1566_p4, %p2196_p2  ;;  %s1571_s20 = scalar_lea.vmem %s1570_s16, 256 }
 0x2f3   : > { %p1572_p5 = scmp.lt.s32.totalorder %s2091_s5, %s1570_s16  ;;  %p1573_p8 = scmp.lt.s32.totalorder %s1571_s20, %s1565_s25 }
 0x2f4   : > { %p1568_p1 = pneg %p1567_p10 }
 0x2f5   : > { %p1574_p11 = por %p1573_p8, %p1572_p5 }
 0x2f7   : > { %p1575_p0 = pnand %p1574_p11, %p1568_p1 }
 0x3c2   : > { %v696_v17 = vpop.f32.mrb[0].mxu0 }
 0x3c3   : > { %777 = vperm.xlu0 %1294, %v696_v17   ;;  %v1143_v18 = vpop.f32.mrb[1].mxu0 }
 0x3c7   : > { %1295 = vset.pattern.permute.xlu0 %v1678_v19 }
 0x3c8   : > { %705 = vperm.xlu0 %1295, %v696_v17  }
 0x3cc   : > { %1296 = vset.pattern.permute.xlu0 %v1677_v16 }
 0x3cd   : > { %802 = vrot.lane.b32.xlu0 %v732_v44, %s1679_s17 }
 0x442   : > { %v778_v29 = vpop.permute.xlu0 %777 }
 0x443   : > { %v784_v30 = vadd.f32 %v783_v26, %v778_v29  ;;  %v1109_v26 = vld [vmem:[#allocation16] ss:$0 sm:$0xff] }
 0x445   : > { %v786_v32 = vmul.f32 0.2, %v784_v30  ;;  %vm785_vm10 = vcmp.gt.f32.partialorder %v784_v30, 0.0 }
 0x447   : > { %v706_v33 = vpop.permute.xlu0 %705  ;;  %v787_v34 = vsel %vm785_vm10, %v784_v30, %v786_v32 }
 0x448   : > { %v712_v35 = vadd.f32 %v711_v31, %v706_v33  ;;  %v788_v36 = vsel %vm718_vm9, %v787_v34, -1e+30 }
 0x449   : > { %v789_v37 = vsel %vm623_vm6, %v788_v36, -inf }
 0x44a   : > { %v714_v38 = vmul.f32 0.2, %v712_v35  ;;  %790 = vmax.xlane.f32.xlu1 %v789_v37  ;;  %vm713_vm11 = vcmp.gt.f32.partialorder %v712_v35, 0.0 }
 0x44b   : > { %v803_v55 = vpop.permute.xlu0 %802 }
 0x44c   : > { %v715_v39 = vsel %vm713_vm11, %v712_v35, %v714_v38  ;;  %1151 = vmatpush3.bf16.msra.mxu0 %v803_v55 }
 0x44d   : > { %v719_v40 = vsel %vm718_vm9, %v715_v39, -1e+30 }
 0x44e   : > { %v720_v41 = vsel %vm623_vm6, %v719_v40, -inf }
 0x44f   : > { %721 = vmax.xlane.f32.xlu1 %v720_v41 }
 0x4d7   : > { %v791_v45 = vpop.xlane.xlu1 %790 }
 0x4d8   : > { %v792_v46 = vsub.f32 %v788_v36, %v791_v45 }
 0x4da   : > { %v793_v47 = vmul.f32 1.442695, %v792_v46 }
 0x4dc   : > { %1297 = vpow2.f32 %v793_v47  ;;  %v722_v48 = vpop.xlane.xlu1 %721 }
 0x4dd   : > { %v723_v49 = vsub.f32 %v719_v40, %v722_v48 }
 0x4df   : > { %v724_v50 = vmul.f32 1.442695, %v723_v49 }
 0x4e1   : > { %1299 = vpow2.f32 %v724_v50 }
 0x4e6   : > { %v1298_v51 = vpop.eup %1297 }
 0x4e7   : > { %v795_v52 = vsel %vm623_vm6, %v1298_v51, 0.0 }
 0x4e8   : > { %796 = vadd.xlane.f32.xlu1 %v795_v52 }
 0x4eb   : > { %v1300_v53 = vpop.eup %1299 }
 0x4ec   : > { %v726_v54 = vsel %vm623_vm6, %v1300_v53, 0.0 }
 0x4ed   : > { %727 = vadd.xlane.f32.xlu1 %v726_v54 }
 0x575   : > { %v797_v56 = vpop.xlane.xlu1 %796 }
 0x576   : > { %1301 = vrcp.f32 %v797_v56 }
 0x57a   : > { %v728_v57 = vpop.xlane.xlu1 %727 }
 0x57b   : > { %1303 = vrcp.f32 %v728_v57 }
 0x580   : > { %v1302_v58 = vpop.eup %1301 }
 0x581   : > { %v799_v59 = vmul.f32 %v1302_v58, %v1298_v51 }
 0x583   : > { %v800_v60 = vpack.c.bf16 %v799_v59, %v799_v59 }
 0x585   : > { %v1304_v61 = vpop.eup %1303  ;;  %1153 = vmatmul.mubr.msk.bf16.vlgmr.msra.gmra.mrb[4].mxu0 %vm623_vm6, %v800_v60 }
 0x586   : > { %v730_v62 = vmul.f32 %v1304_v61, %v1300_v53 }
 0x588   : > { %v731_v63 = vpack.c.bf16 %v730_v62, %v730_v62 }
 0x58a   : > { %1147 = vmatmul.mubr.msk.bf16.vlgmr.msra.gmra.mrb[0].mxu1 %vm623_vm6, %v731_v63 }
 0x658   : > { %v842_v0 = vpop.f32.mrb[4].mxu0 }
 0x659   : > { %849 = vrot.lane.b32.xlu0 %v842_v0, %s1680_s1  ;;  %v1154_v1 = vpop.f32.mrb[5].mxu0 }
 0x65a   : > { %v845_v2 = vpop.f32.mrb[6].mxu0 }
 0x65b   : > { %v1155_v3 = vpop.f32.mrb[7].mxu0 }
 0x65d   : > { %v770_v4 = vpop.f32.mrb[0].mxu1 }
 0x65e   : > { %v1148_v5 = vpop.f32.mrb[1].mxu1 }
 0x65f   : > { %v773_v6 = vpop.f32.mrb[2].mxu1 }
 0x660   : > { %v1149_v7 = vpop.f32.mrb[3].mxu1 }
 0x6cb   : > { %v850_v9 = vpop.permute.xlu0 %849 }
 0x6cc   : > { %v853_v10 = vsel %vm852_vm12, %v770_v4, %v850_v9 }
 0x6cd   : > { %v861_v12 = vadd.f32 %v1107_v8, %v853_v10 }
 0x6cf   : > { %v863_v13 = vadd.f32 %v862_v11, %v861_v12 }
 0x6d1   : > { %v864_v14 = vsel %vm623_vm6, %v863_v13, 0.0 }
 0x6d2   : > { %865 = vadd.xlane.f32.xlu1 %v864_v14 }
 0x75f   : > { %v866_v15 = vpop.xlane.xlu1 %865 }
 0x760   : > { %v867_v16 = vmul.f32 0.0625, %v866_v15 }
 0x762   : > { %v868_v17 = vsub.f32 %v863_v13, %v867_v16 }
 0x764   : > { %v869_v18 = vmul.f32 %v868_v17, %v868_v17 }
 0x766   : > { %v870_v19 = vsel %vm623_vm6, %v869_v18, 0.0 }
 0x767   : > { %871 = vadd.xlane.f32.xlu0 %v870_v19 }
 0x7f4   : > { %v872_v20 = vpop.xlane.xlu0 %871 }
 0x7f5   : > { %v873_v21 = vmul.f32 0.0625, %v872_v20 }
 0x7f7   : > { %v874_v22 = vadd.f32 1e-05, %v873_v21 }
 0x7f9   : > { %1305 = vrsqrt.f32 %v874_v22 }
 0x803   : > { %v1306_v23 = vpop.eup %1305 }
 0x804   : > { %v876_v25 = vmul.f32 %v1306_v23, %v868_v17 }
 0x806   : > { %v884_v27 = vmul.f32 %v1108_v24, %v876_v25 }
 0x808   : > { %v892_v28 = vadd.f32 %v1109_v26, %v884_v27 }
 0x80a   : > { %v894_v29 = vmin.f32 %v892_v28, 0.0  ;;  %vm893_vm13 = vcmp.gt.f32.partialorder %v892_v28, 0.0 }
 0x80c   : > { %v895_v30 = vmul.f32 1.442695, %v894_v29 }
 0x80e   : > { %1307 = vpow2.f32 %v895_v30 }
 0x818   : > { %v1308_v31 = vpop.eup %1307 }
 0x819   : > { %v1110_v32 = vadd.f32 -1.0, %v1308_v31 }
 0x81b   : > { %v898_v33 = vsel %vm893_vm13, %v892_v28, %v1110_v32 }
 0x81c   : > { %899 = vst.msk [vmem:[%s2066_s19] sm:$0xff] %vm623_vm6, %v898_v33 }
 0x81d   : > { %1578 = shalt.err (!%p1575_p0)
}
 0x81e   : > { %s1579_s13 = scalar_lea.hbm %s2089_s22, 128  ;;  %s1583_s27 = scalar_lea.hbm %s2144_s9, 256 }
 0x81f   : > { %p1580_p9 = scmp.ne.s32.totalorder %s2089_s22, %s1579_s13  ;;  %p1584_p6 = scmp.lt.u32.totalorder %s2089_s22, %s2144_s9 }
 0x820   : > { %p1585_p7 = scmp.lt.u32.totalorder %s1583_s27, %s1579_s13  ;;  %p1587_p4 = scmp.lt.u32.totalorder %s1579_s13, %s2089_s22 }
 0x821   : > { %p1581_p12 = pnand %p1580_p9, %p2196_p2 }
 0x822   : > { %p1586_p13 = por %p1585_p7, %p1584_p6 }
 0x823   : > { %p1582_p3 = pneg %p1581_p12 }
 0x824   : > { %p1588_p10 = por %p1587_p4, %p1586_p13 }
 0x826   : > { %p1589_p1 = pnand %p1588_p10, %p1582_p3 }
 0x828   : > { %1592 = shalt.err (!%p1589_p1)
}
 0x829   : > { %1192 = dma.vmem_to_hbm [thread:$0]  (%p2196_p2), %s2091_s5, 128, %s2089_s22, %s901_s4  }
 0x82a PF: > { %s926_s19 = sand.u32 1, %s1647_s30   ;;  %p2197_p5 = scmp.ne.s32.totalorder %s2173_s18, 0 }
 0x82b   : > { %p2198_p8 = scmp.ge.s32.totalorder %s1659_s12, 2  ;;  %s927_s24 = scalar_lea.sflag [#allocation6], %s926_s19 }
 0x82d   : > { %p1224_p11 = pnand %p2198_p8, %p2197_p5 }
 0x82f   : > { %1642 = dma.done.wait (!%p1224_p11), %s927_s24, 128  }
 0x830   : > { %1644 = vsyncadd (!%p1224_p11), %s927_s24, 4294967168  ;;  %s2199_s17 = sld [smem:[#allocation27_spill]]  ;;  %p22_p0 = scmp.ge.s32.totalorder %s1884_s23, 4  }
 0x831   : > { %s2200_s30 = smov %s1651_s10  ;;  %s2201_s10 = smov %s1655_s11 }
 0x832   : > { %s2203_s12 = smov %s1884_s23  ;;  %24 = sbr.rel (!%p22_p0) target bundleno = 13 (0xd), region = 144 }
 0x836   : > { %s2202_s11 = smov %s2199_s17 }
 0x839   :  { %932 = vsyncpa [#allocation5], 1 }
 0x83a   :  { %934 = vsyncpa [#allocation5 + $0x1], 1 }
 0x83b   :  { %935 = vsyncpa [#allocation8], 1 }
 0x83c   :  { %936 = vsyncpa [#allocation11], 1 }
 0x83d   :  { %937 = vsyncpa [#allocation6], 1 }
 0x83e   :  { %939 = vsyncpa [#allocation6 + $0x1], 1 }

</bundles_post_ra>
